<compile_context>
chip_gen: v7x
topology: tpu7x:2x2x1
jax: 0.10.0
libtpu: 0.0.40
codegen_flags: <defaults>
</compile_context>

<pallas_src>
import functools
import math

import jax
import jax.numpy as jnp
from jax.experimental import pallas as pl
from jax.experimental.pallas import tpu as pltpu

LN_EPS = 1e-5                 # PyTorch LayerNorm default
_ROW_TILE_TARGET = 256        # row-tile for gridded linear / FFN kernels
_LSTM_TIME_BLOCK = 16         # timesteps per LSTM grid step
_TOPK_BISECT_ITERS = 24       # threshold-bisection passes for top-k


def _row_tile(n, target=_ROW_TILE_TARGET):
    return n if n <= target else target


def _time_block(t_len, target=_LSTM_TIME_BLOCK):
    tt = min(t_len, target)
    while t_len % tt:
        tt -= 1
    return tt


# --------------------------------------------------------------------------------------
# Gridded linear kernel:  y = x @ W^T + b   (W passed pre-transposed (in, out), bf16)
# Used for: hoisted LSTM input projection (lane-dense 4H output) and the final FC.
# --------------------------------------------------------------------------------------
def _linear_kernel(x_ref, w_ref, b_ref, o_ref):
    o_ref[...] = (
        jnp.dot(x_ref[...].astype(jnp.bfloat16), w_ref[...],
                preferred_element_type=jnp.float32)
        + b_ref[...])


def pallas_linear(x, w_t_bf16, b):
    n, k = x.shape
    m = w_t_bf16.shape[1]
    tile = _row_tile(n)
    return pl.pallas_call(
        _linear_kernel,
        out_shape=jax.ShapeDtypeStruct((n, m), jnp.float32),
        grid=(pl.cdiv(n, tile),),
        in_specs=[
            pl.BlockSpec((tile, k), lambda i: (i, 0)),
            pl.BlockSpec((k, m), lambda i: (0, 0)),
            pl.BlockSpec((1, m), lambda i: (0, 0)),
        ],
        out_specs=pl.BlockSpec((tile, m), lambda i: (i, 0)),
        compiler_params=pltpu.CompilerParams(dimension_semantics=("parallel",)),
    )(x, w_t_bf16, b.reshape(1, m))


# --------------------------------------------------------------------------------------
# Fused multi-head attention kernel (gridded over batch, "parallel"):
#   QKV proj (concatenated bf16 weight) -> head-batched scaled dot-product attention
#   (optional top-k sparsification via threshold bisection) -> single output projection
#   -> optional residual + LayerNorm epilogue (encoder layer).
# --------------------------------------------------------------------------------------
def _mha_kernel(x_ref, wqkv_ref, bqkv_ref, wo_ref, bo_ref, *rest,
                num_heads, num_keep, fuse_ln, eps):
    if fuse_ln:
        g_ref, beta_ref, o_ref = rest
    else:
        (o_ref,) = rest
    _, T, E = x_ref.shape            # block is (1, T, E): one batch element
    H = num_heads
    dh = E // H
    scale = 1.0 / math.sqrt(dh)

    x = x_ref[0]                                                       # (T, E) f32
    qkv = (jnp.dot(x.astype(jnp.bfloat16), wqkv_ref[...],
                   preferred_element_type=jnp.float32) + bqkv_ref[...])  # (T, 3E)

    # Head-batched layout: one reshape + major-dim transpose (no per-head lane slicing).
    def heads(block):                 # (T, E) -> (H, T, dh)
        return jnp.transpose(block.reshape(T, H, dh), (1, 0, 2))

    q = heads(qkv[:, 0:E] * scale).astype(jnp.bfloat16)     # 1/sqrt(dh) folded into q
    k = heads(qkv[:, E:2 * E]).astype(jnp.bfloat16)
    v = heads(qkv[:, 2 * E:3 * E]).astype(jnp.bfloat16)

    s = jnp.einsum("htd,hsd->hts", q, k, preferred_element_type=jnp.float32)

    if num_keep < T:
        # Top-k kept keys per (head, query) row: bisect the threshold value with a fixed
        # number of count(s >= mid) passes — O(log) cost independent of num_keep.
        # TODO(synk): ties / near-ties inside the final bisection interval keep > k keys
        #             (torch.topk keeps exactly k, breaking ties by index).
        lo = jnp.min(s, axis=-1, keepdims=True)
        hi = jnp.max(s, axis=-1, keepdims=True) + 1.0

        def bisect(_, carry):
            lo_c, hi_c = carry
            mid = 0.5 * (lo_c + hi_c)
            cnt = jnp.sum((s >= mid).astype(jnp.float32), axis=-1, keepdims=True)
            ge = cnt >= float(num_keep)
            return jnp.where(ge, mid, lo_c), jnp.where(ge, hi_c, mid)

        lo, _ = jax.lax.fori_loop(0, _TOPK_BISECT_ITERS, bisect, (lo, hi))
        s = jnp.where(s >= lo, s, -jnp.inf)

    m = jnp.max(s, axis=-1, keepdims=True)
    p = jnp.exp(s - m)
    w = p * pl.reciprocal(jnp.sum(p, axis=-1, keepdims=True), approx=True)

    o = jnp.einsum("hts,hsd->htd", w.astype(jnp.bfloat16), v,
                   preferred_element_type=jnp.float32)                 # (H, T, dh)
    o_flat = jnp.transpose(o, (1, 0, 2)).reshape(T, E)                 # head merge
    out = (jnp.dot(o_flat.astype(jnp.bfloat16), wo_ref[...],
                   preferred_element_type=jnp.float32) + bo_ref[...])

    if fuse_ln:                                   # residual + LayerNorm epilogue
        z = x + out
        mu = jnp.mean(z, axis=-1, keepdims=True)
        var = jnp.mean(jnp.square(z - mu), axis=-1, keepdims=True)
        out = (z - mu) * jax.lax.rsqrt(var + eps) * g_ref[...] + beta_ref[...]
    o_ref[0] = out


def pallas_mha(x, wqkv_t_bf16, bqkv, wo_t_bf16, bo, *, num_heads, num_keep, ln=None):
    B, T, E = x.shape
    fuse_ln = ln is not None
    args = [x, wqkv_t_bf16, bqkv.reshape(1, 3 * E), wo_t_bf16, bo.reshape(1, E)]
    specs = [
        pl.BlockSpec((1, T, E), lambda b: (b, 0, 0)),
        pl.BlockSpec((E, 3 * E), lambda b: (0, 0)),
        pl.BlockSpec((1, 3 * E), lambda b: (0, 0)),
        pl.BlockSpec((E, E), lambda b: (0, 0)),
        pl.BlockSpec((1, E), lambda b: (0, 0)),
    ]
    if fuse_ln:
        args += [ln[0].reshape(1, E), ln[1].reshape(1, E)]
        specs += [pl.BlockSpec((1, E), lambda b: (0, 0)),
                  pl.BlockSpec((1, E), lambda b: (0, 0))]
    return pl.pallas_call(
        functools.partial(_mha_kernel, num_heads=num_heads, num_keep=num_keep,
                          fuse_ln=fuse_ln, eps=LN_EPS),
        out_shape=jax.ShapeDtypeStruct((B, T, E), jnp.float32),
        grid=(B,),
        in_specs=specs,
        out_specs=pl.BlockSpec((1, T, E), lambda b: (b, 0, 0)),
        compiler_params=pltpu.CompilerParams(
            dimension_semantics=("parallel",),
            vmem_limit_bytes=64 * 1024 * 1024),
    )(*args)


# --------------------------------------------------------------------------------------
# Fused FFN + residual + LayerNorm kernel (gridded over rows, "parallel"):
#   LN2(x + W2 @ relu(W1 @ x + b1) + b2); hidden activation never leaves VMEM.
# --------------------------------------------------------------------------------------
def _ffn_ln_kernel(x_ref, w1_ref, b1_ref, w2_ref, b2_ref, g_ref, beta_ref, o_ref, *, eps):
    x = x_ref[...]
    h = jnp.maximum(
        jnp.dot(x.astype(jnp.bfloat16), w1_ref[...],
                preferred_element_type=jnp.float32) + b1_ref[...], 0.0)
    f = jnp.dot(h.astype(jnp.bfloat16), w2_ref[...],
                preferred_element_type=jnp.float32) + b2_ref[...]
    z = x + f
    mu = jnp.mean(z, axis=-1, keepdims=True)
    var = jnp.mean(jnp.square(z - mu), axis=-1, keepdims=True)
    o_ref[...] = (z - mu) * jax.lax.rsqrt(var + eps) * g_ref[...] + beta_ref[...]


def pallas_ffn_ln(x, w1_t_bf16, b1, w2_t_bf16, b2, g, beta):
    n, e = x.shape
    hid = w1_t_bf16.shape[1]
    tile = _row_tile(n)
    return pl.pallas_call(
        functools.partial(_ffn_ln_kernel, eps=LN_EPS),
        out_shape=jax.ShapeDtypeStruct((n, e), jnp.float32),
        grid=(pl.cdiv(n, tile),),
        in_specs=[
            pl.BlockSpec((tile, e), lambda i: (i, 0)),
            pl.BlockSpec((e, hid), lambda i: (0, 0)),
            pl.BlockSpec((1, hid), lambda i: (0, 0)),
            pl.BlockSpec((hid, e), lambda i: (0, 0)),
            pl.BlockSpec((1, e), lambda i: (0, 0)),
            pl.BlockSpec((1, e), lambda i: (0, 0)),
            pl.BlockSpec((1, e), lambda i: (0, 0)),
        ],
        out_specs=pl.BlockSpec((tile, e), lambda i: (i, 0)),
        compiler_params=pltpu.CompilerParams(dimension_semantics=("parallel",)),
    )(x, w1_t_bf16, b1.reshape(1, hid), w2_t_bf16, b2.reshape(1, e),
      g.reshape(1, e), beta.reshape(1, e))


# --------------------------------------------------------------------------------------
# LSTM recurrence kernel: time-blocked grid, h/c carried in VMEM scratch.
# xw (T, B, 4H) already holds x_t @ W_ih + b_ih + b_hh with gates packed in the lane dim
# (order i|f|g|o).  W_hh is (H, 4H) bf16 so each step is ONE lane-dense (B, 4H) matmul.
# --------------------------------------------------------------------------------------
def _lstm_rec_kernel(xw_ref, whh_ref, o_ref, h_scr, c_scr, *, hdim, tt):
    @pl.when(pl.program_id(0) == 0)
    def _():
        h_scr[...] = jnp.zeros_like(h_scr)
        c_scr[...] = jnp.zeros_like(c_scr)

    whh = whh_ref[...]                                   # (H, 4H) bf16

    def step(tl, carry):
        h = h_scr[...]
        c = c_scr[...]
        pre = xw_ref[tl] + jnp.dot(h.astype(jnp.bfloat16), whh,
                                   preferred_element_type=jnp.float32)   # (B, 4H)
        i_g = jax.nn.sigmoid(pre[:, 0 * hdim:1 * hdim])
        f_g = jax.nn.sigmoid(pre[:, 1 * hdim:2 * hdim])
        g_g = jnp.tanh(pre[:, 2 * hdim:3 * hdim])
        o_g = jax.nn.sigmoid(pre[:, 3 * hdim:4 * hdim])
        c_new = f_g * c + i_g * g_g
        h_new = o_g * jnp.tanh(c_new)
        c_scr[...] = c_new
        h_scr[...] = h_new
        o_ref[tl] = h_new
        return carry

    jax.lax.fori_loop(0, tt, step, 0, unroll=True)


def pallas_lstm_layer(xw_tb4h, w_hh_bf16):
    t_len, bsz, four_h = xw_tb4h.shape
    hdim = four_h // 4
    tt = _time_block(t_len)
    return pl.pallas_call(
        functools.partial(_lstm_rec_kernel, hdim=hdim, tt=tt),
        out_shape=jax.ShapeDtypeStruct((t_len, bsz, hdim), jnp.float32),
        grid=(t_len // tt,),
        in_specs=[
            pl.BlockSpec((tt, bsz, four_h), lambda t: (t, 0, 0)),
            pl.BlockSpec((hdim, four_h), lambda t: (0, 0)),
        ],
        out_specs=pl.BlockSpec((tt, bsz, hdim), lambda t: (t, 0, 0)),
        scratch_shapes=[pltpu.VMEM((bsz, hdim), jnp.float32),
                        pltpu.VMEM((bsz, hdim), jnp.float32)],
        compiler_params=pltpu.CompilerParams(dimension_semantics=("arbitrary",)),
    )(xw_tb4h, w_hh_bf16)


# --------------------------------------------------------------------------------------
# Model glue (plain JAX reshapes/transposes; all heavy compute goes through the kernels)
# --------------------------------------------------------------------------------------
def model_forward(x, params, *, num_heads, sparsity):
    bsz, t_len, _ = x.shape

    # ---- stacked LSTM (inter-layer dropout = identity, eval-mode semantics) ----
    h_tm = jnp.transpose(x, (1, 0, 2))                     # time-major (T, B, F)
    for lp in params["lstm"]:
        feat = h_tm.shape[-1]
        four_h = lp["w_hh_t"].shape[-1]
        # hoisted input projection for all T steps: one lane-dense (T*B, 4H) matmul
        xw = pallas_linear(h_tm.reshape(t_len * bsz, feat),
                           lp["w_ih_t"].astype(jnp.bfloat16), lp["b"])
        # gates stay packed in the lane dim -> free reshape, no interstitial transpose
        h_tm = pallas_lstm_layer(xw.reshape(t_len, bsz, four_h),
                                 lp["w_hh_t"].astype(jnp.bfloat16))
    lstm_out = jnp.transpose(h_tm, (1, 0, 2))              # (B, T, H)
    e = lstm_out.shape[-1]
    zeros_e = jnp.zeros((e,), jnp.float32)
    zeros_3e = jnp.zeros((3 * e,), jnp.float32)

    # ---- sparse multi-head self-attention (top-k kept keys per query, no biases) ----
    num_keep = max(1, min(int(t_len * sparsity), t_len))   # guard int(T*sparsity)==0
    sa = params["sparse_attn"]
    y = pallas_mha(lstm_out, sa["qkv_w_t"].astype(jnp.bfloat16), zeros_3e,
                   sa["o_w_t"].astype(jnp.bfloat16), zeros_e,
                   num_heads=num_heads, num_keep=num_keep)

    # ---- TransformerEncoder: post-norm layers, ReLU FFN, eval-mode dropout ----
    for lp in params["encoder"]:
        # fused: QKV proj + dense MHA + out proj + residual + LayerNorm1
        y = pallas_mha(y, lp["qkv_w_t"].astype(jnp.bfloat16), lp["qkv_b"],
                       lp["o_w_t"].astype(jnp.bfloat16), lp["o_b"],
                       num_heads=num_heads, num_keep=t_len,
                       ln=(lp["ln1_g"], lp["ln1_b"]))
        # fused: linear1 + ReLU + linear2 + residual + LayerNorm2
        yf = pallas_ffn_ln(y.reshape(bsz * t_len, e),
                           lp["w1_t"].astype(jnp.bfloat16), lp["b1"],
                           lp["w2_t"].astype(jnp.bfloat16), lp["b2"],
                           lp["ln2_g"], lp["ln2_b"])
        y = yf.reshape(bsz, t_len, e)

    # ---- final FC on last timestep ----
    return pallas_linear(y[:, -1, :], params["fc"]["w_t"].astype(jnp.bfloat16),
                         params["fc"]["b"])


# --------------------------------------------------------------------------------------
# Deterministic parameter init (shapes follow the PyTorch module's __init__)
# --------------------------------------------------------------------------------------
def _uniform(key, shape, scale=0.1):
    return jax.random.uniform(key, shape, jnp.float32, -scale, scale)


def init_params(key, input_dim, hidden_dim, lstm_layers, t_layers, output_dim):
    keys = iter(jax.random.split(key, 256))
    nxt = lambda: next(keys)
    p = {}

    lstm = []
    for layer in range(lstm_layers):
        in_dim = input_dim if layer == 0 else hidden_dim
        lstm.append(dict(
            w_ih_t=_uniform(nxt(), (in_dim, 4 * hidden_dim)),    # W_ih^T, gates i|f|g|o
            w_hh_t=_uniform(nxt(), (hidden_dim, 4 * hidden_dim)),  # W_hh^T, gates i|f|g|o
            b=_uniform(nxt(), (4 * hidden_dim,)),                # b_ih + b_hh combined
        ))
    p["lstm"] = lstm

    e = hidden_dim
    p["sparse_attn"] = dict(
        qkv_w_t=_uniform(nxt(), (e, 3 * e)),                     # [Wq^T | Wk^T | Wv^T]
        o_w_t=_uniform(nxt(), (e, e)),
    )

    enc = []
    for _ in range(t_layers):
        enc.append(dict(
            qkv_w_t=_uniform(nxt(), (e, 3 * e)), qkv_b=_uniform(nxt(), (3 * e,)),
            o_w_t=_uniform(nxt(), (e, e)), o_b=_uniform(nxt(), (e,)),
            ln1_g=jnp.ones((e,), jnp.float32), ln1_b=jnp.zeros((e,), jnp.float32),
            w1_t=_uniform(nxt(), (e, 2 * e)), b1=_uniform(nxt(), (2 * e,)),
            w2_t=_uniform(nxt(), (2 * e, e)), b2=_uniform(nxt(), (e,)),
            ln2_g=jnp.ones((e,), jnp.float32), ln2_b=jnp.zeros((e,), jnp.float32),
        ))
    p["encoder"] = enc

    p["fc"] = dict(w_t=_uniform(nxt(), (e, output_dim)), b=_uniform(nxt(), (output_dim,)))
    return p


if __name__ == "__main__":
    BATCH = 2
    SEQ = 8
    INPUT_DIM = 16
    HIDDEN_DIM = 32        # divisible by transformer_heads
    LSTM_LAYERS = 2
    HEADS = 4
    T_LAYERS = 2
    OUTPUT_DIM = 1
    SPARSITY = 0.5

    key = jax.random.PRNGKey(0)
    kx, kp = jax.random.split(key)
    x = jax.random.normal(kx, (BATCH, SEQ, INPUT_DIM), jnp.float32)
    params = init_params(kp, INPUT_DIM, HIDDEN_DIM, LSTM_LAYERS, T_LAYERS, OUTPUT_DIM)

    fwd = jax.jit(functools.partial(model_forward, num_heads=HEADS, sparsity=SPARSITY))
    out = jax.block_until_ready(fwd(x, params))
    assert out.shape == (BATCH, OUTPUT_DIM), out.shape
    assert bool(jnp.all(jnp.isfinite(out)))
    print("KERNEL_OK")
</pallas_src>

<mosaic_0001>
module attributes {stable_mosaic.version = 11 : i64} {
  func.func @_linear_kernel(%arg0: i32, %arg1: memref<16x16xf32, #tpu.memory_space<vmem>>, %arg2: memref<16x128xbf16, #tpu.memory_space<vmem>>, %arg3: memref<1x128xf32, #tpu.memory_space<vmem>>, %arg4: memref<16x128xf32, #tpu.memory_space<vmem>>) attributes {dimension_semantics = [#tpu.dimension_semantics<parallel>], iteration_bounds = array<i64: 1>, scalar_prefetch = 0 : i64, scratch_operands = 0 : i64, tpu.core_type = #tpu.core_type<tc>, window_params = [{transform_indices = @transform_0, window_bounds = array<i64: 16, 16>}, {pipeline_mode = #tpu.pipeline_mode<synchronous>, transform_indices = @transform_1, window_bounds = array<i64: 16, 128>}, {pipeline_mode = #tpu.pipeline_mode<synchronous>, transform_indices = @transform_2, window_bounds = array<i64: 1, 128>}, {transform_indices = @transform_3, window_bounds = array<i64: 16, 128>}]} {
    %c0 = arith.constant 0 : index
    %c0_0 = arith.constant 0 : index
    %0 = vector.load %arg1[%c0, %c0_0] : memref<16x16xf32, #tpu.memory_space<vmem>>, vector<16x16xf32>
    %1 = arith.truncf %0 : vector<16x16xf32> to vector<16x16xbf16>
    %c0_1 = arith.constant 0 : index
    %c0_2 = arith.constant 0 : index
    %2 = vector.load %arg2[%c0_1, %c0_2] : memref<16x128xbf16, #tpu.memory_space<vmem>>, vector<16x128xbf16>
    %cst = arith.constant dense<0.000000e+00> : vector<16x128xf32>
    %3 = tpu.matmul %1, %2, %cst {dimension_numbers = #tpu.dot_dimension_numbers<[1], [0], [0], [1], [0, 0, 1, 1], [], []>} : vector<16x16xbf16>, vector<16x128xbf16>, vector<16x128xf32> -> vector<16x128xf32>
    %c0_3 = arith.constant 0 : index
    %c0_4 = arith.constant 0 : index
    %4 = vector.load %arg3[%c0_3, %c0_4] : memref<1x128xf32, #tpu.memory_space<vmem>>, vector<1x128xf32>
    %5 = vector.broadcast %4 : vector<1x128xf32> to vector<16x128xf32>
    %6 = arith.addf %3, %5 : vector<16x128xf32>
    %c0_5 = arith.constant 0 : index
    %c0_6 = arith.constant 0 : index
    %7 = vector.load %arg4[%c0_5, %c0_6] : memref<16x128xf32, #tpu.memory_space<vmem>>, vector<16x128xf32>
    tpu.vector_store %arg4[%c0_5, %c0_6], %6 {strides = array<i32>} : memref<16x128xf32, #tpu.memory_space<vmem>>, vector<16x128xf32>,
    return
  }
  func.func @transform_0(%arg0: i32) -> (i32, i32) {
    %c0_i32 = arith.constant 0 : i32
    %c0_i32_0 = arith.constant 0 : i32
    return %arg0, %c0_i32 : i32, i32
  }
  func.func @transform_1(%arg0: i32) -> (i32, i32) {
    %c0_i32 = arith.constant 0 : i32
    %c0_i32_0 = arith.constant 0 : i32
    %c0_i32_1 = arith.constant 0 : i32
    return %c0_i32, %c0_i32_0 : i32, i32
  }
  func.func @transform_2(%arg0: i32) -> (i32, i32) {
    %c0_i32 = arith.constant 0 : i32
    %c0_i32_0 = arith.constant 0 : i32
    %c0_i32_1 = arith.constant 0 : i32
    return %c0_i32, %c0_i32_0 : i32, i32
  }
  func.func @transform_3(%arg0: i32) -> (i32, i32) {
    %c0_i32 = arith.constant 0 : i32
    %c0_i32_0 = arith.constant 0 : i32
    return %arg0, %c0_i32 : i32, i32
  }
}

module attributes {stable_mosaic.version = 11 : i64} {
  func.func @_lstm_rec_kernel(%arg0: i32, %arg1: memref<8x2x128xf32, #tpu.memory_space<vmem>>, %arg2: memref<32x128xbf16, #tpu.memory_space<vmem>>, %arg3: memref<8x2x32xf32, #tpu.memory_space<vmem>>, %arg4: memref<2x32xf32, #tpu.memory_space<vmem>>, %arg5: memref<2x32xf32, #tpu.memory_space<vmem>>) attributes {dimension_semantics = [#tpu.dimension_semantics<arbitrary>], iteration_bounds = array<i64: 1>, scalar_prefetch = 0 : i64, scratch_operands = 2 : i64, tpu.core_type = #tpu.core_type<tc>, window_params = [{transform_indices = @transform_0, window_bounds = array<i64: 8, 2, 128>}, {pipeline_mode = #tpu.pipeline_mode<synchronous>, transform_indices = @transform_1, window_bounds = array<i64: 32, 128>}, {transform_indices = @transform_2, window_bounds = array<i64: 8, 2, 32>}]} {
    %c0_i32 = arith.constant 0 : i32
    %0 = arith.cmpi eq, %arg0, %c0_i32 : i32
    %1 = arith.extui %0 : i1 to i32
    %c0_i32_0 = arith.constant 0 : i32
    %2 = arith.cmpi ne, %1, %c0_i32_0 : i32
    scf.if %2 {
      %cst_130 = arith.constant 0.000000e+00 : f32
      %316 = vector.broadcast %cst_130 : f32 to vector<2x32xf32>
      %c0_131 = arith.constant 0 : index
      %c0_132 = arith.constant 0 : index
      %317 = vector.load %arg4[%c0_131, %c0_132] : memref<2x32xf32, #tpu.memory_space<vmem>>, vector<2x32xf32>
      tpu.vector_store %arg4[%c0_131, %c0_132], %316 {strides = array<i32>} : memref<2x32xf32, #tpu.memory_space<vmem>>, vector<2x32xf32>,
      %cst_133 = arith.constant 0.000000e+00 : f32
      %318 = vector.broadcast %cst_133 : f32 to vector<2x32xf32>
      %c0_134 = arith.constant 0 : index
      %c0_135 = arith.constant 0 : index
      %319 = vector.load %arg5[%c0_134, %c0_135] : memref<2x32xf32, #tpu.memory_space<vmem>>, vector<2x32xf32>
      tpu.vector_store %arg5[%c0_134, %c0_135], %318 {strides = array<i32>} : memref<2x32xf32, #tpu.memory_space<vmem>>, vector<2x32xf32>,
    } else {
    }
    %c0 = arith.constant 0 : index
    %c0_1 = arith.constant 0 : index
    %3 = vector.load %arg2[%c0, %c0_1] : memref<32x128xbf16, #tpu.memory_space<vmem>>, vector<32x128xbf16>
    %c0_i32_2 = arith.constant 0 : i32
    %c0_3 = arith.constant 0 : index
    %c0_4 = arith.constant 0 : index
    %4 = vector.load %arg4[%c0_3, %c0_4] : memref<2x32xf32, #tpu.memory_space<vmem>>, vector<2x32xf32>
    %c0_5 = arith.constant 0 : index
    %c0_6 = arith.constant 0 : index
    %5 = vector.load %arg5[%c0_5, %c0_6] : memref<2x32xf32, #tpu.memory_space<vmem>>, vector<2x32xf32>
    %6 = arith.index_cast %c0_i32_2 : i32 to index
    %c0_7 = arith.constant 0 : index
    %c0_8 = arith.constant 0 : index
    %7 = vector.load %arg1[%6, %c0_7, %c0_8] : memref<8x2x128xf32, #tpu.memory_space<vmem>>, vector<1x2x128xf32>
    %8 = vector.shape_cast %7 : vector<1x2x128xf32> to vector<2x128xf32>
    %9 = arith.truncf %4 : vector<2x32xf32> to vector<2x32xbf16>
    %cst = arith.constant dense<0.000000e+00> : vector<2x128xf32>
    %10 = tpu.matmul %9, %3, %cst {dimension_numbers = #tpu.dot_dimension_numbers<[1], [0], [0], [1], [0, 0, 1, 1], [], []>} : vector<2x32xbf16>, vector<32x128xbf16>, vector<2x128xf32> -> vector<2x128xf32>
    %11 = arith.addf %8, %10 : vector<2x128xf32>
    %12 = vector.extract_strided_slice %11 {offsets = [0, 0], sizes = [2, 32], strides = [1, 1]} : vector<2x128xf32> to vector<2x32xf32>
    %13 = arith.negf %12 : vector<2x32xf32>
    %14 = math.exp %13 : vector<2x32xf32>
    %cst_9 = arith.constant 1.000000e+00 : f32
    %15 = vector.broadcast %cst_9 : f32 to vector<2x32xf32>
    %16 = arith.addf %15, %14 : vector<2x32xf32>
    %17 = arith.divf %15, %16 : vector<2x32xf32>
    %18 = vector.extract_strided_slice %11 {offsets = [0, 32], sizes = [2, 32], strides = [1, 1]} : vector<2x128xf32> to vector<2x32xf32>
    %19 = arith.negf %18 : vector<2x32xf32>
    %20 = math.exp %19 : vector<2x32xf32>
    %cst_10 = arith.constant 1.000000e+00 : f32
    %21 = vector.broadcast %cst_10 : f32 to vector<2x32xf32>
    %22 = arith.addf %21, %20 : vector<2x32xf32>
    %23 = arith.divf %21, %22 : vector<2x32xf32>
    %24 = vector.extract_strided_slice %11 {offsets = [0, 64], sizes = [2, 32], strides = [1, 1]} : vector<2x128xf32> to vector<2x32xf32>
    %25 = math.tanh %24 : vector<2x32xf32>
    %26 = vector.extract_strided_slice %11 {offsets = [0, 96], sizes = [2, 32], strides = [1, 1]} : vector<2x128xf32> to vector<2x32xf32>
    %27 = arith.negf %26 : vector<2x32xf32>
    %28 = math.exp %27 : vector<2x32xf32>
    %cst_11 = arith.constant 1.000000e+00 : f32
    %29 = vector.broadcast %cst_11 : f32 to vector<2x32xf32>
    %30 = arith.addf %29, %28 : vector<2x32xf32>
    %31 = arith.divf %29, %30 : vector<2x32xf32>
    %32 = arith.mulf %23, %5 : vector<2x32xf32>
    %33 = arith.mulf %17, %25 : vector<2x32xf32>
    %34 = arith.addf %32, %33 : vector<2x32xf32>
    %35 = math.tanh %34 : vector<2x32xf32>
    %36 = arith.mulf %31, %35 : vector<2x32xf32>
    %c0_12 = arith.constant 0 : index
    %c0_13 = arith.constant 0 : index
    %37 = vector.load %arg5[%c0_12, %c0_13] : memref<2x32xf32, #tpu.memory_space<vmem>>, vector<2x32xf32>
    tpu.vector_store %arg5[%c0_12, %c0_13], %34 {strides = array<i32>} : memref<2x32xf32, #tpu.memory_space<vmem>>, vector<2x32xf32>,
    %c0_14 = arith.constant 0 : index
    %c0_15 = arith.constant 0 : index
    %38 = vector.load %arg4[%c0_14, %c0_15] : memref<2x32xf32, #tpu.memory_space<vmem>>, vector<2x32xf32>
    tpu.vector_store %arg4[%c0_14, %c0_15], %36 {strides = array<i32>} : memref<2x32xf32, #tpu.memory_space<vmem>>, vector<2x32xf32>,
    %39 = arith.index_cast %c0_i32_2 : i32 to index
    %c0_16 = arith.constant 0 : index
    %c0_17 = arith.constant 0 : index
    %40 = vector.load %arg3[%39, %c0_16, %c0_17] : memref<8x2x32xf32, #tpu.memory_space<vmem>>, vector<1x2x32xf32>
    %41 = vector.shape_cast %40 : vector<1x2x32xf32> to vector<2x32xf32>
    %42 = vector.shape_cast %36 : vector<2x32xf32> to vector<1x2x32xf32>
    tpu.vector_store %arg3[%39, %c0_16, %c0_17], %42 {strides = array<i32>} : memref<8x2x32xf32, #tpu.memory_space<vmem>>, vector<1x2x32xf32>,
    %c1_i32 = arith.constant 1 : i32
    %c0_18 = arith.constant 0 : index
    %c0_19 = arith.constant 0 : index
    %43 = vector.load %arg4[%c0_18, %c0_19] : memref<2x32xf32, #tpu.memory_space<vmem>>, vector<2x32xf32>
    %c0_20 = arith.constant 0 : index
    %c0_21 = arith.constant 0 : index
    %44 = vector.load %arg5[%c0_20, %c0_21] : memref<2x32xf32, #tpu.memory_space<vmem>>, vector<2x32xf32>
    %45 = arith.index_cast %c1_i32 : i32 to index
    %c0_22 = arith.constant 0 : index
    %c0_23 = arith.constant 0 : index
    %46 = vector.load %arg1[%45, %c0_22, %c0_23] : memref<8x2x128xf32, #tpu.memory_space<vmem>>, vector<1x2x128xf32>
    %47 = vector.shape_cast %46 : vector<1x2x128xf32> to vector<2x128xf32>
    %48 = arith.truncf %43 : vector<2x32xf32> to vector<2x32xbf16>
    %cst_24 = arith.constant dense<0.000000e+00> : vector<2x128xf32>
    %49 = tpu.matmul %48, %3, %cst_24 {dimension_numbers = #tpu.dot_dimension_numbers<[1], [0], [0], [1], [0, 0, 1, 1], [], []>} : vector<2x32xbf16>, vector<32x128xbf16>, vector<2x128xf32> -> vector<2x128xf32>
    %50 = arith.addf %47, %49 : vector<2x128xf32>
    %51 = vector.extract_strided_slice %50 {offsets = [0, 0], sizes = [2, 32], strides = [1, 1]} : vector<2x128xf32> to vector<2x32xf32>
    %52 = arith.negf %51 : vector<2x32xf32>
    %53 = math.exp %52 : vector<2x32xf32>
    %cst_25 = arith.constant 1.000000e+00 : f32
    %54 = vector.broadcast %cst_25 : f32 to vector<2x32xf32>
    %55 = arith.addf %54, %53 : vector<2x32xf32>
    %56 = arith.divf %54, %55 : vector<2x32xf32>
    %57 = vector.extract_strided_slice %50 {offsets = [0, 32], sizes = [2, 32], strides = [1, 1]} : vector<2x128xf32> to vector<2x32xf32>
    %58 = arith.negf %57 : vector<2x32xf32>
    %59 = math.exp %58 : vector<2x32xf32>
    %cst_26 = arith.constant 1.000000e+00 : f32
    %60 = vector.broadcast %cst_26 : f32 to vector<2x32xf32>
    %61 = arith.addf %60, %59 : vector<2x32xf32>
    %62 = arith.divf %60, %61 : vector<2x32xf32>
    %63 = vector.extract_strided_slice %50 {offsets = [0, 64], sizes = [2, 32], strides = [1, 1]} : vector<2x128xf32> to vector<2x32xf32>
    %64 = math.tanh %63 : vector<2x32xf32>
    %65 = vector.extract_strided_slice %50 {offsets = [0, 96], sizes = [2, 32], strides = [1, 1]} : vector<2x128xf32> to vector<2x32xf32>
    %66 = arith.negf %65 : vector<2x32xf32>
    %67 = math.exp %66 : vector<2x32xf32>
    %cst_27 = arith.constant 1.000000e+00 : f32
    %68 = vector.broadcast %cst_27 : f32 to vector<2x32xf32>
    %69 = arith.addf %68, %67 : vector<2x32xf32>
    %70 = arith.divf %68, %69 : vector<2x32xf32>
    %71 = arith.mulf %62, %44 : vector<2x32xf32>
    %72 = arith.mulf %56, %64 : vector<2x32xf32>
    %73 = arith.addf %71, %72 : vector<2x32xf32>
    %74 = math.tanh %73 : vector<2x32xf32>
    %75 = arith.mulf %70, %74 : vector<2x32xf32>
    %c0_28 = arith.constant 0 : index
    %c0_29 = arith.constant 0 : index
    %76 = vector.load %arg5[%c0_28, %c0_29] : memref<2x32xf32, #tpu.memory_space<vmem>>, vector<2x32xf32>
    tpu.vector_store %arg5[%c0_28, %c0_29], %73 {strides = array<i32>} : memref<2x32xf32, #tpu.memory_space<vmem>>, vector<2x32xf32>,
    %c0_30 = arith.constant 0 : index
    %c0_31 = arith.constant 0 : index
    %77 = vector.load %arg4[%c0_30, %c0_31] : memref<2x32xf32, #tpu.memory_space<vmem>>, vector<2x32xf32>
    tpu.vector_store %arg4[%c0_30, %c0_31], %75 {strides = array<i32>} : memref<2x32xf32, #tpu.memory_space<vmem>>, vector<2x32xf32>,
    %78 = arith.index_cast %c1_i32 : i32 to index
    %c0_32 = arith.constant 0 : index
    %c0_33 = arith.constant 0 : index
    %79 = vector.load %arg3[%78, %c0_32, %c0_33] : memref<8x2x32xf32, #tpu.memory_space<vmem>>, vector<1x2x32xf32>
    %80 = vector.shape_cast %79 : vector<1x2x32xf32> to vector<2x32xf32>
    %81 = vector.shape_cast %75 : vector<2x32xf32> to vector<1x2x32xf32>
    tpu.vector_store %arg3[%78, %c0_32, %c0_33], %81 {strides = array<i32>} : memref<8x2x32xf32, #tpu.memory_space<vmem>>, vector<1x2x32xf32>,
    %c2_i32 = arith.constant 2 : i32
    %c0_34 = arith.constant 0 : index
    %c0_35 = arith.constant 0 : index
    %82 = vector.load %arg4[%c0_34, %c0_35] : memref<2x32xf32, #tpu.memory_space<vmem>>, vector<2x32xf32>
    %c0_36 = arith.constant 0 : index
    %c0_37 = arith.constant 0 : index
    %83 = vector.load %arg5[%c0_36, %c0_37] : memref<2x32xf32, #tpu.memory_space<vmem>>, vector<2x32xf32>
    %84 = arith.index_cast %c2_i32 : i32 to index
    %c0_38 = arith.constant 0 : index
    %c0_39 = arith.constant 0 : index
    %85 = vector.load %arg1[%84, %c0_38, %c0_39] : memref<8x2x128xf32, #tpu.memory_space<vmem>>, vector<1x2x128xf32>
    %86 = vector.shape_cast %85 : vector<1x2x128xf32> to vector<2x128xf32>
    %87 = arith.truncf %82 : vector<2x32xf32> to vector<2x32xbf16>
    %cst_40 = arith.constant dense<0.000000e+00> : vector<2x128xf32>
    %88 = tpu.matmul %87, %3, %cst_40 {dimension_numbers = #tpu.dot_dimension_numbers<[1], [0], [0], [1], [0, 0, 1, 1], [], []>} : vector<2x32xbf16>, vector<32x128xbf16>, vector<2x128xf32> -> vector<2x128xf32>
    %89 = arith.addf %86, %88 : vector<2x128xf32>
    %90 = vector.extract_strided_slice %89 {offsets = [0, 0], sizes = [2, 32], strides = [1, 1]} : vector<2x128xf32> to vector<2x32xf32>
    %91 = arith.negf %90 : vector<2x32xf32>
    %92 = math.exp %91 : vector<2x32xf32>
    %cst_41 = arith.constant 1.000000e+00 : f32
    %93 = vector.broadcast %cst_41 : f32 to vector<2x32xf32>
    %94 = arith.addf %93, %92 : vector<2x32xf32>
    %95 = arith.divf %93, %94 : vector<2x32xf32>
    %96 = vector.extract_strided_slice %89 {offsets = [0, 32], sizes = [2, 32], strides = [1, 1]} : vector<2x128xf32> to vector<2x32xf32>
    %97 = arith.negf %96 : vector<2x32xf32>
    %98 = math.exp %97 : vector<2x32xf32>
    %cst_42 = arith.constant 1.000000e+00 : f32
    %99 = vector.broadcast %cst_42 : f32 to vector<2x32xf32>
    %100 = arith.addf %99, %98 : vector<2x32xf32>
    %101 = arith.divf %99, %100 : vector<2x32xf32>
    %102 = vector.extract_strided_slice %89 {offsets = [0, 64], sizes = [2, 32], strides = [1, 1]} : vector<2x128xf32> to vector<2x32xf32>
    %103 = math.tanh %102 : vector<2x32xf32>
    %104 = vector.extract_strided_slice %89 {offsets = [0, 96], sizes = [2, 32], strides = [1, 1]} : vector<2x128xf32> to vector<2x32xf32>
    %105 = arith.negf %104 : vector<2x32xf32>
    %106 = math.exp %105 : vector<2x32xf32>
    %cst_43 = arith.constant 1.000000e+00 : f32
    %107 = vector.broadcast %cst_43 : f32 to vector<2x32xf32>
    %108 = arith.addf %107, %106 : vector<2x32xf32>
    %109 = arith.divf %107, %108 : vector<2x32xf32>
    %110 = arith.mulf %101, %83 : vector<2x32xf32>
    %111 = arith.mulf %95, %103 : vector<2x32xf32>
    %112 = arith.addf %110, %111 : vector<2x32xf32>
    %113 = math.tanh %112 : vector<2x32xf32>
    %114 = arith.mulf %109, %113 : vector<2x32xf32>
    %c0_44 = arith.constant 0 : index
    %c0_45 = arith.constant 0 : index
    %115 = vector.load %arg5[%c0_44, %c0_45] : memref<2x32xf32, #tpu.memory_space<vmem>>, vector<2x32xf32>
    tpu.vector_store %arg5[%c0_44, %c0_45], %112 {strides = array<i32>} : memref<2x32xf32, #tpu.memory_space<vmem>>, vector<2x32xf32>,
    %c0_46 = arith.constant 0 : index
    %c0_47 = arith.constant 0 : index
    %116 = vector.load %arg4[%c0_46, %c0_47] : memref<2x32xf32, #tpu.memory_space<vmem>>, vector<2x32xf32>
    tpu.vector_store %arg4[%c0_46, %c0_47], %114 {strides = array<i32>} : memref<2x32xf32, #tpu.memory_space<vmem>>, vector<2x32xf32>,
    %117 = arith.index_cast %c2_i32 : i32 to index
    %c0_48 = arith.constant 0 : index
    %c0_49 = arith.constant 0 : index
    %118 = vector.load %arg3[%117, %c0_48, %c0_49] : memref<8x2x32xf32, #tpu.memory_space<vmem>>, vector<1x2x32xf32>
    %119 = vector.shape_cast %118 : vector<1x2x32xf32> to vector<2x32xf32>
    %120 = vector.shape_cast %114 : vector<2x32xf32> to vector<1x2x32xf32>
    tpu.vector_store %arg3[%117, %c0_48, %c0_49], %120 {strides = array<i32>} : memref<8x2x32xf32, #tpu.memory_space<vmem>>, vector<1x2x32xf32>,
    %c3_i32 = arith.constant 3 : i32
    %c0_50 = arith.constant 0 : index
    %c0_51 = arith.constant 0 : index
    %121 = vector.load %arg4[%c0_50, %c0_51] : memref<2x32xf32, #tpu.memory_space<vmem>>, vector<2x32xf32>
    %c0_52 = arith.constant 0 : index
    %c0_53 = arith.constant 0 : index
    %122 = vector.load %arg5[%c0_52, %c0_53] : memref<2x32xf32, #tpu.memory_space<vmem>>, vector<2x32xf32>
    %123 = arith.index_cast %c3_i32 : i32 to index
    %c0_54 = arith.constant 0 : index
    %c0_55 = arith.constant 0 : index
    %124 = vector.load %arg1[%123, %c0_54, %c0_55] : memref<8x2x128xf32, #tpu.memory_space<vmem>>, vector<1x2x128xf32>
    %125 = vector.shape_cast %124 : vector<1x2x128xf32> to vector<2x128xf32>
    %126 = arith.truncf %121 : vector<2x32xf32> to vector<2x32xbf16>
    %cst_56 = arith.constant dense<0.000000e+00> : vector<2x128xf32>
    %127 = tpu.matmul %126, %3, %cst_56 {dimension_numbers = #tpu.dot_dimension_numbers<[1], [0], [0], [1], [0, 0, 1, 1], [], []>} : vector<2x32xbf16>, vector<32x128xbf16>, vector<2x128xf32> -> vector<2x128xf32>
    %128 = arith.addf %125, %127 : vector<2x128xf32>
    %129 = vector.extract_strided_slice %128 {offsets = [0, 0], sizes = [2, 32], strides = [1, 1]} : vector<2x128xf32> to vector<2x32xf32>
    %130 = arith.negf %129 : vector<2x32xf32>
    %131 = math.exp %130 : vector<2x32xf32>
    %cst_57 = arith.constant 1.000000e+00 : f32
    %132 = vector.broadcast %cst_57 : f32 to vector<2x32xf32>
    %133 = arith.addf %132, %131 : vector<2x32xf32>
    %134 = arith.divf %132, %133 : vector<2x32xf32>
    %135 = vector.extract_strided_slice %128 {offsets = [0, 32], sizes = [2, 32], strides = [1, 1]} : vector<2x128xf32> to vector<2x32xf32>
    %136 = arith.negf %135 : vector<2x32xf32>
    %137 = math.exp %136 : vector<2x32xf32>
    %cst_58 = arith.constant 1.000000e+00 : f32
    %138 = vector.broadcast %cst_58 : f32 to vector<2x32xf32>
    %139 = arith.addf %138, %137 : vector<2x32xf32>
    %140 = arith.divf %138, %139 : vector<2x32xf32>
    %141 = vector.extract_strided_slice %128 {offsets = [0, 64], sizes = [2, 32], strides = [1, 1]} : vector<2x128xf32> to vector<2x32xf32>
    %142 = math.tanh %141 : vector<2x32xf32>
    %143 = vector.extract_strided_slice %128 {offsets = [0, 96], sizes = [2, 32], strides = [1, 1]} : vector<2x128xf32> to vector<2x32xf32>
    %144 = arith.negf %143 : vector<2x32xf32>
    %145 = math.exp %144 : vector<2x32xf32>
    %cst_59 = arith.constant 1.000000e+00 : f32
    %146 = vector.broadcast %cst_59 : f32 to vector<2x32xf32>
    %147 = arith.addf %146, %145 : vector<2x32xf32>
    %148 = arith.divf %146, %147 : vector<2x32xf32>
    %149 = arith.mulf %140, %122 : vector<2x32xf32>
    %150 = arith.mulf %134, %142 : vector<2x32xf32>
    %151 = arith.addf %149, %150 : vector<2x32xf32>
    %152 = math.tanh %151 : vector<2x32xf32>
    %153 = arith.mulf %148, %152 : vector<2x32xf32>
    %c0_60 = arith.constant 0 : index
    %c0_61 = arith.constant 0 : index
    %154 = vector.load %arg5[%c0_60, %c0_61] : memref<2x32xf32, #tpu.memory_space<vmem>>, vector<2x32xf32>
    tpu.vector_store %arg5[%c0_60, %c0_61], %151 {strides = array<i32>} : memref<2x32xf32, #tpu.memory_space<vmem>>, vector<2x32xf32>,
    %c0_62 = arith.constant 0 : index
    %c0_63 = arith.constant 0 : index
    %155 = vector.load %arg4[%c0_62, %c0_63] : memref<2x32xf32, #tpu.memory_space<vmem>>, vector<2x32xf32>
    tpu.vector_store %arg4[%c0_62, %c0_63], %153 {strides = array<i32>} : memref<2x32xf32, #tpu.memory_space<vmem>>, vector<2x32xf32>,
    %156 = arith.index_cast %c3_i32 : i32 to index
    %c0_64 = arith.constant 0 : index
    %c0_65 = arith.constant 0 : index
    %157 = vector.load %arg3[%156, %c0_64, %c0_65] : memref<8x2x32xf32, #tpu.memory_space<vmem>>, vector<1x2x32xf32>
    %158 = vector.shape_cast %157 : vector<1x2x32xf32> to vector<2x32xf32>
    %159 = vector.shape_cast %153 : vector<2x32xf32> to vector<1x2x32xf32>
    tpu.vector_store %arg3[%156, %c0_64, %c0_65], %159 {strides = array<i32>} : memref<8x2x32xf32, #tpu.memory_space<vmem>>, vector<1x2x32xf32>,
    %c4_i32 = arith.constant 4 : i32
    %c0_66 = arith.constant 0 : index
    %c0_67 = arith.constant 0 : index
    %160 = vector.load %arg4[%c0_66, %c0_67] : memref<2x32xf32, #tpu.memory_space<vmem>>, vector<2x32xf32>
    %c0_68 = arith.constant 0 : index
    %c0_69 = arith.constant 0 : index
    %161 = vector.load %arg5[%c0_68, %c0_69] : memref<2x32xf32, #tpu.memory_space<vmem>>, vector<2x32xf32>
    %162 = arith.index_cast %c4_i32 : i32 to index
    %c0_70 = arith.constant 0 : index
    %c0_71 = arith.constant 0 : index
    %163 = vector.load %arg1[%162, %c0_70, %c0_71] : memref<8x2x128xf32, #tpu.memory_space<vmem>>, vector<1x2x128xf32>
    %164 = vector.shape_cast %163 : vector<1x2x128xf32> to vector<2x128xf32>
    %165 = arith.truncf %160 : vector<2x32xf32> to vector<2x32xbf16>
    %cst_72 = arith.constant dense<0.000000e+00> : vector<2x128xf32>
    %166 = tpu.matmul %165, %3, %cst_72 {dimension_numbers = #tpu.dot_dimension_numbers<[1], [0], [0], [1], [0, 0, 1, 1], [], []>} : vector<2x32xbf16>, vector<32x128xbf16>, vector<2x128xf32> -> vector<2x128xf32>
    %167 = arith.addf %164, %166 : vector<2x128xf32>
    %168 = vector.extract_strided_slice %167 {offsets = [0, 0], sizes = [2, 32], strides = [1, 1]} : vector<2x128xf32> to vector<2x32xf32>
    %169 = arith.negf %168 : vector<2x32xf32>
    %170 = math.exp %169 : vector<2x32xf32>
    %cst_73 = arith.constant 1.000000e+00 : f32
    %171 = vector.broadcast %cst_73 : f32 to vector<2x32xf32>
    %172 = arith.addf %171, %170 : vector<2x32xf32>
    %173 = arith.divf %171, %172 : vector<2x32xf32>
    %174 = vector.extract_strided_slice %167 {offsets = [0, 32], sizes = [2, 32], strides = [1, 1]} : vector<2x128xf32> to vector<2x32xf32>
    %175 = arith.negf %174 : vector<2x32xf32>
    %176 = math.exp %175 : vector<2x32xf32>
    %cst_74 = arith.constant 1.000000e+00 : f32
    %177 = vector.broadcast %cst_74 : f32 to vector<2x32xf32>
    %178 = arith.addf %177, %176 : vector<2x32xf32>
    %179 = arith.divf %177, %178 : vector<2x32xf32>
    %180 = vector.extract_strided_slice %167 {offsets = [0, 64], sizes = [2, 32], strides = [1, 1]} : vector<2x128xf32> to vector<2x32xf32>
    %181 = math.tanh %180 : vector<2x32xf32>
    %182 = vector.extract_strided_slice %167 {offsets = [0, 96], sizes = [2, 32], strides = [1, 1]} : vector<2x128xf32> to vector<2x32xf32>
    %183 = arith.negf %182 : vector<2x32xf32>
    %184 = math.exp %183 : vector<2x32xf32>
    %cst_75 = arith.constant 1.000000e+00 : f32
    %185 = vector.broadcast %cst_75 : f32 to vector<2x32xf32>
    %186 = arith.addf %185, %184 : vector<2x32xf32>
    %187 = arith.divf %185, %186 : vector<2x32xf32>
    %188 = arith.mulf %179, %161 : vector<2x32xf32>
    %189 = arith.mulf %173, %181 : vector<2x32xf32>
    %190 = arith.addf %188, %189 : vector<2x32xf32>
    %191 = math.tanh %190 : vector<2x32xf32>
    %192 = arith.mulf %187, %191 : vector<2x32xf32>
    %c0_76 = arith.constant 0 : index
    %c0_77 = arith.constant 0 : index
    %193 = vector.load %arg5[%c0_76, %c0_77] : memref<2x32xf32, #tpu.memory_space<vmem>>, vector<2x32xf32>
    tpu.vector_store %arg5[%c0_76, %c0_77], %190 {strides = array<i32>} : memref<2x32xf32, #tpu.memory_space<vmem>>, vector<2x32xf32>,
    %c0_78 = arith.constant 0 : index
    %c0_79 = arith.constant 0 : index
    %194 = vector.load %arg4[%c0_78, %c0_79] : memref<2x32xf32, #tpu.memory_space<vmem>>, vector<2x32xf32>
    tpu.vector_store %arg4[%c0_78, %c0_79], %192 {strides = array<i32>} : memref<2x32xf32, #tpu.memory_space<vmem>>, vector<2x32xf32>,
    %195 = arith.index_cast %c4_i32 : i32 to index
    %c0_80 = arith.constant 0 : index
    %c0_81 = arith.constant 0 : index
    %196 = vector.load %arg3[%195, %c0_80, %c0_81] : memref<8x2x32xf32, #tpu.memory_space<vmem>>, vector<1x2x32xf32>
    %197 = vector.shape_cast %196 : vector<1x2x32xf32> to vector<2x32xf32>
    %198 = vector.shape_cast %192 : vector<2x32xf32> to vector<1x2x32xf32>
    tpu.vector_store %arg3[%195, %c0_80, %c0_81], %198 {strides = array<i32>} : memref<8x2x32xf32, #tpu.memory_space<vmem>>, vector<1x2x32xf32>,
    %c5_i32 = arith.constant 5 : i32
    %c0_82 = arith.constant 0 : index
    %c0_83 = arith.constant 0 : index
    %199 = vector.load %arg4[%c0_82, %c0_83] : memref<2x32xf32, #tpu.memory_space<vmem>>, vector<2x32xf32>
    %c0_84 = arith.constant 0 : index
    %c0_85 = arith.constant 0 : index
    %200 = vector.load %arg5[%c0_84, %c0_85] : memref<2x32xf32, #tpu.memory_space<vmem>>, vector<2x32xf32>
    %201 = arith.index_cast %c5_i32 : i32 to index
    %c0_86 = arith.constant 0 : index
    %c0_87 = arith.constant 0 : index
    %202 = vector.load %arg1[%201, %c0_86, %c0_87] : memref<8x2x128xf32, #tpu.memory_space<vmem>>, vector<1x2x128xf32>
    %203 = vector.shape_cast %202 : vector<1x2x128xf32> to vector<2x128xf32>
    %204 = arith.truncf %199 : vector<2x32xf32> to vector<2x32xbf16>
    %cst_88 = arith.constant dense<0.000000e+00> : vector<2x128xf32>
    %205 = tpu.matmul %204, %3, %cst_88 {dimension_numbers = #tpu.dot_dimension_numbers<[1], [0], [0], [1], [0, 0, 1, 1], [], []>} : vector<2x32xbf16>, vector<32x128xbf16>, vector<2x128xf32> -> vector<2x128xf32>
    %206 = arith.addf %203, %205 : vector<2x128xf32>
    %207 = vector.extract_strided_slice %206 {offsets = [0, 0], sizes = [2, 32], strides = [1, 1]} : vector<2x128xf32> to vector<2x32xf32>
    %208 = arith.negf %207 : vector<2x32xf32>
    %209 = math.exp %208 : vector<2x32xf32>
    %cst_89 = arith.constant 1.000000e+00 : f32
    %210 = vector.broadcast %cst_89 : f32 to vector<2x32xf32>
    %211 = arith.addf %210, %209 : vector<2x32xf32>
    %212 = arith.divf %210, %211 : vector<2x32xf32>
    %213 = vector.extract_strided_slice %206 {offsets = [0, 32], sizes = [2, 32], strides = [1, 1]} : vector<2x128xf32> to vector<2x32xf32>
    %214 = arith.negf %213 : vector<2x32xf32>
    %215 = math.exp %214 : vector<2x32xf32>
    %cst_90 = arith.constant 1.000000e+00 : f32
    %216 = vector.broadcast %cst_90 : f32 to vector<2x32xf32>
    %217 = arith.addf %216, %215 : vector<2x32xf32>
    %218 = arith.divf %216, %217 : vector<2x32xf32>
    %219 = vector.extract_strided_slice %206 {offsets = [0, 64], sizes = [2, 32], strides = [1, 1]} : vector<2x128xf32> to vector<2x32xf32>
    %220 = math.tanh %219 : vector<2x32xf32>
    %221 = vector.extract_strided_slice %206 {offsets = [0, 96], sizes = [2, 32], strides = [1, 1]} : vector<2x128xf32> to vector<2x32xf32>
    %222 = arith.negf %221 : vector<2x32xf32>
    %223 = math.exp %222 : vector<2x32xf32>
    %cst_91 = arith.constant 1.000000e+00 : f32
    %224 = vector.broadcast %cst_91 : f32 to vector<2x32xf32>
    %225 = arith.addf %224, %223 : vector<2x32xf32>
    %226 = arith.divf %224, %225 : vector<2x32xf32>
    %227 = arith.mulf %218, %200 : vector<2x32xf32>
    %228 = arith.mulf %212, %220 : vector<2x32xf32>
    %229 = arith.addf %227, %228 : vector<2x32xf32>
    %230 = math.tanh %229 : vector<2x32xf32>
    %231 = arith.mulf %226, %230 : vector<2x32xf32>
    %c0_92 = arith.constant 0 : index
    %c0_93 = arith.constant 0 : index
    %232 = vector.load %arg5[%c0_92, %c0_93] : memref<2x32xf32, #tpu.memory_space<vmem>>, vector<2x32xf32>
    tpu.vector_store %arg5[%c0_92, %c0_93], %229 {strides = array<i32>} : memref<2x32xf32, #tpu.memory_space<vmem>>, vector<2x32xf32>,
    %c0_94 = arith.constant 0 : index
    %c0_95 = arith.constant 0 : index
    %233 = vector.load %arg4[%c0_94, %c0_95] : memref<2x32xf32, #tpu.memory_space<vmem>>, vector<2x32xf32>
    tpu.vector_store %arg4[%c0_94, %c0_95], %231 {strides = array<i32>} : memref<2x32xf32, #tpu.memory_space<vmem>>, vector<2x32xf32>,
    %234 = arith.index_cast %c5_i32 : i32 to index
    %c0_96 = arith.constant 0 : index
    %c0_97 = arith.constant 0 : index
    %235 = vector.load %arg3[%234, %c0_96, %c0_97] : memref<8x2x32xf32, #tpu.memory_space<vmem>>, vector<1x2x32xf32>
    %236 = vector.shape_cast %235 : vector<1x2x32xf32> to vector<2x32xf32>
    %237 = vector.shape_cast %231 : vector<2x32xf32> to vector<1x2x32xf32>
    tpu.vector_store %arg3[%234, %c0_96, %c0_97], %237 {strides = array<i32>} : memref<8x2x32xf32, #tpu.memory_space<vmem>>, vector<1x2x32xf32>,
    %c6_i32 = arith.constant 6 : i32
    %c0_98 = arith.constant 0 : index
    %c0_99 = arith.constant 0 : index
    %238 = vector.load %arg4[%c0_98, %c0_99] : memref<2x32xf32, #tpu.memory_space<vmem>>, vector<2x32xf32>
    %c0_100 = arith.constant 0 : index
    %c0_101 = arith.constant 0 : index
    %239 = vector.load %arg5[%c0_100, %c0_101] : memref<2x32xf32, #tpu.memory_space<vmem>>, vector<2x32xf32>
    %240 = arith.index_cast %c6_i32 : i32 to index
    %c0_102 = arith.constant 0 : index
    %c0_103 = arith.constant 0 : index
    %241 = vector.load %arg1[%240, %c0_102, %c0_103] : memref<8x2x128xf32, #tpu.memory_space<vmem>>, vector<1x2x128xf32>
    %242 = vector.shape_cast %241 : vector<1x2x128xf32> to vector<2x128xf32>
    %243 = arith.truncf %238 : vector<2x32xf32> to vector<2x32xbf16>
    %cst_104 = arith.constant dense<0.000000e+00> : vector<2x128xf32>
    %244 = tpu.matmul %243, %3, %cst_104 {dimension_numbers = #tpu.dot_dimension_numbers<[1], [0], [0], [1], [0, 0, 1, 1], [], []>} : vector<2x32xbf16>, vector<32x128xbf16>, vector<2x128xf32> -> vector<2x128xf32>
    %245 = arith.addf %242, %244 : vector<2x128xf32>
    %246 = vector.extract_strided_slice %245 {offsets = [0, 0], sizes = [2, 32], strides = [1, 1]} : vector<2x128xf32> to vector<2x32xf32>
    %247 = arith.negf %246 : vector<2x32xf32>
    %248 = math.exp %247 : vector<2x32xf32>
    %cst_105 = arith.constant 1.000000e+00 : f32
    %249 = vector.broadcast %cst_105 : f32 to vector<2x32xf32>
    %250 = arith.addf %249, %248 : vector<2x32xf32>
    %251 = arith.divf %249, %250 : vector<2x32xf32>
    %252 = vector.extract_strided_slice %245 {offsets = [0, 32], sizes = [2, 32], strides = [1, 1]} : vector<2x128xf32> to vector<2x32xf32>
    %253 = arith.negf %252 : vector<2x32xf32>
    %254 = math.exp %253 : vector<2x32xf32>
    %cst_106 = arith.constant 1.000000e+00 : f32
    %255 = vector.broadcast %cst_106 : f32 to vector<2x32xf32>
    %256 = arith.addf %255, %254 : vector<2x32xf32>
    %257 = arith.divf %255, %256 : vector<2x32xf32>
    %258 = vector.extract_strided_slice %245 {offsets = [0, 64], sizes = [2, 32], strides = [1, 1]} : vector<2x128xf32> to vector<2x32xf32>
    %259 = math.tanh %258 : vector<2x32xf32>
    %260 = vector.extract_strided_slice %245 {offsets = [0, 96], sizes = [2, 32], strides = [1, 1]} : vector<2x128xf32> to vector<2x32xf32>
    %261 = arith.negf %260 : vector<2x32xf32>
    %262 = math.exp %261 : vector<2x32xf32>
    %cst_107 = arith.constant 1.000000e+00 : f32
    %263 = vector.broadcast %cst_107 : f32 to vector<2x32xf32>
    %264 = arith.addf %263, %262 : vector<2x32xf32>
    %265 = arith.divf %263, %264 : vector<2x32xf32>
    %266 = arith.mulf %257, %239 : vector<2x32xf32>
    %267 = arith.mulf %251, %259 : vector<2x32xf32>
    %268 = arith.addf %266, %267 : vector<2x32xf32>
    %269 = math.tanh %268 : vector<2x32xf32>
    %270 = arith.mulf %265, %269 : vector<2x32xf32>
    %c0_108 = arith.constant 0 : index
    %c0_109 = arith.constant 0 : index
    %271 = vector.load %arg5[%c0_108, %c0_109] : memref<2x32xf32, #tpu.memory_space<vmem>>, vector<2x32xf32>
    tpu.vector_store %arg5[%c0_108, %c0_109], %268 {strides = array<i32>} : memref<2x32xf32, #tpu.memory_space<vmem>>, vector<2x32xf32>,
    %c0_110 = arith.constant 0 : index
    %c0_111 = arith.constant 0 : index
    %272 = vector.load %arg4[%c0_110, %c0_111] : memref<2x32xf32, #tpu.memory_space<vmem>>, vector<2x32xf32>
    tpu.vector_store %arg4[%c0_110, %c0_111], %270 {strides = array<i32>} : memref<2x32xf32, #tpu.memory_space<vmem>>, vector<2x32xf32>,
    %273 = arith.index_cast %c6_i32 : i32 to index
    %c0_112 = arith.constant 0 : index
    %c0_113 = arith.constant 0 : index
    %274 = vector.load %arg3[%273, %c0_112, %c0_113] : memref<8x2x32xf32, #tpu.memory_space<vmem>>, vector<1x2x32xf32>
    %275 = vector.shape_cast %274 : vector<1x2x32xf32> to vector<2x32xf32>
    %276 = vector.shape_cast %270 : vector<2x32xf32> to vector<1x2x32xf32>
    tpu.vector_store %arg3[%273, %c0_112, %c0_113], %276 {strides = array<i32>} : memref<8x2x32xf32, #tpu.memory_space<vmem>>, vector<1x2x32xf32>,
    %c7_i32 = arith.constant 7 : i32
    %c0_114 = arith.constant 0 : index
    %c0_115 = arith.constant 0 : index
    %277 = vector.load %arg4[%c0_114, %c0_115] : memref<2x32xf32, #tpu.memory_space<vmem>>, vector<2x32xf32>
    %c0_116 = arith.constant 0 : index
    %c0_117 = arith.constant 0 : index
    %278 = vector.load %arg5[%c0_116, %c0_117] : memref<2x32xf32, #tpu.memory_space<vmem>>, vector<2x32xf32>
    %279 = arith.index_cast %c7_i32 : i32 to index
    %c0_118 = arith.constant 0 : index
    %c0_119 = arith.constant 0 : index
    %280 = vector.load %arg1[%279, %c0_118, %c0_119] : memref<8x2x128xf32, #tpu.memory_space<vmem>>, vector<1x2x128xf32>
    %281 = vector.shape_cast %280 : vector<1x2x128xf32> to vector<2x128xf32>
    %282 = arith.truncf %277 : vector<2x32xf32> to vector<2x32xbf16>
    %cst_120 = arith.constant dense<0.000000e+00> : vector<2x128xf32>
    %283 = tpu.matmul %282, %3, %cst_120 {dimension_numbers = #tpu.dot_dimension_numbers<[1], [0], [0], [1], [0, 0, 1, 1], [], []>} : vector<2x32xbf16>, vector<32x128xbf16>, vector<2x128xf32> -> vector<2x128xf32>
    %284 = arith.addf %281, %283 : vector<2x128xf32>
    %285 = vector.extract_strided_slice %284 {offsets = [0, 0], sizes = [2, 32], strides = [1, 1]} : vector<2x128xf32> to vector<2x32xf32>
    %286 = arith.negf %285 : vector<2x32xf32>
    %287 = math.exp %286 : vector<2x32xf32>
    %cst_121 = arith.constant 1.000000e+00 : f32
    %288 = vector.broadcast %cst_121 : f32 to vector<2x32xf32>
    %289 = arith.addf %288, %287 : vector<2x32xf32>
    %290 = arith.divf %288, %289 : vector<2x32xf32>
    %291 = vector.extract_strided_slice %284 {offsets = [0, 32], sizes = [2, 32], strides = [1, 1]} : vector<2x128xf32> to vector<2x32xf32>
    %292 = arith.negf %291 : vector<2x32xf32>
    %293 = math.exp %292 : vector<2x32xf32>
    %cst_122 = arith.constant 1.000000e+00 : f32
    %294 = vector.broadcast %cst_122 : f32 to vector<2x32xf32>
    %295 = arith.addf %294, %293 : vector<2x32xf32>
    %296 = arith.divf %294, %295 : vector<2x32xf32>
    %297 = vector.extract_strided_slice %284 {offsets = [0, 64], sizes = [2, 32], strides = [1, 1]} : vector<2x128xf32> to vector<2x32xf32>
    %298 = math.tanh %297 : vector<2x32xf32>
    %299 = vector.extract_strided_slice %284 {offsets = [0, 96], sizes = [2, 32], strides = [1, 1]} : vector<2x128xf32> to vector<2x32xf32>
    %300 = arith.negf %299 : vector<2x32xf32>
    %301 = math.exp %300 : vector<2x32xf32>
    %cst_123 = arith.constant 1.000000e+00 : f32
    %302 = vector.broadcast %cst_123 : f32 to vector<2x32xf32>
    %303 = arith.addf %302, %301 : vector<2x32xf32>
    %304 = arith.divf %302, %303 : vector<2x32xf32>
    %305 = arith.mulf %296, %278 : vector<2x32xf32>
    %306 = arith.mulf %290, %298 : vector<2x32xf32>
    %307 = arith.addf %305, %306 : vector<2x32xf32>
    %308 = math.tanh %307 : vector<2x32xf32>
    %309 = arith.mulf %304, %308 : vector<2x32xf32>
    %c0_124 = arith.constant 0 : index
    %c0_125 = arith.constant 0 : index
    %310 = vector.load %arg5[%c0_124, %c0_125] : memref<2x32xf32, #tpu.memory_space<vmem>>, vector<2x32xf32>
    tpu.vector_store %arg5[%c0_124, %c0_125], %307 {strides = array<i32>} : memref<2x32xf32, #tpu.memory_space<vmem>>, vector<2x32xf32>,
    %c0_126 = arith.constant 0 : index
    %c0_127 = arith.constant 0 : index
    %311 = vector.load %arg4[%c0_126, %c0_127] : memref<2x32xf32, #tpu.memory_space<vmem>>, vector<2x32xf32>
    tpu.vector_store %arg4[%c0_126, %c0_127], %309 {strides = array<i32>} : memref<2x32xf32, #tpu.memory_space<vmem>>, vector<2x32xf32>,
    %312 = arith.index_cast %c7_i32 : i32 to index
    %c0_128 = arith.constant 0 : index
    %c0_129 = arith.constant 0 : index
    %313 = vector.load %arg3[%312, %c0_128, %c0_129] : memref<8x2x32xf32, #tpu.memory_space<vmem>>, vector<1x2x32xf32>
    %314 = vector.shape_cast %313 : vector<1x2x32xf32> to vector<2x32xf32>
    %315 = vector.shape_cast %309 : vector<2x32xf32> to vector<1x2x32xf32>
    tpu.vector_store %arg3[%312, %c0_128, %c0_129], %315 {strides = array<i32>} : memref<8x2x32xf32, #tpu.memory_space<vmem>>, vector<1x2x32xf32>,
    %c8_i32 = arith.constant 8 : i32
    return
  }
  func.func @transform_0(%arg0: i32) -> (i32, i32, i32) {
    %c0_i32 = arith.constant 0 : i32
    %c0_i32_0 = arith.constant 0 : i32
    %c0_i32_1 = arith.constant 0 : i32
    return %arg0, %c0_i32, %c0_i32_0 : i32, i32, i32
  }
  func.func @transform_1(%arg0: i32) -> (i32, i32) {
    %c0_i32 = arith.constant 0 : i32
    %c0_i32_0 = arith.constant 0 : i32
    %c0_i32_1 = arith.constant 0 : i32
    return %c0_i32, %c0_i32_0 : i32, i32
  }
  func.func @transform_2(%arg0: i32) -> (i32, i32, i32) {
    %c0_i32 = arith.constant 0 : i32
    %c0_i32_0 = arith.constant 0 : i32
    %c0_i32_1 = arith.constant 0 : i32
    return %arg0, %c0_i32, %c0_i32_0 : i32, i32, i32
  }
}

module attributes {stable_mosaic.version = 11 : i64} {
  func.func @_linear_kernel(%arg0: i32, %arg1: memref<16x32xf32, #tpu.memory_space<vmem>>, %arg2: memref<32x128xbf16, #tpu.memory_space<vmem>>, %arg3: memref<1x128xf32, #tpu.memory_space<vmem>>, %arg4: memref<16x128xf32, #tpu.memory_space<vmem>>) attributes {dimension_semantics = [#tpu.dimension_semantics<parallel>], iteration_bounds = array<i64: 1>, scalar_prefetch = 0 : i64, scratch_operands = 0 : i64, tpu.core_type = #tpu.core_type<tc>, window_params = [{transform_indices = @transform_0, window_bounds = array<i64: 16, 32>}, {pipeline_mode = #tpu.pipeline_mode<synchronous>, transform_indices = @transform_1, window_bounds = array<i64: 32, 128>}, {pipeline_mode = #tpu.pipeline_mode<synchronous>, transform_indices = @transform_2, window_bounds = array<i64: 1, 128>}, {transform_indices = @transform_3, window_bounds = array<i64: 16, 128>}]} {
    %c0 = arith.constant 0 : index
    %c0_0 = arith.constant 0 : index
    %0 = vector.load %arg1[%c0, %c0_0] : memref<16x32xf32, #tpu.memory_space<vmem>>, vector<16x32xf32>
    %1 = arith.truncf %0 : vector<16x32xf32> to vector<16x32xbf16>
    %c0_1 = arith.constant 0 : index
    %c0_2 = arith.constant 0 : index
    %2 = vector.load %arg2[%c0_1, %c0_2] : memref<32x128xbf16, #tpu.memory_space<vmem>>, vector<32x128xbf16>
    %cst = arith.constant dense<0.000000e+00> : vector<16x128xf32>
    %3 = tpu.matmul %1, %2, %cst {dimension_numbers = #tpu.dot_dimension_numbers<[1], [0], [0], [1], [0, 0, 1, 1], [], []>} : vector<16x32xbf16>, vector<32x128xbf16>, vector<16x128xf32> -> vector<16x128xf32>
    %c0_3 = arith.constant 0 : index
    %c0_4 = arith.constant 0 : index
    %4 = vector.load %arg3[%c0_3, %c0_4] : memref<1x128xf32, #tpu.memory_space<vmem>>, vector<1x128xf32>
    %5 = vector.broadcast %4 : vector<1x128xf32> to vector<16x128xf32>
    %6 = arith.addf %3, %5 : vector<16x128xf32>
    %c0_5 = arith.constant 0 : index
    %c0_6 = arith.constant 0 : index
    %7 = vector.load %arg4[%c0_5, %c0_6] : memref<16x128xf32, #tpu.memory_space<vmem>>, vector<16x128xf32>
    tpu.vector_store %arg4[%c0_5, %c0_6], %6 {strides = array<i32>} : memref<16x128xf32, #tpu.memory_space<vmem>>, vector<16x128xf32>,
    return
  }
  func.func @transform_0(%arg0: i32) -> (i32, i32) {
    %c0_i32 = arith.constant 0 : i32
    %c0_i32_0 = arith.constant 0 : i32
    return %arg0, %c0_i32 : i32, i32
  }
  func.func @transform_1(%arg0: i32) -> (i32, i32) {
    %c0_i32 = arith.constant 0 : i32
    %c0_i32_0 = arith.constant 0 : i32
    %c0_i32_1 = arith.constant 0 : i32
    return %c0_i32, %c0_i32_0 : i32, i32
  }
  func.func @transform_2(%arg0: i32) -> (i32, i32) {
    %c0_i32 = arith.constant 0 : i32
    %c0_i32_0 = arith.constant 0 : i32
    %c0_i32_1 = arith.constant 0 : i32
    return %c0_i32, %c0_i32_0 : i32, i32
  }
  func.func @transform_3(%arg0: i32) -> (i32, i32) {
    %c0_i32 = arith.constant 0 : i32
    %c0_i32_0 = arith.constant 0 : i32
    return %arg0, %c0_i32 : i32, i32
  }
}

module attributes {stable_mosaic.version = 11 : i64} {
  func.func @_mha_kernel(%arg0: i32, %arg1: memref<1x8x32xf32, #tpu.memory_space<vmem>>, %arg2: memref<32x96xbf16, #tpu.memory_space<vmem>>, %arg3: memref<1x96xf32, #tpu.memory_space<vmem>>, %arg4: memref<32x32xbf16, #tpu.memory_space<vmem>>, %arg5: memref<1x32xf32, #tpu.memory_space<vmem>>, %arg6: memref<1x8x32xf32, #tpu.memory_space<vmem>>) attributes {dimension_semantics = [#tpu.dimension_semantics<parallel>], iteration_bounds = array<i64: 2>, scalar_prefetch = 0 : i64, scratch_operands = 0 : i64, tpu.core_type = #tpu.core_type<tc>, window_params = [{transform_indices = @transform_0, window_bounds = array<i64: 1, 8, 32>}, {pipeline_mode = #tpu.pipeline_mode<synchronous>, transform_indices = @transform_1, window_bounds = array<i64: 32, 96>}, {pipeline_mode = #tpu.pipeline_mode<synchronous>, transform_indices = @transform_2, window_bounds = array<i64: 1, 96>}, {pipeline_mode = #tpu.pipeline_mode<synchronous>, transform_indices = @transform_3, window_bounds = array<i64: 32, 32>}, {pipeline_mode = #tpu.pipeline_mode<synchronous>, transform_indices = @transform_4, window_bounds = array<i64: 1, 32>}, {transform_indices = @transform_5, window_bounds = array<i64: 1, 8, 32>}]} {
    %c0 = arith.constant 0 : index
    %c0_0 = arith.constant 0 : index
    %c0_1 = arith.constant 0 : index
    %0 = vector.load %arg1[%c0, %c0_0, %c0_1] : memref<1x8x32xf32, #tpu.memory_space<vmem>>, vector<1x8x32xf32>
    %1 = vector.shape_cast %0 : vector<1x8x32xf32> to vector<8x32xf32>
    %2 = arith.truncf %1 : vector<8x32xf32> to vector<8x32xbf16>
    %c0_2 = arith.constant 0 : index
    %c0_3 = arith.constant 0 : index
    %3 = vector.load %arg2[%c0_2, %c0_3] : memref<32x96xbf16, #tpu.memory_space<vmem>>, vector<32x96xbf16>
    %cst = arith.constant dense<0.000000e+00> : vector<8x96xf32>
    %4 = tpu.matmul %2, %3, %cst {dimension_numbers = #tpu.dot_dimension_numbers<[1], [0], [0], [1], [0, 0, 1, 1], [], []>} : vector<8x32xbf16>, vector<32x96xbf16>, vector<8x96xf32> -> vector<8x96xf32>
    %c0_4 = arith.constant 0 : index
    %c0_5 = arith.constant 0 : index
    %5 = vector.load %arg3[%c0_4, %c0_5] : memref<1x96xf32, #tpu.memory_space<vmem>>, vector<1x96xf32>
    %6 = vector.broadcast %5 : vector<1x96xf32> to vector<8x96xf32>
    %7 = arith.addf %4, %6 : vector<8x96xf32>
    %8 = vector.extract_strided_slice %7 {offsets = [0, 0], sizes = [8, 32], strides = [1, 1]} : vector<8x96xf32> to vector<8x32xf32>
    %cst_6 = arith.constant 0.353553385 : f32
    %9 = vector.broadcast %cst_6 : f32 to vector<8x32xf32>
    %10 = arith.mulf %8, %9 : vector<8x32xf32>
    %11 = vector.shape_cast %10 : vector<8x32xf32> to vector<8x4x8xf32>
    %12 = tpu.transpose %11, [1, 0, 2] : vector<8x4x8xf32> -> vector<4x8x8xf32>
    %13 = arith.truncf %12 : vector<4x8x8xf32> to vector<4x8x8xbf16>
    %14 = vector.extract_strided_slice %7 {offsets = [0, 32], sizes = [8, 32], strides = [1, 1]} : vector<8x96xf32> to vector<8x32xf32>
    %15 = vector.shape_cast %14 : vector<8x32xf32> to vector<8x4x8xf32>
    %16 = tpu.transpose %15, [1, 0, 2] : vector<8x4x8xf32> -> vector<4x8x8xf32>
    %17 = arith.truncf %16 : vector<4x8x8xf32> to vector<4x8x8xbf16>
    %18 = vector.extract_strided_slice %7 {offsets = [0, 64], sizes = [8, 32], strides = [1, 1]} : vector<8x96xf32> to vector<8x32xf32>
    %19 = vector.shape_cast %18 : vector<8x32xf32> to vector<8x4x8xf32>
    %20 = tpu.transpose %19, [1, 0, 2] : vector<8x4x8xf32> -> vector<4x8x8xf32>
    %21 = arith.truncf %20 : vector<4x8x8xf32> to vector<4x8x8xbf16>
    "tpu.trace_start"() <{level = 10 : i32, message = "htd,hsd->hts"}> : () -> ()
    %cst_7 = arith.constant dense<0.000000e+00> : vector<4x8x8xf32>
    %22 = tpu.matmul %13, %17, %cst_7 {dimension_numbers = #tpu.dot_dimension_numbers<[2], [2], [1], [1], [0, 0, 0, 1, 1, 1], [0], [0]>} : vector<4x8x8xbf16>, vector<4x8x8xbf16>, vector<4x8x8xf32> -> vector<4x8x8xf32>
    "tpu.trace_stop"() : () -> ()
    %cst_8 = arith.constant dense<0x7F800000> : vector<4x8xf32>
    %23 = vector.multi_reduction <minimumf>, %22, %cst_8 [2] : vector<4x8x8xf32> to vector<4x8xf32>
    %24 = vector.shape_cast %23 : vector<4x8xf32> to vector<4x8x1xf32>
    %cst_9 = arith.constant dense<0xFF800000> : vector<4x8xf32>
    %25 = vector.multi_reduction <maximumf>, %22, %cst_9 [2] : vector<4x8x8xf32> to vector<4x8xf32>
    %26 = vector.shape_cast %25 : vector<4x8xf32> to vector<4x8x1xf32>
    %cst_10 = arith.constant 1.000000e+00 : f32
    %27 = vector.broadcast %cst_10 : f32 to vector<4x8x1xf32>
    %28 = arith.addf %26, %27 : vector<4x8x1xf32>
    %c0_i32 = arith.constant 0 : i32
    %c24_i32 = arith.constant 24 : i32
    %29 = arith.addi %c0_i32, %c24_i32 : i32
    %c1_i32 = arith.constant 1 : i32
    %30:2 = scf.for %arg7 = %c0_i32 to %29 step %c1_i32 iter_args(%arg8 = %24, %arg9 = %28) -> (vector<4x8x1xf32>, vector<4x8x1xf32>)  : i32 {
      %58 = arith.addf %arg8, %arg9 : vector<4x8x1xf32>
      %cst_23 = arith.constant 5.000000e-01 : f32
      %59 = vector.broadcast %cst_23 : f32 to vector<4x8x1xf32>
      %60 = arith.mulf %59, %58 : vector<4x8x1xf32>
      %61 = vector.broadcast %60 : vector<4x8x1xf32> to vector<4x8x8xf32>
      %62 = arith.cmpf oge, %22, %61 : vector<4x8x8xf32>
      %63 = arith.extui %62 : vector<4x8x8xi1> to vector<4x8x8xi32>
      %64 = arith.sitofp %63 : vector<4x8x8xi32> to vector<4x8x8xf32>
      %cst_24 = arith.constant dense<0.000000e+00> : vector<4x8xf32>
      %65 = vector.multi_reduction <add>, %64, %cst_24 [2] : vector<4x8x8xf32> to vector<4x8xf32>
      %66 = vector.shape_cast %65 : vector<4x8xf32> to vector<4x8x1xf32>
      %cst_25 = arith.constant 4.000000e+00 : f32
      %67 = vector.broadcast %cst_25 : f32 to vector<4x8x1xf32>
      %68 = arith.cmpf oge, %66, %67 : vector<4x8x1xf32>
      %69 = arith.select %68, %60, %arg8 : vector<4x8x1xi1>, vector<4x8x1xf32>
      %70 = arith.select %68, %arg9, %60 : vector<4x8x1xi1>, vector<4x8x1xf32>
      scf.yield %69, %70 : vector<4x8x1xf32>, vector<4x8x1xf32>
    }
    %31 = vector.broadcast %30#0 : vector<4x8x1xf32> to vector<4x8x8xf32>
    %32 = arith.cmpf oge, %22, %31 : vector<4x8x8xf32>
    %cst_11 = arith.constant 0xFF800000 : f32
    %33 = vector.broadcast %cst_11 : f32 to vector<4x8x8xf32>
    %34 = arith.select %32, %22, %33 : vector<4x8x8xi1>, vector<4x8x8xf32>
    %cst_12 = arith.constant dense<0xFF800000> : vector<4x8xf32>
    %35 = vector.multi_reduction <maximumf>, %34, %cst_12 [2] : vector<4x8x8xf32> to vector<4x8xf32>
    %36 = vector.shape_cast %35 : vector<4x8xf32> to vector<4x8x1xf32>
    %37 = vector.broadcast %36 : vector<4x8x1xf32> to vector<4x8x8xf32>
    %38 = arith.subf %34, %37 : vector<4x8x8xf32>
    %39 = math.exp %38 : vector<4x8x8xf32>
    %cst_13 = arith.constant dense<0.000000e+00> : vector<4x8xf32>
    %40 = vector.multi_reduction <add>, %39, %cst_13 [2] : vector<4x8x8xf32> to vector<4x8xf32>
    %41 = vector.shape_cast %40 : vector<4x8xf32> to vector<4x8x1xf32>
    %42 = tpu.reciprocal %41 {approx = true} : vector<4x8x1xf32> -> vector<4x8x1xf32>
    %43 = vector.broadcast %42 : vector<4x8x1xf32> to vector<4x8x8xf32>
    %44 = arith.mulf %39, %43 : vector<4x8x8xf32>
    %45 = arith.truncf %44 : vector<4x8x8xf32> to vector<4x8x8xbf16>
    "tpu.trace_start"() <{level = 10 : i32, message = "hts,hsd->htd"}> : () -> ()
    %cst_14 = arith.constant dense<0.000000e+00> : vector<4x8x8xf32>
    %46 = tpu.matmul %45, %21, %cst_14 {dimension_numbers = #tpu.dot_dimension_numbers<[2], [1], [1], [2], [0, 0, 0, 1, 1, 2], [0], [0]>} : vector<4x8x8xbf16>, vector<4x8x8xbf16>, vector<4x8x8xf32> -> vector<4x8x8xf32>
    "tpu.trace_stop"() : () -> ()
    %47 = tpu.transpose %46, [1, 0, 2] : vector<4x8x8xf32> -> vector<8x4x8xf32>
    %48 = vector.shape_cast %47 : vector<8x4x8xf32> to vector<8x32xf32>
    %49 = arith.truncf %48 : vector<8x32xf32> to vector<8x32xbf16>
    %c0_15 = arith.constant 0 : index
    %c0_16 = arith.constant 0 : index
    %50 = vector.load %arg4[%c0_15, %c0_16] : memref<32x32xbf16, #tpu.memory_space<vmem>>, vector<32x32xbf16>
    %cst_17 = arith.constant dense<0.000000e+00> : vector<8x32xf32>
    %51 = tpu.matmul %49, %50, %cst_17 {dimension_numbers = #tpu.dot_dimension_numbers<[1], [0], [0], [1], [0, 0, 1, 1], [], []>} : vector<8x32xbf16>, vector<32x32xbf16>, vector<8x32xf32> -> vector<8x32xf32>
    %c0_18 = arith.constant 0 : index
    %c0_19 = arith.constant 0 : index
    %52 = vector.load %arg5[%c0_18, %c0_19] : memref<1x32xf32, #tpu.memory_space<vmem>>, vector<1x32xf32>
    %53 = vector.broadcast %52 : vector<1x32xf32> to vector<8x32xf32>
    %54 = arith.addf %51, %53 : vector<8x32xf32>
    %c0_20 = arith.constant 0 : index
    %c0_21 = arith.constant 0 : index
    %c0_22 = arith.constant 0 : index
    %55 = vector.load %arg6[%c0_20, %c0_21, %c0_22] : memref<1x8x32xf32, #tpu.memory_space<vmem>>, vector<1x8x32xf32>
    %56 = vector.shape_cast %55 : vector<1x8x32xf32> to vector<8x32xf32>
    %57 = vector.shape_cast %54 : vector<8x32xf32> to vector<1x8x32xf32>
    tpu.vector_store %arg6[%c0_20, %c0_21, %c0_22], %57 {strides = array<i32>} : memref<1x8x32xf32, #tpu.memory_space<vmem>>, vector<1x8x32xf32>,
    return
  }
  func.func @transform_0(%arg0: i32) -> (i32, i32, i32) {
    %c0_i32 = arith.constant 0 : i32
    %c0_i32_0 = arith.constant 0 : i32
    %c0_i32_1 = arith.constant 0 : i32
    return %arg0, %c0_i32, %c0_i32_0 : i32, i32, i32
  }
  func.func @transform_1(%arg0: i32) -> (i32, i32) {
    %c0_i32 = arith.constant 0 : i32
    %c0_i32_0 = arith.constant 0 : i32
    %c0_i32_1 = arith.constant 0 : i32
    return %c0_i32, %c0_i32_0 : i32, i32
  }
  func.func @transform_2(%arg0: i32) -> (i32, i32) {
    %c0_i32 = arith.constant 0 : i32
    %c0_i32_0 = arith.constant 0 : i32
    %c0_i32_1 = arith.constant 0 : i32
    return %c0_i32, %c0_i32_0 : i32, i32
  }
  func.func @transform_3(%arg0: i32) -> (i32, i32) {
    %c0_i32 = arith.constant 0 : i32
    %c0_i32_0 = arith.constant 0 : i32
    %c0_i32_1 = arith.constant 0 : i32
    return %c0_i32, %c0_i32_0 : i32, i32
  }
  func.func @transform_4(%arg0: i32) -> (i32, i32) {
    %c0_i32 = arith.constant 0 : i32
    %c0_i32_0 = arith.constant 0 : i32
    %c0_i32_1 = arith.constant 0 : i32
    return %c0_i32, %c0_i32_0 : i32, i32
  }
  func.func @transform_5(%arg0: i32) -> (i32, i32, i32) {
    %c0_i32 = arith.constant 0 : i32
    %c0_i32_0 = arith.constant 0 : i32
    %c0_i32_1 = arith.constant 0 : i32
    return %arg0, %c0_i32, %c0_i32_0 : i32, i32, i32
  }
}

module attributes {stable_mosaic.version = 11 : i64} {
  func.func @_mha_kernel(%arg0: i32, %arg1: memref<1x8x32xf32, #tpu.memory_space<vmem>>, %arg2: memref<32x96xbf16, #tpu.memory_space<vmem>>, %arg3: memref<1x96xf32, #tpu.memory_space<vmem>>, %arg4: memref<32x32xbf16, #tpu.memory_space<vmem>>, %arg5: memref<1x32xf32, #tpu.memory_space<vmem>>, %arg6: memref<1x32xf32, #tpu.memory_space<vmem>>, %arg7: memref<1x32xf32, #tpu.memory_space<vmem>>, %arg8: memref<1x8x32xf32, #tpu.memory_space<vmem>>) attributes {dimension_semantics = [#tpu.dimension_semantics<parallel>], iteration_bounds = array<i64: 2>, scalar_prefetch = 0 : i64, scratch_operands = 0 : i64, tpu.core_type = #tpu.core_type<tc>, window_params = [{transform_indices = @transform_0, window_bounds = array<i64: 1, 8, 32>}, {pipeline_mode = #tpu.pipeline_mode<synchronous>, transform_indices = @transform_1, window_bounds = array<i64: 32, 96>}, {pipeline_mode = #tpu.pipeline_mode<synchronous>, transform_indices = @transform_2, window_bounds = array<i64: 1, 96>}, {pipeline_mode = #tpu.pipeline_mode<synchronous>, transform_indices = @transform_3, window_bounds = array<i64: 32, 32>}, {pipeline_mode = #tpu.pipeline_mode<synchronous>, transform_indices = @transform_4, window_bounds = array<i64: 1, 32>}, {pipeline_mode = #tpu.pipeline_mode<synchronous>, transform_indices = @transform_5, window_bounds = array<i64: 1, 32>}, {pipeline_mode = #tpu.pipeline_mode<synchronous>, transform_indices = @transform_6, window_bounds = array<i64: 1, 32>}, {transform_indices = @transform_7, window_bounds = array<i64: 1, 8, 32>}]} {
    %c0 = arith.constant 0 : index
    %c0_0 = arith.constant 0 : index
    %c0_1 = arith.constant 0 : index
    %0 = vector.load %arg1[%c0, %c0_0, %c0_1] : memref<1x8x32xf32, #tpu.memory_space<vmem>>, vector<1x8x32xf32>
    %1 = vector.shape_cast %0 : vector<1x8x32xf32> to vector<8x32xf32>
    %2 = arith.truncf %1 : vector<8x32xf32> to vector<8x32xbf16>
    %c0_2 = arith.constant 0 : index
    %c0_3 = arith.constant 0 : index
    %3 = vector.load %arg2[%c0_2, %c0_3] : memref<32x96xbf16, #tpu.memory_space<vmem>>, vector<32x96xbf16>
    %cst = arith.constant dense<0.000000e+00> : vector<8x96xf32>
    %4 = tpu.matmul %2, %3, %cst {dimension_numbers = #tpu.dot_dimension_numbers<[1], [0], [0], [1], [0, 0, 1, 1], [], []>} : vector<8x32xbf16>, vector<32x96xbf16>, vector<8x96xf32> -> vector<8x96xf32>
    %c0_4 = arith.constant 0 : index
    %c0_5 = arith.constant 0 : index
    %5 = vector.load %arg3[%c0_4, %c0_5] : memref<1x96xf32, #tpu.memory_space<vmem>>, vector<1x96xf32>
    %6 = vector.broadcast %5 : vector<1x96xf32> to vector<8x96xf32>
    %7 = arith.addf %4, %6 : vector<8x96xf32>
    %8 = vector.extract_strided_slice %7 {offsets = [0, 0], sizes = [8, 32], strides = [1, 1]} : vector<8x96xf32> to vector<8x32xf32>
    %cst_6 = arith.constant 0.353553385 : f32
    %9 = vector.broadcast %cst_6 : f32 to vector<8x32xf32>
    %10 = arith.mulf %8, %9 : vector<8x32xf32>
    %11 = vector.shape_cast %10 : vector<8x32xf32> to vector<8x4x8xf32>
    %12 = tpu.transpose %11, [1, 0, 2] : vector<8x4x8xf32> -> vector<4x8x8xf32>
    %13 = arith.truncf %12 : vector<4x8x8xf32> to vector<4x8x8xbf16>
    %14 = vector.extract_strided_slice %7 {offsets = [0, 32], sizes = [8, 32], strides = [1, 1]} : vector<8x96xf32> to vector<8x32xf32>
    %15 = vector.shape_cast %14 : vector<8x32xf32> to vector<8x4x8xf32>
    %16 = tpu.transpose %15, [1, 0, 2] : vector<8x4x8xf32> -> vector<4x8x8xf32>
    %17 = arith.truncf %16 : vector<4x8x8xf32> to vector<4x8x8xbf16>
    %18 = vector.extract_strided_slice %7 {offsets = [0, 64], sizes = [8, 32], strides = [1, 1]} : vector<8x96xf32> to vector<8x32xf32>
    %19 = vector.shape_cast %18 : vector<8x32xf32> to vector<8x4x8xf32>
    %20 = tpu.transpose %19, [1, 0, 2] : vector<8x4x8xf32> -> vector<4x8x8xf32>
    %21 = arith.truncf %20 : vector<4x8x8xf32> to vector<4x8x8xbf16>
    "tpu.trace_start"() <{level = 10 : i32, message = "htd,hsd->hts"}> : () -> ()
    %cst_7 = arith.constant dense<0.000000e+00> : vector<4x8x8xf32>
    %22 = tpu.matmul %13, %17, %cst_7 {dimension_numbers = #tpu.dot_dimension_numbers<[2], [2], [1], [1], [0, 0, 0, 1, 1, 1], [0], [0]>} : vector<4x8x8xbf16>, vector<4x8x8xbf16>, vector<4x8x8xf32> -> vector<4x8x8xf32>
    "tpu.trace_stop"() : () -> ()
    %cst_8 = arith.constant dense<0xFF800000> : vector<4x8xf32>
    %23 = vector.multi_reduction <maximumf>, %22, %cst_8 [2] : vector<4x8x8xf32> to vector<4x8xf32>
    %24 = vector.shape_cast %23 : vector<4x8xf32> to vector<4x8x1xf32>
    %25 = vector.broadcast %24 : vector<4x8x1xf32> to vector<4x8x8xf32>
    %26 = arith.subf %22, %25 : vector<4x8x8xf32>
    %27 = math.exp %26 : vector<4x8x8xf32>
    %cst_9 = arith.constant dense<0.000000e+00> : vector<4x8xf32>
    %28 = vector.multi_reduction <add>, %27, %cst_9 [2] : vector<4x8x8xf32> to vector<4x8xf32>
    %29 = vector.shape_cast %28 : vector<4x8xf32> to vector<4x8x1xf32>
    %30 = tpu.reciprocal %29 {approx = true} : vector<4x8x1xf32> -> vector<4x8x1xf32>
    %31 = vector.broadcast %30 : vector<4x8x1xf32> to vector<4x8x8xf32>
    %32 = arith.mulf %27, %31 : vector<4x8x8xf32>
    %33 = arith.truncf %32 : vector<4x8x8xf32> to vector<4x8x8xbf16>
    "tpu.trace_start"() <{level = 10 : i32, message = "hts,hsd->htd"}> : () -> ()
    %cst_10 = arith.constant dense<0.000000e+00> : vector<4x8x8xf32>
    %34 = tpu.matmul %33, %21, %cst_10 {dimension_numbers = #tpu.dot_dimension_numbers<[2], [1], [1], [2], [0, 0, 0, 1, 1, 2], [0], [0]>} : vector<4x8x8xbf16>, vector<4x8x8xbf16>, vector<4x8x8xf32> -> vector<4x8x8xf32>
    "tpu.trace_stop"() : () -> ()
    %35 = tpu.transpose %34, [1, 0, 2] : vector<4x8x8xf32> -> vector<8x4x8xf32>
    %36 = vector.shape_cast %35 : vector<8x4x8xf32> to vector<8x32xf32>
    %37 = arith.truncf %36 : vector<8x32xf32> to vector<8x32xbf16>
    %c0_11 = arith.constant 0 : index
    %c0_12 = arith.constant 0 : index
    %38 = vector.load %arg4[%c0_11, %c0_12] : memref<32x32xbf16, #tpu.memory_space<vmem>>, vector<32x32xbf16>
    %cst_13 = arith.constant dense<0.000000e+00> : vector<8x32xf32>
    %39 = tpu.matmul %37, %38, %cst_13 {dimension_numbers = #tpu.dot_dimension_numbers<[1], [0], [0], [1], [0, 0, 1, 1], [], []>} : vector<8x32xbf16>, vector<32x32xbf16>, vector<8x32xf32> -> vector<8x32xf32>
    %c0_14 = arith.constant 0 : index
    %c0_15 = arith.constant 0 : index
    %40 = vector.load %arg5[%c0_14, %c0_15] : memref<1x32xf32, #tpu.memory_space<vmem>>, vector<1x32xf32>
    %41 = vector.broadcast %40 : vector<1x32xf32> to vector<8x32xf32>
    %42 = arith.addf %39, %41 : vector<8x32xf32>
    %43 = arith.addf %1, %42 : vector<8x32xf32>
    %cst_16 = arith.constant dense<0.000000e+00> : vector<8xf32>
    %44 = vector.multi_reduction <add>, %43, %cst_16 [1] : vector<8x32xf32> to vector<8xf32>
    %45 = vector.shape_cast %44 : vector<8xf32> to vector<8x1xf32>
    %cst_17 = arith.constant 3.200000e+01 : f32
    %46 = vector.broadcast %cst_17 : f32 to vector<8x1xf32>
    %47 = arith.divf %45, %46 : vector<8x1xf32>
    %48 = vector.broadcast %47 : vector<8x1xf32> to vector<8x32xf32>
    %49 = arith.subf %43, %48 : vector<8x32xf32>
    %50 = arith.mulf %49, %49 : vector<8x32xf32>
    %cst_18 = arith.constant dense<0.000000e+00> : vector<8xf32>
    %51 = vector.multi_reduction <add>, %50, %cst_18 [1] : vector<8x32xf32> to vector<8xf32>
    %52 = vector.shape_cast %51 : vector<8xf32> to vector<8x1xf32>
    %cst_19 = arith.constant 3.200000e+01 : f32
    %53 = vector.broadcast %cst_19 : f32 to vector<8x1xf32>
    %54 = arith.divf %52, %53 : vector<8x1xf32>
    %55 = vector.broadcast %47 : vector<8x1xf32> to vector<8x32xf32>
    %56 = arith.subf %43, %55 : vector<8x32xf32>
    %cst_20 = arith.constant 9.99999974E-6 : f32
    %57 = vector.broadcast %cst_20 : f32 to vector<8x1xf32>
    %58 = arith.addf %54, %57 : vector<8x1xf32>
    %59 = math.rsqrt %58 : vector<8x1xf32>
    %60 = vector.broadcast %59 : vector<8x1xf32> to vector<8x32xf32>
    %61 = arith.mulf %56, %60 : vector<8x32xf32>
    %c0_21 = arith.constant 0 : index
    %c0_22 = arith.constant 0 : index
    %62 = vector.load %arg6[%c0_21, %c0_22] : memref<1x32xf32, #tpu.memory_space<vmem>>, vector<1x32xf32>
    %63 = vector.broadcast %62 : vector<1x32xf32> to vector<8x32xf32>
    %64 = arith.mulf %61, %63 : vector<8x32xf32>
    %c0_23 = arith.constant 0 : index
    %c0_24 = arith.constant 0 : index
    %65 = vector.load %arg7[%c0_23, %c0_24] : memref<1x32xf32, #tpu.memory_space<vmem>>, vector<1x32xf32>
    %66 = vector.broadcast %65 : vector<1x32xf32> to vector<8x32xf32>
    %67 = arith.addf %64, %66 : vector<8x32xf32>
    %c0_25 = arith.constant 0 : index
    %c0_26 = arith.constant 0 : index
    %c0_27 = arith.constant 0 : index
    %68 = vector.load %arg8[%c0_25, %c0_26, %c0_27] : memref<1x8x32xf32, #tpu.memory_space<vmem>>, vector<1x8x32xf32>
    %69 = vector.shape_cast %68 : vector<1x8x32xf32> to vector<8x32xf32>
    %70 = vector.shape_cast %67 : vector<8x32xf32> to vector<1x8x32xf32>
    tpu.vector_store %arg8[%c0_25, %c0_26, %c0_27], %70 {strides = array<i32>} : memref<1x8x32xf32, #tpu.memory_space<vmem>>, vector<1x8x32xf32>,
    return
  }
  func.func @transform_0(%arg0: i32) -> (i32, i32, i32) {
    %c0_i32 = arith.constant 0 : i32
    %c0_i32_0 = arith.constant 0 : i32
    %c0_i32_1 = arith.constant 0 : i32
    return %arg0, %c0_i32, %c0_i32_0 : i32, i32, i32
  }
  func.func @transform_1(%arg0: i32) -> (i32, i32) {
    %c0_i32 = arith.constant 0 : i32
    %c0_i32_0 = arith.constant 0 : i32
    %c0_i32_1 = arith.constant 0 : i32
    return %c0_i32, %c0_i32_0 : i32, i32
  }
  func.func @transform_2(%arg0: i32) -> (i32, i32) {
    %c0_i32 = arith.constant 0 : i32
    %c0_i32_0 = arith.constant 0 : i32
    %c0_i32_1 = arith.constant 0 : i32
    return %c0_i32, %c0_i32_0 : i32, i32
  }
  func.func @transform_3(%arg0: i32) -> (i32, i32) {
    %c0_i32 = arith.constant 0 : i32
    %c0_i32_0 = arith.constant 0 : i32
    %c0_i32_1 = arith.constant 0 : i32
    return %c0_i32, %c0_i32_0 : i32, i32
  }
  func.func @transform_4(%arg0: i32) -> (i32, i32) {
    %c0_i32 = arith.constant 0 : i32
    %c0_i32_0 = arith.constant 0 : i32
    %c0_i32_1 = arith.constant 0 : i32
    return %c0_i32, %c0_i32_0 : i32, i32
  }
  func.func @transform_5(%arg0: i32) -> (i32, i32) {
    %c0_i32 = arith.constant 0 : i32
    %c0_i32_0 = arith.constant 0 : i32
    %c0_i32_1 = arith.constant 0 : i32
    return %c0_i32, %c0_i32_0 : i32, i32
  }
  func.func @transform_6(%arg0: i32) -> (i32, i32) {
    %c0_i32 = arith.constant 0 : i32
    %c0_i32_0 = arith.constant 0 : i32
    %c0_i32_1 = arith.constant 0 : i32
    return %c0_i32, %c0_i32_0 : i32, i32
  }
  func.func @transform_7(%arg0: i32) -> (i32, i32, i32) {
    %c0_i32 = arith.constant 0 : i32
    %c0_i32_0 = arith.constant 0 : i32
    %c0_i32_1 = arith.constant 0 : i32
    return %arg0, %c0_i32, %c0_i32_0 : i32, i32, i32
  }
}

module attributes {stable_mosaic.version = 11 : i64} {
  func.func @_ffn_ln_kernel(%arg0: i32, %arg1: memref<16x32xf32, #tpu.memory_space<vmem>>, %arg2: memref<32x64xbf16, #tpu.memory_space<vmem>>, %arg3: memref<1x64xf32, #tpu.memory_space<vmem>>, %arg4: memref<64x32xbf16, #tpu.memory_space<vmem>>, %arg5: memref<1x32xf32, #tpu.memory_space<vmem>>, %arg6: memref<1x32xf32, #tpu.memory_space<vmem>>, %arg7: memref<1x32xf32, #tpu.memory_space<vmem>>, %arg8: memref<16x32xf32, #tpu.memory_space<vmem>>) attributes {dimension_semantics = [#tpu.dimension_semantics<parallel>], iteration_bounds = array<i64: 1>, scalar_prefetch = 0 : i64, scratch_operands = 0 : i64, tpu.core_type = #tpu.core_type<tc>, window_params = [{transform_indices = @transform_0, window_bounds = array<i64: 16, 32>}, {pipeline_mode = #tpu.pipeline_mode<synchronous>, transform_indices = @transform_1, window_bounds = array<i64: 32, 64>}, {pipeline_mode = #tpu.pipeline_mode<synchronous>, transform_indices = @transform_2, window_bounds = array<i64: 1, 64>}, {pipeline_mode = #tpu.pipeline_mode<synchronous>, transform_indices = @transform_3, window_bounds = array<i64: 64, 32>}, {pipeline_mode = #tpu.pipeline_mode<synchronous>, transform_indices = @transform_4, window_bounds = array<i64: 1, 32>}, {pipeline_mode = #tpu.pipeline_mode<synchronous>, transform_indices = @transform_5, window_bounds = array<i64: 1, 32>}, {pipeline_mode = #tpu.pipeline_mode<synchronous>, transform_indices = @transform_6, window_bounds = array<i64: 1, 32>}, {transform_indices = @transform_7, window_bounds = array<i64: 16, 32>}]} {
    %c0 = arith.constant 0 : index
    %c0_0 = arith.constant 0 : index
    %0 = vector.load %arg1[%c0, %c0_0] : memref<16x32xf32, #tpu.memory_space<vmem>>, vector<16x32xf32>
    %1 = arith.truncf %0 : vector<16x32xf32> to vector<16x32xbf16>
    %c0_1 = arith.constant 0 : index
    %c0_2 = arith.constant 0 : index
    %2 = vector.load %arg2[%c0_1, %c0_2] : memref<32x64xbf16, #tpu.memory_space<vmem>>, vector<32x64xbf16>
    %cst = arith.constant dense<0.000000e+00> : vector<16x64xf32>
    %3 = tpu.matmul %1, %2, %cst {dimension_numbers = #tpu.dot_dimension_numbers<[1], [0], [0], [1], [0, 0, 1, 1], [], []>} : vector<16x32xbf16>, vector<32x64xbf16>, vector<16x64xf32> -> vector<16x64xf32>
    %c0_3 = arith.constant 0 : index
    %c0_4 = arith.constant 0 : index
    %4 = vector.load %arg3[%c0_3, %c0_4] : memref<1x64xf32, #tpu.memory_space<vmem>>, vector<1x64xf32>
    %5 = vector.broadcast %4 : vector<1x64xf32> to vector<16x64xf32>
    %6 = arith.addf %3, %5 : vector<16x64xf32>
    %cst_5 = arith.constant 0.000000e+00 : f32
    %7 = vector.broadcast %cst_5 : f32 to vector<16x64xf32>
    %8 = arith.maximumf %6, %7 : vector<16x64xf32>
    %9 = arith.truncf %8 : vector<16x64xf32> to vector<16x64xbf16>
    %c0_6 = arith.constant 0 : index
    %c0_7 = arith.constant 0 : index
    %10 = vector.load %arg4[%c0_6, %c0_7] : memref<64x32xbf16, #tpu.memory_space<vmem>>, vector<64x32xbf16>
    %cst_8 = arith.constant dense<0.000000e+00> : vector<16x32xf32>
    %11 = tpu.matmul %9, %10, %cst_8 {dimension_numbers = #tpu.dot_dimension_numbers<[1], [0], [0], [1], [0, 0, 1, 1], [], []>} : vector<16x64xbf16>, vector<64x32xbf16>, vector<16x32xf32> -> vector<16x32xf32>
    %c0_9 = arith.constant 0 : index
    %c0_10 = arith.constant 0 : index
    %12 = vector.load %arg5[%c0_9, %c0_10] : memref<1x32xf32, #tpu.memory_space<vmem>>, vector<1x32xf32>
    %13 = vector.broadcast %12 : vector<1x32xf32> to vector<16x32xf32>
    %14 = arith.addf %11, %13 : vector<16x32xf32>
    %15 = arith.addf %0, %14 : vector<16x32xf32>
    %cst_11 = arith.constant dense<0.000000e+00> : vector<16xf32>
    %16 = vector.multi_reduction <add>, %15, %cst_11 [1] : vector<16x32xf32> to vector<16xf32>
    %17 = vector.shape_cast %16 : vector<16xf32> to vector<16x1xf32>
    %cst_12 = arith.constant 3.200000e+01 : f32
    %18 = vector.broadcast %cst_12 : f32 to vector<16x1xf32>
    %19 = arith.divf %17, %18 : vector<16x1xf32>
    %20 = vector.broadcast %19 : vector<16x1xf32> to vector<16x32xf32>
    %21 = arith.subf %15, %20 : vector<16x32xf32>
    %22 = arith.mulf %21, %21 : vector<16x32xf32>
    %cst_13 = arith.constant dense<0.000000e+00> : vector<16xf32>
    %23 = vector.multi_reduction <add>, %22, %cst_13 [1] : vector<16x32xf32> to vector<16xf32>
    %24 = vector.shape_cast %23 : vector<16xf32> to vector<16x1xf32>
    %cst_14 = arith.constant 3.200000e+01 : f32
    %25 = vector.broadcast %cst_14 : f32 to vector<16x1xf32>
    %26 = arith.divf %24, %25 : vector<16x1xf32>
    %27 = vector.broadcast %19 : vector<16x1xf32> to vector<16x32xf32>
    %28 = arith.subf %15, %27 : vector<16x32xf32>
    %cst_15 = arith.constant 9.99999974E-6 : f32
    %29 = vector.broadcast %cst_15 : f32 to vector<16x1xf32>
    %30 = arith.addf %26, %29 : vector<16x1xf32>
    %31 = math.rsqrt %30 : vector<16x1xf32>
    %32 = vector.broadcast %31 : vector<16x1xf32> to vector<16x32xf32>
    %33 = arith.mulf %28, %32 : vector<16x32xf32>
    %c0_16 = arith.constant 0 : index
    %c0_17 = arith.constant 0 : index
    %34 = vector.load %arg6[%c0_16, %c0_17] : memref<1x32xf32, #tpu.memory_space<vmem>>, vector<1x32xf32>
    %35 = vector.broadcast %34 : vector<1x32xf32> to vector<16x32xf32>
    %36 = arith.mulf %33, %35 : vector<16x32xf32>
    %c0_18 = arith.constant 0 : index
    %c0_19 = arith.constant 0 : index
    %37 = vector.load %arg7[%c0_18, %c0_19] : memref<1x32xf32, #tpu.memory_space<vmem>>, vector<1x32xf32>
    %38 = vector.broadcast %37 : vector<1x32xf32> to vector<16x32xf32>
    %39 = arith.addf %36, %38 : vector<16x32xf32>
    %c0_20 = arith.constant 0 : index
    %c0_21 = arith.constant 0 : index
    %40 = vector.load %arg8[%c0_20, %c0_21] : memref<16x32xf32, #tpu.memory_space<vmem>>, vector<16x32xf32>
    tpu.vector_store %arg8[%c0_20, %c0_21], %39 {strides = array<i32>} : memref<16x32xf32, #tpu.memory_space<vmem>>, vector<16x32xf32>,
    return
  }
  func.func @transform_0(%arg0: i32) -> (i32, i32) {
    %c0_i32 = arith.constant 0 : i32
    %c0_i32_0 = arith.constant 0 : i32
    return %arg0, %c0_i32 : i32, i32
  }
  func.func @transform_1(%arg0: i32) -> (i32, i32) {
    %c0_i32 = arith.constant 0 : i32
    %c0_i32_0 = arith.constant 0 : i32
    %c0_i32_1 = arith.constant 0 : i32
    return %c0_i32, %c0_i32_0 : i32, i32
  }
  func.func @transform_2(%arg0: i32) -> (i32, i32) {
    %c0_i32 = arith.constant 0 : i32
    %c0_i32_0 = arith.constant 0 : i32
    %c0_i32_1 = arith.constant 0 : i32
    return %c0_i32, %c0_i32_0 : i32, i32
  }
  func.func @transform_3(%arg0: i32) -> (i32, i32) {
    %c0_i32 = arith.constant 0 : i32
    %c0_i32_0 = arith.constant 0 : i32
    %c0_i32_1 = arith.constant 0 : i32
    return %c0_i32, %c0_i32_0 : i32, i32
  }
  func.func @transform_4(%arg0: i32) -> (i32, i32) {
    %c0_i32 = arith.constant 0 : i32
    %c0_i32_0 = arith.constant 0 : i32
    %c0_i32_1 = arith.constant 0 : i32
    return %c0_i32, %c0_i32_0 : i32, i32
  }
  func.func @transform_5(%arg0: i32) -> (i32, i32) {
    %c0_i32 = arith.constant 0 : i32
    %c0_i32_0 = arith.constant 0 : i32
    %c0_i32_1 = arith.constant 0 : i32
    return %c0_i32, %c0_i32_0 : i32, i32
  }
  func.func @transform_6(%arg0: i32) -> (i32, i32) {
    %c0_i32 = arith.constant 0 : i32
    %c0_i32_0 = arith.constant 0 : i32
    %c0_i32_1 = arith.constant 0 : i32
    return %c0_i32, %c0_i32_0 : i32, i32
  }
  func.func @transform_7(%arg0: i32) -> (i32, i32) {
    %c0_i32 = arith.constant 0 : i32
    %c0_i32_0 = arith.constant 0 : i32
    return %arg0, %c0_i32 : i32, i32
  }
}

module attributes {stable_mosaic.version = 11 : i64} {
  func.func @_ffn_ln_kernel(%arg0: i32, %arg1: memref<16x32xf32, #tpu.memory_space<vmem>>, %arg2: memref<32x64xbf16, #tpu.memory_space<vmem>>, %arg3: memref<1x64xf32, #tpu.memory_space<vmem>>, %arg4: memref<64x32xbf16, #tpu.memory_space<vmem>>, %arg5: memref<1x32xf32, #tpu.memory_space<vmem>>, %arg6: memref<1x32xf32, #tpu.memory_space<vmem>>, %arg7: memref<1x32xf32, #tpu.memory_space<vmem>>, %arg8: memref<16x32xf32, #tpu.memory_space<vmem>>) attributes {dimension_semantics = [#tpu.dimension_semantics<parallel>], iteration_bounds = array<i64: 1>, scalar_prefetch = 0 : i64, scratch_operands = 0 : i64, tpu.core_type = #tpu.core_type<tc>, window_params = [{transform_indices = @transform_0, window_bounds = array<i64: 16, 32>}, {pipeline_mode = #tpu.pipeline_mode<synchronous>, transform_indices = @transform_1, window_bounds = array<i64: 32, 64>}, {pipeline_mode = #tpu.pipeline_mode<synchronous>, transform_indices = @transform_2, window_bounds = array<i64: 1, 64>}, {pipeline_mode = #tpu.pipeline_mode<synchronous>, transform_indices = @transform_3, window_bounds = array<i64: 64, 32>}, {pipeline_mode = #tpu.pipeline_mode<synchronous>, transform_indices = @transform_4, window_bounds = array<i64: 1, 32>}, {pipeline_mode = #tpu.pipeline_mode<synchronous>, transform_indices = @transform_5, window_bounds = array<i64: 1, 32>}, {pipeline_mode = #tpu.pipeline_mode<synchronous>, transform_indices = @transform_6, window_bounds = array<i64: 1, 32>}, {transform_indices = @transform_7, window_bounds = array<i64: 16, 32>}]} {
    %c0 = arith.constant 0 : index
    %c0_0 = arith.constant 0 : index
    %0 = vector.load %arg1[%c0, %c0_0] : memref<16x32xf32, #tpu.memory_space<vmem>>, vector<16x32xf32>
    %1 = arith.truncf %0 : vector<16x32xf32> to vector<16x32xbf16>
    %c0_1 = arith.constant 0 : index
    %c0_2 = arith.constant 0 : index
    %2 = vector.load %arg2[%c0_1, %c0_2] : memref<32x64xbf16, #tpu.memory_space<vmem>>, vector<32x64xbf16>
    %cst = arith.constant dense<0.000000e+00> : vector<16x64xf32>
    %3 = tpu.matmul %1, %2, %cst {dimension_numbers = #tpu.dot_dimension_numbers<[1], [0], [0], [1], [0, 0, 1, 1], [], []>} : vector<16x32xbf16>, vector<32x64xbf16>, vector<16x64xf32> -> vector<16x64xf32>
    %c0_3 = arith.constant 0 : index
    %c0_4 = arith.constant 0 : index
    %4 = vector.load %arg3[%c0_3, %c0_4] : memref<1x64xf32, #tpu.memory_space<vmem>>, vector<1x64xf32>
    %5 = vector.broadcast %4 : vector<1x64xf32> to vector<16x64xf32>
    %6 = arith.addf %3, %5 : vector<16x64xf32>
    %cst_5 = arith.constant 0.000000e+00 : f32
    %7 = vector.broadcast %cst_5 : f32 to vector<16x64xf32>
    %8 = arith.maximumf %6, %7 : vector<16x64xf32>
    %9 = arith.truncf %8 : vector<16x64xf32> to vector<16x64xbf16>
    %c0_6 = arith.constant 0 : index
    %c0_7 = arith.constant 0 : index
    %10 = vector.load %arg4[%c0_6, %c0_7] : memref<64x32xbf16, #tpu.memory_space<vmem>>, vector<64x32xbf16>
    %cst_8 = arith.constant dense<0.000000e+00> : vector<16x32xf32>
    %11 = tpu.matmul %9, %10, %cst_8 {dimension_numbers = #tpu.dot_dimension_numbers<[1], [0], [0], [1], [0, 0, 1, 1], [], []>} : vector<16x64xbf16>, vector<64x32xbf16>, vector<16x32xf32> -> vector<16x32xf32>
    %c0_9 = arith.constant 0 : index
    %c0_10 = arith.constant 0 : index
    %12 = vector.load %arg5[%c0_9, %c0_10] : memref<1x32xf32, #tpu.memory_space<vmem>>, vector<1x32xf32>
    %13 = vector.broadcast %12 : vector<1x32xf32> to vector<16x32xf32>
    %14 = arith.addf %11, %13 : vector<16x32xf32>
    %15 = arith.addf %0, %14 : vector<16x32xf32>
    %cst_11 = arith.constant dense<0.000000e+00> : vector<16xf32>
    %16 = vector.multi_reduction <add>, %15, %cst_11 [1] : vector<16x32xf32> to vector<16xf32>
    %17 = vector.shape_cast %16 : vector<16xf32> to vector<16x1xf32>
    %cst_12 = arith.constant 3.200000e+01 : f32
    %18 = vector.broadcast %cst_12 : f32 to vector<16x1xf32>
    %19 = arith.divf %17, %18 : vector<16x1xf32>
    %20 = vector.broadcast %19 : vector<16x1xf32> to vector<16x32xf32>
    %21 = arith.subf %15, %20 : vector<16x32xf32>
    %22 = arith.mulf %21, %21 : vector<16x32xf32>
    %cst_13 = arith.constant dense<0.000000e+00> : vector<16xf32>
    %23 = vector.multi_reduction <add>, %22, %cst_13 [1] : vector<16x32xf32> to vector<16xf32>
    %24 = vector.shape_cast %23 : vector<16xf32> to vector<16x1xf32>
    %cst_14 = arith.constant 3.200000e+01 : f32
    %25 = vector.broadcast %cst_14 : f32 to vector<16x1xf32>
    %26 = arith.divf %24, %25 : vector<16x1xf32>
    %27 = vector.broadcast %19 : vector<16x1xf32> to vector<16x32xf32>
    %28 = arith.subf %15, %27 : vector<16x32xf32>
    %cst_15 = arith.constant 9.99999974E-6 : f32
    %29 = vector.broadcast %cst_15 : f32 to vector<16x1xf32>
    %30 = arith.addf %26, %29 : vector<16x1xf32>
    %31 = math.rsqrt %30 : vector<16x1xf32>
    %32 = vector.broadcast %31 : vector<16x1xf32> to vector<16x32xf32>
    %33 = arith.mulf %28, %32 : vector<16x32xf32>
    %c0_16 = arith.constant 0 : index
    %c0_17 = arith.constant 0 : index
    %34 = vector.load %arg6[%c0_16, %c0_17] : memref<1x32xf32, #tpu.memory_space<vmem>>, vector<1x32xf32>
    %35 = vector.broadcast %34 : vector<1x32xf32> to vector<16x32xf32>
    %36 = arith.mulf %33, %35 : vector<16x32xf32>
    %c0_18 = arith.constant 0 : index
    %c0_19 = arith.constant 0 : index
    %37 = vector.load %arg7[%c0_18, %c0_19] : memref<1x32xf32, #tpu.memory_space<vmem>>, vector<1x32xf32>
    %38 = vector.broadcast %37 : vector<1x32xf32> to vector<16x32xf32>
    %39 = arith.addf %36, %38 : vector<16x32xf32>
    %c0_20 = arith.constant 0 : index
    %c0_21 = arith.constant 0 : index
    %40 = vector.load %arg8[%c0_20, %c0_21] : memref<16x32xf32, #tpu.memory_space<vmem>>, vector<16x32xf32>
    tpu.vector_store %arg8[%c0_20, %c0_21], %39 {strides = array<i32>} : memref<16x32xf32, #tpu.memory_space<vmem>>, vector<16x32xf32>,
    return
  }
  func.func @transform_0(%arg0: i32) -> (i32, i32) {
    %c0_i32 = arith.constant 0 : i32
    %c0_i32_0 = arith.constant 0 : i32
    return %arg0, %c0_i32 : i32, i32
  }
  func.func @transform_1(%arg0: i32) -> (i32, i32) {
    %c0_i32 = arith.constant 0 : i32
    %c0_i32_0 = arith.constant 0 : i32
    %c0_i32_1 = arith.constant 0 : i32
    return %c0_i32, %c0_i32_0 : i32, i32
  }
  func.func @transform_2(%arg0: i32) -> (i32, i32) {
    %c0_i32 = arith.constant 0 : i32
    %c0_i32_0 = arith.constant 0 : i32
    %c0_i32_1 = arith.constant 0 : i32
    return %c0_i32, %c0_i32_0 : i32, i32
  }
  func.func @transform_3(%arg0: i32) -> (i32, i32) {
    %c0_i32 = arith.constant 0 : i32
    %c0_i32_0 = arith.constant 0 : i32
    %c0_i32_1 = arith.constant 0 : i32
    return %c0_i32, %c0_i32_0 : i32, i32
  }
  func.func @transform_4(%arg0: i32) -> (i32, i32) {
    %c0_i32 = arith.constant 0 : i32
    %c0_i32_0 = arith.constant 0 : i32
    %c0_i32_1 = arith.constant 0 : i32
    return %c0_i32, %c0_i32_0 : i32, i32
  }
  func.func @transform_5(%arg0: i32) -> (i32, i32) {
    %c0_i32 = arith.constant 0 : i32
    %c0_i32_0 = arith.constant 0 : i32
    %c0_i32_1 = arith.constant 0 : i32
    return %c0_i32, %c0_i32_0 : i32, i32
  }
  func.func @transform_6(%arg0: i32) -> (i32, i32) {
    %c0_i32 = arith.constant 0 : i32
    %c0_i32_0 = arith.constant 0 : i32
    %c0_i32_1 = arith.constant 0 : i32
    return %c0_i32, %c0_i32_0 : i32, i32
  }
  func.func @transform_7(%arg0: i32) -> (i32, i32) {
    %c0_i32 = arith.constant 0 : i32
    %c0_i32_0 = arith.constant 0 : i32
    return %arg0, %c0_i32 : i32, i32
  }
}

module attributes {stable_mosaic.version = 11 : i64} {
  func.func @_linear_kernel(%arg0: i32, %arg1: memref<2x32xf32, #tpu.memory_space<vmem>>, %arg2: memref<32x1xbf16, #tpu.memory_space<vmem>>, %arg3: memref<1x1xf32, #tpu.memory_space<vmem>>, %arg4: memref<2x1xf32, #tpu.memory_space<vmem>>) attributes {dimension_semantics = [#tpu.dimension_semantics<parallel>], iteration_bounds = array<i64: 1>, scalar_prefetch = 0 : i64, scratch_operands = 0 : i64, tpu.core_type = #tpu.core_type<tc>, window_params = [{transform_indices = @transform_0, window_bounds = array<i64: 2, 32>}, {pipeline_mode = #tpu.pipeline_mode<synchronous>, transform_indices = @transform_1, window_bounds = array<i64: 32, 1>}, {pipeline_mode = #tpu.pipeline_mode<synchronous>, transform_indices = @transform_2, window_bounds = array<i64: 1, 1>}, {transform_indices = @transform_3, window_bounds = array<i64: 2, 1>}]} {
    %c0 = arith.constant 0 : index
    %c0_0 = arith.constant 0 : index
    %0 = vector.load %arg1[%c0, %c0_0] : memref<2x32xf32, #tpu.memory_space<vmem>>, vector<2x32xf32>
    %1 = arith.truncf %0 : vector<2x32xf32> to vector<2x32xbf16>
    %c0_1 = arith.constant 0 : index
    %c0_2 = arith.constant 0 : index
    %2 = vector.load %arg2[%c0_1, %c0_2] : memref<32x1xbf16, #tpu.memory_space<vmem>>, vector<32x1xbf16>
    %cst = arith.constant dense<0.000000e+00> : vector<2x1xf32>
    %3 = tpu.matmul %1, %2, %cst {dimension_numbers = #tpu.dot_dimension_numbers<[1], [0], [0], [1], [0, 0, 1, 1], [], []>} : vector<2x32xbf16>, vector<32x1xbf16>, vector<2x1xf32> -> vector<2x1xf32>
    %c0_3 = arith.constant 0 : index
    %c0_4 = arith.constant 0 : index
    %4 = vector.load %arg3[%c0_3, %c0_4] : memref<1x1xf32, #tpu.memory_space<vmem>>, vector<1x1xf32>
    %5 = vector.broadcast %4 : vector<1x1xf32> to vector<2x1xf32>
    %6 = arith.addf %3, %5 : vector<2x1xf32>
    %c0_5 = arith.constant 0 : index
    %c0_6 = arith.constant 0 : index
    %7 = vector.load %arg4[%c0_5, %c0_6] : memref<2x1xf32, #tpu.memory_space<vmem>>, vector<2x1xf32>
    tpu.vector_store %arg4[%c0_5, %c0_6], %6 {strides = array<i32>} : memref<2x1xf32, #tpu.memory_space<vmem>>, vector<2x1xf32>,
    return
  }
  func.func @transform_0(%arg0: i32) -> (i32, i32) {
    %c0_i32 = arith.constant 0 : i32
    %c0_i32_0 = arith.constant 0 : i32
    return %arg0, %c0_i32 : i32, i32
  }
  func.func @transform_1(%arg0: i32) -> (i32, i32) {
    %c0_i32 = arith.constant 0 : i32
    %c0_i32_0 = arith.constant 0 : i32
    %c0_i32_1 = arith.constant 0 : i32
    return %c0_i32, %c0_i32_0 : i32, i32
  }
  func.func @transform_2(%arg0: i32) -> (i32, i32) {
    %c0_i32 = arith.constant 0 : i32
    %c0_i32_0 = arith.constant 0 : i32
    %c0_i32_1 = arith.constant 0 : i32
    return %c0_i32, %c0_i32_0 : i32, i32
  }
  func.func @transform_3(%arg0: i32) -> (i32, i32) {
    %c0_i32 = arith.constant 0 : i32
    %c0_i32_0 = arith.constant 0 : i32
    return %arg0, %c0_i32 : i32, i32
  }
}

</mosaic_0001>

<bundles_post_ra>
// kernel: model_forward.10
= control target key start
LH: loop header
LB: loop body
LE: loop exit
PB: predicated region body
PF: predicated region fallthrough
CT: control target
= control target key end

     0   :  { %v98_v0 = vmov 0.0   ;;  %vm99_vm0 = vmmov 0   ;;  %vm33_vm1 = vcmask 130048   ;;  %s138_s1 = inlined_call_operand.vmem [shape: bf16[16,128], index: 1, kind: input, shape index: {}]   ;;  %s139_s0 = inlined_call_operand.vmem [shape: f32[16,16], index: 0, kind: input, shape index: {}]   ;;  %s140_s2 = inlined_call_operand.vmem [shape: f32[1,128], index: 2, kind: input, shape index: {}]   ;;  %s141_s3 = inlined_call_operand.vmem [shape: f32[16,128], index: 3, kind: output, shape index: {}]  }
   0x1   :  { %89 = vmatprep.subr.bf16.mxu0 %v98_v0  ;;  %v97_v1 = vld [vmem:[%s138_s1] sm:$0xff]   ;;  %91 = vmatprep.mubr.msk.bf16.mxu0 %vm99_vm0, %v98_v0  ;;  %v16_v3 = vld [vmem:[%s139_s0 + $0x8] sm:$0xff] }
   0x2   :  { %v15_v2 = vld [vmem:[%s139_s0] sm:$0xff]  ;;  %90 = vmatpush3.bf16.msra.mxu0 %v97_v1 }
   0x3   :  { %v17_v4 = vpack.c.bf16 %v16_v3, %v15_v2  ;;  %v84_v5 = vld [vmem:[%s140_s2] ss:$0 sm:$0xff] }
   0x5   :  { %92 = vmatmul.mubr.msk.bf16.vlgmr.msra.gmra.mrb[0].mxu0 %vm33_vm1, %v17_v4 }
  0xd8   :  { %v71_v6 = vpop.f32.mrb[0].mxu0 }
  0xd9   :  { %v72_v7 = vadd.f32 %v84_v5, %v71_v6  ;;  %v93_v8 = vpop.f32.mrb[1].mxu0 }
  0xda   :  { %v74_v9 = vpop.f32.mrb[2].mxu0 }
  0xdb   :  { %78 = vst [vmem:[%s141_s3] sm:$0xff] %v72_v7  ;;  %v75_v10 = vadd.f32 %v84_v5, %v74_v9  ;;  %v94_v11 = vpop.f32.mrb[3].mxu0 }
  0xdd   :  { %79 = vst [vmem:[%s141_s3 + $0x8] sm:$0xff] %v75_v10 }

// kernel: model_forward.12
= control target key start
LH: loop header
LB: loop body
LE: loop exit
PB: predicated region body
PF: predicated region fallthrough
CT: control target
= control target key end

     0   :  { %v111_v0 = vmov 0.0   ;;  %vm112_vm0 = vmmov 0   ;;  %vm41_vm1 = vcmask 261120   ;;  %s154_s1 = inlined_call_operand.vmem [shape: bf16[32,128], index: 1, kind: input, shape index: {}]   ;;  %s155_s0 = inlined_call_operand.vmem [shape: f32[16,32], index: 0, kind: input, shape index: {}]   ;;  %s156_s2 = inlined_call_operand.vmem [shape: f32[1,128], index: 2, kind: input, shape index: {}]   ;;  %s157_s3 = inlined_call_operand.vmem [shape: f32[16,128], index: 3, kind: output, shape index: {}]  }
   0x1   :  { %99 = vmatprep.subr.bf16.mxu0 %v111_v0  ;;  %v109_v1 = vld [vmem:[%s154_s1] sm:$0xff]   ;;  %103 = vmatprep.mubr.msk.bf16.mxu0 %vm112_vm0, %v111_v0  ;;  %v110_v2 = vld [vmem:[%s154_s1 + $0x8] sm:$0xff]  }
   0x2   :  { %100 = vmatpush3.bf16.msra.mxu0 %v109_v1  ;;  %v15_v3 = vld [vmem:[%s155_s0] sm:$0xff]  ;;  %v16_v4 = vld [vmem:[%s155_s0 + $0x8] sm:$0xff] }
   0x3   :  { %101 = vmatprep.subr.bf16.mxu0 %v111_v0  ;;  %v17_v5 = vpack.c.bf16 %v16_v4, %v15_v3  ;;  %v92_v6 = vld [vmem:[%s156_s2] ss:$0 sm:$0xff] }
   0x6   :  { %102 = vmatpush3.bf16.msra.mxu0 %v110_v2 }
   0x9   :  { %104 = vmatmul.mubr.msk.bf16.vlgmr.msra.gmra.mrb[0].mxu0 %vm41_vm1, %v17_v5 }
  0xdc   :  { %v79_v7 = vpop.f32.mrb[0].mxu0 }
  0xdd   :  { %v80_v8 = vadd.f32 %v92_v6, %v79_v7  ;;  %v105_v9 = vpop.f32.mrb[1].mxu0 }
  0xde   :  { %v82_v10 = vpop.f32.mrb[2].mxu0 }
  0xdf   :  { %86 = vst [vmem:[%s157_s3] sm:$0xff] %v80_v8  ;;  %v83_v11 = vadd.f32 %v92_v6, %v82_v10  ;;  %v106_v12 = vpop.f32.mrb[3].mxu0 }
  0xe1   :  { %87 = vst [vmem:[%s157_s3 + $0x8] sm:$0xff] %v83_v11 }

// kernel: model_forward.11
= control target key start
LH: loop header
LB: loop body
LE: loop exit
PB: predicated region body
PF: predicated region fallthrough
CT: control target
= control target key end

     0   :  { %vm16_vm0 = vcmask 254976   ;;  %v942_v0 = vmov 0.0   ;;  %vm943_vm1 = vmmov 0   ;;  %vm39_vm2 = vcmask 261120   ;;  %s944_s14 = smov 64   ;;  %s945_s15 = smov 32   ;;  %s1152_s1 = inlined_call_operand.vmem [shape: bf16[32,128], index: 1, kind: input, shape index: {}]   ;;  %s1153_s0 = inlined_call_operand.vmem [shape: f32[8,2,128], index: 0, kind: input, shape index: {}]   ;;  %s1154_s2 = inlined_call_operand.vmem [shape: f32[8,2,32], index: 2, kind: output, shape index: {}]  }
   0x1   :  { %807 = vmatprep.subr.bf16.mxu0 %v942_v0  ;;  %v966_v1 = vld [vmem:[%s1152_s1] sm:$0xff]   ;;  %811 = vmatprep.mubr.msk.bf16.mxu0 %vm943_vm1, %v942_v0  ;;  %17 = vst.msk [vmem:[#allocation2] sm:$0x3] %vm16_vm0, %v942_v0  ;;  %18 = vst.msk [vmem:[#allocation3] sm:$0x3] %vm16_vm0, %v942_v0  ;;  %v981_v2 = vld [vmem:[%s1152_s1 + $0x8] sm:$0xff]  }
   0x2   :  { %815 = vmatprep.subr.bf16.mxu1 %v942_v0  ;;  %819 = vmatprep.mubr.msk.bf16.mxu1 %vm943_vm1, %v942_v0  ;;  %v25_v5 = vld [vmem:[%s1153_s0] sm:$0x3]  ;;  %s946_s16 = smov 96   ;;  %v755_v31 = vld [vmem:[%s1153_s0 + $0x2] sm:$0x3] }
   0x3   :  { %808 = vmatpush3.bf16.msra.mxu0 %v966_v1  ;;  %816 = vmatpush3.bf16.msra.mxu1 %v966_v1  ;;  %v759_v56 = vld [vmem:[%s1153_s0 + $0x4] sm:$0x3] }
   0x4   :  { %809 = vmatprep.subr.bf16.mxu0 %v942_v0  ;;  %817 = vmatprep.subr.bf16.mxu1 %v942_v0 }
   0x7   :  { %810 = vmatpush3.bf16.msra.mxu0 %v981_v2  ;;  %818 = vmatpush3.bf16.msra.mxu1 %v981_v2 }
   0x8   :  { %v23_v3 = vld [vmem:[#allocation2] sm:$0x3]  ;;  %823 = vmatprep.subr.bf16.mxu0 %v942_v0  ;;  %831 = vmatprep.subr.bf16.mxu1 %v942_v0  ;;  %v24_v12 = vld [vmem:[#allocation3] sm:$0x3] }
   0x9   :  { %v26_v4 = vpack.c.bf16 %v23_v3, %v23_v3 }
   0xb   :  { %812 = vmatmul.mubr.msk.bf16.vlgmr.msra.gmra.mrb[0].mxu0 %vm39_vm2, %v26_v4 }
   0xc   :  { %824 = vmatpush3.bf16.msra.mxu0 %v966_v1  ;;  %827 = vmatprep.mubr.msk.bf16.mxu0 %vm943_vm1, %v942_v0 }
   0xd   :  { %825 = vmatprep.subr.bf16.mxu0 %v942_v0 }
  0x10   :  { %826 = vmatpush3.bf16.msra.mxu0 %v981_v2 }
  0x11   :  { %839 = vmatprep.subr.bf16.mxu0 %v942_v0 }
  0xde   :  { %v77_v6 = vpop.f32.mrb[0].mxu0 }
  0xdf   :  { %v83_v7 = vadd.f32 %v77_v6, %v25_v5  ;;  %v813_v8 = vpop.f32.mrb[1].mxu0 }
  0xe0   :  { %v80_v9 = vpop.f32.mrb[2].mxu0 }
  0xe1   :  { %878 = vtanh.f32 %v83_v7  ;;  %v814_v10 = vpop.f32.mrb[3].mxu0  ;;  %v754_v13 = vmul.f32 -1.442695, %v83_v7 }
  0xe3   :  { %880 = vpow2.f32 %v754_v13 }
  0xeb   :  { %v879_v11 = vpop.eup %878 }
  0xec   :  { %97 = vrot.lane.b32.xlu0 %v879_v11, %s944_s14 }
  0xed   :  { %v881_v14 = vpop.eup %880 }
  0xee   :  { %v87_v15 = vadd.f32 1.0, %v881_v14 }
  0xf0   :  { %92 = vrot.lane.b32.xlu0 %v24_v12, %s945_s15  ;;  %882 = vrcp.f32 %v87_v15 }
  0xfa   :  { %v883_v16 = vpop.eup %882 }
 0x15e   :  { %v98_v17 = vpop.permute.xlu0 %97 }
 0x15f   :  { %v100_v18 = vmul.f32 %v883_v16, %v98_v17 }
 0x161   :  { %102 = vrot.lane.b32.xlu1 %v100_v18, %s945_s15 }
 0x162   :  { %v93_v19 = vpop.permute.xlu0 %92 }
 0x163   :  { %v95_v20 = vmul.f32 %v883_v16, %v93_v19 }
 0x1d3   :  { %v103_v21 = vpop.permute.xlu1 %102 }
 0x1d4   :  { %v105_v22 = vadd.f32 %v103_v21, %v95_v20  ;;  %v763_v20 = vld [vmem:[%s1153_s0 + $0x6] sm:$0x3] }
 0x1d6   :  { %884 = vtanh.f32 %v105_v22 }
 0x1e0   :  { %v885_v23 = vpop.eup %884 }
 0x1e1   :  { %108 = vrot.lane.b32.xlu1 %v885_v23, %s944_s14 }
 0x1e5   :  { %113 = vrot.lane.b32.xlu1 %v105_v22, %s946_s16 }
 0x253   :  { %v109_v24 = vpop.permute.xlu1 %108 }
 0x254   :  { %v111_v25 = vmul.f32 %v883_v16, %v109_v24 }
 0x256   :  { %119 = vrot.lane.b32.xlu0 %v111_v25, %s945_s15 }
 0x257   :  { %v114_v26 = vpop.permute.xlu1 %113 }
 0x258   :  { %117 = vst.msk [vmem:[#allocation3] sm:$0x3] %vm16_vm0, %v114_v26 }
 0x25f   :  { %v125_v27 = vld [vmem:[#allocation3] sm:$0x3] }
 0x260   :  { %181 = vrot.lane.b32.xlu1 %v125_v27, %s945_s15 }
 0x2c8   :  { %v120_v28 = vpop.permute.xlu0 %119 }
 0x2c9   :  { %122 = vst.msk [vmem:[#allocation2] sm:$0x3] %vm16_vm0, %v120_v28  ;;  %123 = vst.msk [vmem:[%s1154_s2] sm:$0x3] %vm16_vm0, %v120_v28 }
 0x2d0   :  { %v124_v29 = vld [vmem:[#allocation2] sm:$0x3] }
 0x2d1   :  { %v128_v30 = vpack.c.bf16 %v124_v29, %v124_v29 }
 0x2d2   :  { %v182_v44 = vpop.permute.xlu1 %181 }
 0x2d3   :  { %820 = vmatmul.mubr.msk.bf16.vlgmr.msra.gmra.mrb[0].mxu1 %vm39_vm2, %v128_v30 }
 0x2d4   :  { %832 = vmatpush3.bf16.msra.mxu1 %v966_v1  ;;  %835 = vmatprep.mubr.msk.bf16.mxu1 %vm943_vm1, %v942_v0 }
 0x2d5   :  { %833 = vmatprep.subr.bf16.mxu1 %v942_v0 }
 0x2d8   :  { %834 = vmatpush3.bf16.msra.mxu1 %v981_v2 }
 0x2d9   :  { %847 = vmatprep.subr.bf16.mxu1 %v942_v0 }
 0x3a6   :  { %v166_v32 = vpop.f32.mrb[0].mxu1 }
 0x3a7   :  { %v172_v33 = vadd.f32 %v755_v31, %v166_v32  ;;  %v821_v34 = vpop.f32.mrb[1].mxu1 }
 0x3a8   :  { %v169_v35 = vpop.f32.mrb[2].mxu1 }
 0x3a9   :  { %886 = vtanh.f32 %v172_v33  ;;  %v822_v36 = vpop.f32.mrb[3].mxu1  ;;  %v757_v38 = vmul.f32 -1.442695, %v172_v33 }
 0x3ab   :  { %888 = vpow2.f32 %v757_v38 }
 0x3b3   :  { %v887_v37 = vpop.eup %886 }
 0x3b4   :  { %186 = vrot.lane.b32.xlu0 %v887_v37, %s944_s14 }
 0x3b5   :  { %v889_v39 = vpop.eup %888 }
 0x3b6   :  { %v176_v40 = vadd.f32 1.0, %v889_v39 }
 0x3b8   :  { %890 = vrcp.f32 %v176_v40 }
 0x3c2   :  { %v891_v41 = vpop.eup %890 }
 0x3c3   :  { %v184_v45 = vmul.f32 %v891_v41, %v182_v44 }
 0x426   :  { %v187_v42 = vpop.permute.xlu0 %186 }
 0x427   :  { %v189_v43 = vmul.f32 %v891_v41, %v187_v42 }
 0x429   :  { %191 = vrot.lane.b32.xlu0 %v189_v43, %s945_s15 }
 0x49b   :  { %v192_v46 = vpop.permute.xlu0 %191 }
 0x49c   :  { %v194_v47 = vadd.f32 %v192_v46, %v184_v45  ;;  %v767_v45 = vld [vmem:[%s1153_s0 + $0x8] sm:$0x3] }
 0x49e   :  { %892 = vtanh.f32 %v194_v47 }
 0x4a8   :  { %v893_v48 = vpop.eup %892 }
 0x4a9   :  { %197 = vrot.lane.b32.xlu1 %v893_v48, %s944_s14 }
 0x4ad   :  { %202 = vrot.lane.b32.xlu1 %v194_v47, %s946_s16 }
 0x51b   :  { %v198_v49 = vpop.permute.xlu1 %197 }
 0x51c   :  { %v200_v50 = vmul.f32 %v891_v41, %v198_v49 }
 0x51e   :  { %207 = vrot.lane.b32.xlu0 %v200_v50, %s945_s15 }
 0x51f   :  { %v203_v51 = vpop.permute.xlu1 %202 }
 0x520   :  { %205 = vst.msk [vmem:[#allocation3] sm:$0x3] %vm16_vm0, %v203_v51 }
 0x527   :  { %v214_v52 = vld [vmem:[#allocation3] sm:$0x3] }
 0x528   :  { %270 = vrot.lane.b32.xlu1 %v214_v52, %s945_s15 }
 0x590   :  { %v208_v53 = vpop.permute.xlu0 %207 }
 0x591   :  { %210 = vst.msk [vmem:[#allocation2] sm:$0x3] %vm16_vm0, %v208_v53  ;;  %758 = vst.msk [vmem:[%s1154_s2 + $0x2] sm:$0x3] %vm16_vm0, %v208_v53 }
 0x598   :  { %v213_v54 = vld [vmem:[#allocation2] sm:$0x3] }
 0x599   :  { %v217_v55 = vpack.c.bf16 %v213_v54, %v213_v54 }
 0x59a   :  { %v271_v8 = vpop.permute.xlu1 %270 }
 0x59b   :  { %828 = vmatmul.mubr.msk.bf16.vlgmr.msra.gmra.mrb[4].mxu0 %vm39_vm2, %v217_v55 }
 0x59c   :  { %840 = vmatpush3.bf16.msra.mxu0 %v966_v1  ;;  %843 = vmatprep.mubr.msk.bf16.mxu0 %vm943_vm1, %v942_v0 }
 0x59d   :  { %841 = vmatprep.subr.bf16.mxu0 %v942_v0 }
 0x5a0   :  { %842 = vmatpush3.bf16.msra.mxu0 %v981_v2 }
 0x5a1   :  { %855 = vmatprep.subr.bf16.mxu0 %v942_v0 }
 0x66e   :  { %v255_v57 = vpop.f32.mrb[4].mxu0 }
 0x66f   :  { %v261_v58 = vadd.f32 %v759_v56, %v255_v57  ;;  %v829_v59 = vpop.f32.mrb[5].mxu0 }
 0x670   :  { %v258_v60 = vpop.f32.mrb[6].mxu0 }
 0x671   :  { %894 = vtanh.f32 %v261_v58  ;;  %v830_v61 = vpop.f32.mrb[7].mxu0  ;;  %v761_v63 = vmul.f32 -1.442695, %v261_v58 }
 0x673   :  { %896 = vpow2.f32 %v761_v63 }
 0x67b   :  { %v895_v62 = vpop.eup %894 }
 0x67c   :  { %275 = vrot.lane.b32.xlu0 %v895_v62, %s944_s14 }
 0x67d   :  { %v897_v3 = vpop.eup %896 }
 0x67e   :  { %v265_v4 = vadd.f32 1.0, %v897_v3 }
 0x680   :  { %898 = vrcp.f32 %v265_v4 }
 0x68a   :  { %v899_v5 = vpop.eup %898 }
 0x68b   :  { %v273_v9 = vmul.f32 %v899_v5, %v271_v8 }
 0x6ee   :  { %v276_v6 = vpop.permute.xlu0 %275 }
 0x6ef   :  { %v278_v7 = vmul.f32 %v899_v5, %v276_v6 }
 0x6f1   :  { %280 = vrot.lane.b32.xlu0 %v278_v7, %s945_s15 }
 0x763   :  { %v281_v10 = vpop.permute.xlu0 %280 }
 0x764   :  { %v283_v11 = vadd.f32 %v281_v10, %v273_v9  ;;  %v771_v9 = vld [vmem:[%s1153_s0 + $0xa] sm:$0x3] }
 0x766   :  { %900 = vtanh.f32 %v283_v11 }
 0x770   :  { %v901_v12 = vpop.eup %900 }
 0x771   :  { %286 = vrot.lane.b32.xlu1 %v901_v12, %s944_s14 }
 0x775   :  { %291 = vrot.lane.b32.xlu1 %v283_v11, %s946_s16 }
 0x7e3   :  { %v287_v13 = vpop.permute.xlu1 %286 }
 0x7e4   :  { %v289_v14 = vmul.f32 %v899_v5, %v287_v13 }
 0x7e6   :  { %296 = vrot.lane.b32.xlu0 %v289_v14, %s945_s15 }
 0x7e7   :  { %v292_v15 = vpop.permute.xlu1 %291 }
 0x7e8   :  { %294 = vst.msk [vmem:[#allocation3] sm:$0x3] %vm16_vm0, %v292_v15 }
 0x7ef   :  { %v303_v16 = vld [vmem:[#allocation3] sm:$0x3] }
 0x7f0   :  { %359 = vrot.lane.b32.xlu1 %v303_v16, %s945_s15 }
 0x858   :  { %v297_v17 = vpop.permute.xlu0 %296 }
 0x859   :  { %299 = vst.msk [vmem:[#allocation2] sm:$0x3] %vm16_vm0, %v297_v17  ;;  %762 = vst.msk [vmem:[%s1154_s2 + $0x4] sm:$0x3] %vm16_vm0, %v297_v17 }
 0x860   :  { %v302_v18 = vld [vmem:[#allocation2] sm:$0x3] }
 0x861   :  { %v306_v19 = vpack.c.bf16 %v302_v18, %v302_v18 }
 0x862   :  { %v360_v33 = vpop.permute.xlu1 %359 }
 0x863   :  { %836 = vmatmul.mubr.msk.bf16.vlgmr.msra.gmra.mrb[4].mxu1 %vm39_vm2, %v306_v19 }
 0x864   :  { %848 = vmatpush3.bf16.msra.mxu1 %v966_v1  ;;  %851 = vmatprep.mubr.msk.bf16.mxu1 %vm943_vm1, %v942_v0 }
 0x865   :  { %849 = vmatprep.subr.bf16.mxu1 %v942_v0 }
 0x868   :  { %850 = vmatpush3.bf16.msra.mxu1 %v981_v2 }
 0x869   :  { %863 = vmatprep.subr.bf16.mxu1 %v942_v0 }
 0x936   :  { %v344_v21 = vpop.f32.mrb[4].mxu1 }
 0x937   :  { %v350_v22 = vadd.f32 %v763_v20, %v344_v21  ;;  %v837_v23 = vpop.f32.mrb[5].mxu1 }
 0x938   :  { %v347_v24 = vpop.f32.mrb[6].mxu1 }
 0x939   :  { %902 = vtanh.f32 %v350_v22  ;;  %v838_v25 = vpop.f32.mrb[7].mxu1  ;;  %v765_v27 = vmul.f32 -1.442695, %v350_v22 }
 0x93b   :  { %904 = vpow2.f32 %v765_v27 }
 0x943   :  { %v903_v26 = vpop.eup %902 }
 0x944   :  { %364 = vrot.lane.b32.xlu0 %v903_v26, %s944_s14 }
 0x945   :  { %v905_v28 = vpop.eup %904 }
 0x946   :  { %v354_v29 = vadd.f32 1.0, %v905_v28 }
 0x948   :  { %906 = vrcp.f32 %v354_v29 }
 0x952   :  { %v907_v30 = vpop.eup %906 }
 0x953   :  { %v362_v34 = vmul.f32 %v907_v30, %v360_v33 }
 0x9b6   :  { %v365_v31 = vpop.permute.xlu0 %364 }
 0x9b7   :  { %v367_v32 = vmul.f32 %v907_v30, %v365_v31  ;;  %v775_v31 = vld [vmem:[%s1153_s0 + $0xc] sm:$0x3] }
 0x9b9   :  { %369 = vrot.lane.b32.xlu0 %v367_v32, %s945_s15 }
 0xa2b   :  { %v370_v35 = vpop.permute.xlu0 %369 }
 0xa2c   :  { %v372_v36 = vadd.f32 %v370_v35, %v362_v34 }
 0xa2e   :  { %908 = vtanh.f32 %v372_v36 }
 0xa38   :  { %v909_v37 = vpop.eup %908 }
 0xa39   :  { %375 = vrot.lane.b32.xlu1 %v909_v37, %s944_s14 }
 0xa3d   :  { %380 = vrot.lane.b32.xlu1 %v372_v36, %s946_s16 }
 0xaab   :  { %v376_v38 = vpop.permute.xlu1 %375 }
 0xaac   :  { %v378_v39 = vmul.f32 %v907_v30, %v376_v38 }
 0xaae   :  { %385 = vrot.lane.b32.xlu0 %v378_v39, %s945_s15 }
 0xaaf   :  { %v381_v40 = vpop.permute.xlu1 %380 }
 0xab0   :  { %383 = vst.msk [vmem:[#allocation3] sm:$0x3] %vm16_vm0, %v381_v40 }
 0xab7   :  { %v392_v41 = vld [vmem:[#allocation3] sm:$0x3] }
 0xab8   :  { %448 = vrot.lane.b32.xlu1 %v392_v41, %s945_s15 }
 0xb20   :  { %v386_v42 = vpop.permute.xlu0 %385 }
 0xb21   :  { %388 = vst.msk [vmem:[#allocation2] sm:$0x3] %vm16_vm0, %v386_v42  ;;  %766 = vst.msk [vmem:[%s1154_s2 + $0x6] sm:$0x3] %vm16_vm0, %v386_v42 }
 0xb28   :  { %v391_v43 = vld [vmem:[#allocation2] sm:$0x3] }
 0xb29   :  { %v395_v44 = vpack.c.bf16 %v391_v43, %v391_v43 }
 0xb2a   :  { %v449_v58 = vpop.permute.xlu1 %448 }
 0xb2b   :  { %844 = vmatmul.mubr.msk.bf16.vlgmr.msra.gmra.mrb[8].mxu0 %vm39_vm2, %v395_v44 }
 0xb2c   :  { %856 = vmatpush3.bf16.msra.mxu0 %v966_v1  ;;  %859 = vmatprep.mubr.msk.bf16.mxu0 %vm943_vm1, %v942_v0 }
 0xb2d   :  { %857 = vmatprep.subr.bf16.mxu0 %v942_v0 }
 0xb30   :  { %858 = vmatpush3.bf16.msra.mxu0 %v981_v2 }
 0xbfe   :  { %v433_v46 = vpop.f32.mrb[8].mxu0 }
 0xbff   :  { %v439_v47 = vadd.f32 %v767_v45, %v433_v46  ;;  %v845_v48 = vpop.f32.mrb[9].mxu0 }
 0xc00   :  { %v436_v49 = vpop.f32.mrb[10].mxu0 }
 0xc01   :  { %910 = vtanh.f32 %v439_v47  ;;  %v846_v50 = vpop.f32.mrb[11].mxu0  ;;  %v769_v52 = vmul.f32 -1.442695, %v439_v47 }
 0xc03   :  { %912 = vpow2.f32 %v769_v52 }
 0xc0b   :  { %v911_v51 = vpop.eup %910 }
 0xc0c   :  { %453 = vrot.lane.b32.xlu0 %v911_v51, %s944_s14 }
 0xc0d   :  { %v913_v53 = vpop.eup %912 }
 0xc0e   :  { %v443_v54 = vadd.f32 1.0, %v913_v53 }
 0xc10   :  { %914 = vrcp.f32 %v443_v54 }
 0xc1a   :  { %v915_v55 = vpop.eup %914 }
 0xc1b   :  { %v451_v59 = vmul.f32 %v915_v55, %v449_v58 }
 0xc7e   :  { %v454_v56 = vpop.permute.xlu0 %453 }
 0xc7f   :  { %v456_v57 = vmul.f32 %v915_v55, %v454_v56  ;;  %v779_v56 = vld [vmem:[%s1153_s0 + $0xe] sm:$0x3] }
 0xc81   :  { %458 = vrot.lane.b32.xlu0 %v456_v57, %s945_s15 }
 0xcf3   :  { %v459_v60 = vpop.permute.xlu0 %458 }
 0xcf4   :  { %v461_v61 = vadd.f32 %v459_v60, %v451_v59 }
 0xcf6   :  { %916 = vtanh.f32 %v461_v61 }
 0xd00   :  { %v917_v62 = vpop.eup %916 }
 0xd01   :  { %464 = vrot.lane.b32.xlu1 %v917_v62, %s944_s14 }
 0xd05   :  { %469 = vrot.lane.b32.xlu1 %v461_v61, %s946_s16 }
 0xd73   :  { %v465_v63 = vpop.permute.xlu1 %464 }
 0xd74   :  { %v467_v3 = vmul.f32 %v915_v55, %v465_v63 }
 0xd76   :  { %474 = vrot.lane.b32.xlu0 %v467_v3, %s945_s15 }
 0xd77   :  { %v470_v4 = vpop.permute.xlu1 %469 }
 0xd78   :  { %472 = vst.msk [vmem:[#allocation3] sm:$0x3] %vm16_vm0, %v470_v4 }
 0xd7f   :  { %v481_v5 = vld [vmem:[#allocation3] sm:$0x3] }
 0xd80   :  { %537 = vrot.lane.b32.xlu1 %v481_v5, %s945_s15 }
 0xde8   :  { %v475_v6 = vpop.permute.xlu0 %474 }
 0xde9   :  { %477 = vst.msk [vmem:[#allocation2] sm:$0x3] %vm16_vm0, %v475_v6  ;;  %770 = vst.msk [vmem:[%s1154_s2 + $0x8] sm:$0x3] %vm16_vm0, %v475_v6 }
 0xdf0   :  { %v480_v7 = vld [vmem:[#allocation2] sm:$0x3] }
 0xdf1   :  { %v484_v8 = vpack.c.bf16 %v480_v7, %v480_v7 }
 0xdf2   :  { %v538_v19 = vpop.permute.xlu1 %537 }
 0xdf3   :  { %852 = vmatmul.mubr.msk.bf16.vlgmr.msra.gmra.mrb[8].mxu1 %vm39_vm2, %v484_v8 }
 0xdf4   :  { %864 = vmatpush3.bf16.msra.mxu1 %v966_v1  ;;  %867 = vmatprep.mubr.msk.bf16.mxu1 %vm943_vm1, %v942_v0 }
 0xdf5   :  { %865 = vmatprep.subr.bf16.mxu1 %v942_v0 }
 0xdf8   :  { %866 = vmatpush3.bf16.msra.mxu1 %v981_v2 }
 0xec6   :  { %v522_v10 = vpop.f32.mrb[8].mxu1 }
 0xec7   :  { %v528_v11 = vadd.f32 %v771_v9, %v522_v10  ;;  %v853_v12 = vpop.f32.mrb[9].mxu1 }
 0xec8   :  { %v525_v13 = vpop.f32.mrb[10].mxu1 }
 0xec9   :  { %918 = vtanh.f32 %v528_v11  ;;  %v854_v14 = vpop.f32.mrb[11].mxu1  ;;  %v773_v1 = vmul.f32 -1.442695, %v528_v11 }
 0xecb   :  { %920 = vpow2.f32 %v773_v1 }
 0xed3   :  { %v919_v15 = vpop.eup %918 }
 0xed4   :  { %542 = vrot.lane.b32.xlu0 %v919_v15, %s944_s14 }
 0xed5   :  { %v921_v16 = vpop.eup %920 }
 0xed6   :  { %v532_v17 = vadd.f32 1.0, %v921_v16 }
 0xed8   :  { %922 = vrcp.f32 %v532_v17 }
 0xee2   :  { %v923_v0 = vpop.eup %922 }
 0xee3   :  { %v540_v20 = vmul.f32 %v923_v0, %v538_v19 }
 0xf46   :  { %v543_v2 = vpop.permute.xlu0 %542 }
 0xf47   :  { %v545_v18 = vmul.f32 %v923_v0, %v543_v2 }
 0xf49   :  { %547 = vrot.lane.b32.xlu0 %v545_v18, %s945_s15 }
 0xfbb   :  { %v548_v21 = vpop.permute.xlu0 %547 }
 0xfbc   :  { %v550_v22 = vadd.f32 %v548_v21, %v540_v20 }
 0xfbe   :  { %924 = vtanh.f32 %v550_v22 }
 0xfc8   :  { %v925_v23 = vpop.eup %924 }
 0xfc9   :  { %553 = vrot.lane.b32.xlu1 %v925_v23, %s944_s14 }
 0xfcd   :  { %558 = vrot.lane.b32.xlu1 %v550_v22, %s946_s16 }
0x103b   :  { %v554_v24 = vpop.permute.xlu1 %553 }
0x103c   :  { %v556_v25 = vmul.f32 %v923_v0, %v554_v24 }
0x103e   :  { %563 = vrot.lane.b32.xlu0 %v556_v25, %s945_s15 }
0x103f   :  { %v559_v26 = vpop.permute.xlu1 %558 }
0x1040   :  { %561 = vst.msk [vmem:[#allocation3] sm:$0x3] %vm16_vm0, %v559_v26 }
0x1047   :  { %v570_v27 = vld [vmem:[#allocation3] sm:$0x3] }
0x1048   :  { %626 = vrot.lane.b32.xlu1 %v570_v27, %s945_s15 }
0x10b0   :  { %v564_v28 = vpop.permute.xlu0 %563 }
0x10b1   :  { %566 = vst.msk [vmem:[#allocation2] sm:$0x3] %vm16_vm0, %v564_v28  ;;  %774 = vst.msk [vmem:[%s1154_s2 + $0xa] sm:$0x3] %vm16_vm0, %v564_v28 }
0x10b8   :  { %v569_v29 = vld [vmem:[#allocation2] sm:$0x3] }
0x10b9   :  { %v573_v30 = vpack.c.bf16 %v569_v29, %v569_v29 }
0x10ba   :  { %v627_v44 = vpop.permute.xlu1 %626 }
0x10bb   :  { %860 = vmatmul.mubr.msk.bf16.vlgmr.msra.gmra.mrb[12].mxu0 %vm39_vm2, %v573_v30 }
0x118e   :  { %v611_v32 = vpop.f32.mrb[12].mxu0 }
0x118f   :  { %v617_v33 = vadd.f32 %v775_v31, %v611_v32  ;;  %v861_v34 = vpop.f32.mrb[13].mxu0 }
0x1190   :  { %v614_v35 = vpop.f32.mrb[14].mxu0 }
0x1191   :  { %926 = vtanh.f32 %v617_v33  ;;  %v862_v36 = vpop.f32.mrb[15].mxu0  ;;  %v777_v38 = vmul.f32 -1.442695, %v617_v33 }
0x1193   :  { %928 = vpow2.f32 %v777_v38 }
0x119b   :  { %v927_v37 = vpop.eup %926 }
0x119c   :  { %631 = vrot.lane.b32.xlu0 %v927_v37, %s944_s14 }
0x119d   :  { %v929_v39 = vpop.eup %928 }
0x119e   :  { %v621_v40 = vadd.f32 1.0, %v929_v39 }
0x11a0   :  { %930 = vrcp.f32 %v621_v40 }
0x11aa   :  { %v931_v41 = vpop.eup %930 }
0x11ab   :  { %v629_v45 = vmul.f32 %v931_v41, %v627_v44 }
0x120e   :  { %v632_v42 = vpop.permute.xlu0 %631 }
0x120f   :  { %v634_v43 = vmul.f32 %v931_v41, %v632_v42 }
0x1211   :  { %636 = vrot.lane.b32.xlu0 %v634_v43, %s945_s15 }
0x1283   :  { %v637_v46 = vpop.permute.xlu0 %636 }
0x1284   :  { %v639_v47 = vadd.f32 %v637_v46, %v629_v45 }
0x1286   :  { %932 = vtanh.f32 %v639_v47 }
0x1290   :  { %v933_v48 = vpop.eup %932 }
0x1291   :  { %642 = vrot.lane.b32.xlu1 %v933_v48, %s944_s14 }
0x1295   :  { %647 = vrot.lane.b32.xlu1 %v639_v47, %s946_s16 }
0x1303   :  { %v643_v49 = vpop.permute.xlu1 %642 }
0x1304   :  { %v645_v50 = vmul.f32 %v931_v41, %v643_v49 }
0x1306   :  { %652 = vrot.lane.b32.xlu0 %v645_v50, %s945_s15 }
0x1307   :  { %v648_v51 = vpop.permute.xlu1 %647 }
0x1308   :  { %650 = vst.msk [vmem:[#allocation3] sm:$0x3] %vm16_vm0, %v648_v51 }
0x130f   :  { %v659_v52 = vld [vmem:[#allocation3] sm:$0x3] }
0x1310   :  { %715 = vrot.lane.b32.xlu1 %v659_v52, %s945_s15 }
0x1378   :  { %v653_v53 = vpop.permute.xlu0 %652 }
0x1379   :  { %655 = vst.msk [vmem:[#allocation2] sm:$0x3] %vm16_vm0, %v653_v53  ;;  %778 = vst.msk [vmem:[%s1154_s2 + $0xc] sm:$0x3] %vm16_vm0, %v653_v53 }
0x1380   :  { %v658_v54 = vld [vmem:[#allocation2] sm:$0x3] }
0x1381   :  { %v662_v55 = vpack.c.bf16 %v658_v54, %v658_v54 }
0x1382   :  { %v716_v8 = vpop.permute.xlu1 %715 }
0x1383   :  { %868 = vmatmul.mubr.msk.bf16.vlgmr.msra.gmra.mrb[12].mxu1 %vm39_vm2, %v662_v55 }
0x1456   :  { %v700_v57 = vpop.f32.mrb[12].mxu1 }
0x1457   :  { %v706_v58 = vadd.f32 %v779_v56, %v700_v57  ;;  %v869_v59 = vpop.f32.mrb[13].mxu1 }
0x1458   :  { %v703_v60 = vpop.f32.mrb[14].mxu1 }
0x1459   :  { %934 = vtanh.f32 %v706_v58  ;;  %v870_v61 = vpop.f32.mrb[15].mxu1  ;;  %v781_v63 = vmul.f32 -1.442695, %v706_v58 }
0x145b   :  { %936 = vpow2.f32 %v781_v63 }
0x1463   :  { %v935_v62 = vpop.eup %934 }
0x1464   :  { %720 = vrot.lane.b32.xlu0 %v935_v62, %s944_s14 }
0x1465   :  { %v937_v3 = vpop.eup %936 }
0x1466   :  { %v710_v4 = vadd.f32 1.0, %v937_v3 }
0x1468   :  { %938 = vrcp.f32 %v710_v4 }
0x1472   :  { %v939_v5 = vpop.eup %938 }
0x1473   :  { %v718_v9 = vmul.f32 %v939_v5, %v716_v8 }
0x14d6   :  { %v721_v6 = vpop.permute.xlu0 %720 }
0x14d7   :  { %v723_v7 = vmul.f32 %v939_v5, %v721_v6 }
0x14d9   :  { %725 = vrot.lane.b32.xlu0 %v723_v7, %s945_s15 }
0x154b   :  { %v726_v10 = vpop.permute.xlu0 %725 }
0x154c   :  { %v728_v11 = vadd.f32 %v726_v10, %v718_v9 }
0x154e   :  { %940 = vtanh.f32 %v728_v11  ;;  %736 = vrot.lane.b32.xlu0 %v728_v11, %s946_s16 }
0x1558   :  { %v941_v12 = vpop.eup %940 }
0x1559   :  { %731 = vrot.lane.b32.xlu1 %v941_v12, %s944_s14 }
0x15c0   :  { %v737_v13 = vpop.permute.xlu0 %736 }
0x15c1   :  { %739 = vst.msk [vmem:[#allocation3] sm:$0x3] %vm16_vm0, %v737_v13 }
0x15cb   :  { %v732_v14 = vpop.permute.xlu1 %731 }
0x15cc   :  { %v734_v15 = vmul.f32 %v939_v5, %v732_v14 }
0x15ce   :  { %741 = vrot.lane.b32.xlu1 %v734_v15, %s945_s15 }
0x1640   :  { %v742_v1 = vpop.permute.xlu1 %741 }
0x1641   :  { %744 = vst.msk [vmem:[#allocation2] sm:$0x3] %vm16_vm0, %v742_v1  ;;  %782 = vst.msk [vmem:[%s1154_s2 + $0xe] sm:$0x3] %vm16_vm0, %v742_v1 }

// kernel: model_forward.14
= control target key start
LH: loop header
LB: loop body
LE: loop exit
PB: predicated region body
PF: predicated region fallthrough
CT: control target
= control target key end

     0   :  { %10 = vsyncpa [#allocation3], 0  ;;  %s2928_s0 = inlined_call_operand.hbm [shape: f32[2,8,32], index: 0, kind: input, shape index: {}]   ;;  %s2929_s1 = inlined_call_operand.hbm [shape: bf16[32,96], index: 1, kind: input, shape index: {}]   ;;  %s2930_s2 = inlined_call_operand.hbm [shape: f32[1,96], index: 2, kind: input, shape index: {}]   ;;  %s2931_s3 = inlined_call_operand.hbm [shape: bf16[32,32], index: 3, kind: input, shape index: {}]   ;;  %s2932_s4 = inlined_call_operand.hbm [shape: f32[1,32], index: 4, kind: input, shape index: {}]   ;;  %s2933_s5 = inlined_call_operand.hbm [shape: f32[2,8,32], index: 5, kind: output, shape index: {}]  }
   0x1   :  { %12 = vsyncpa [#allocation3 + $0x1], 0 }
   0x2   :  { %13 = vsyncpa [#allocation6], 0 }
   0x3   :  { %14 = vsyncpa [#allocation9], 0 }
   0x4   :  { %15 = vsyncpa [#allocation4], 0 }
   0x5   :  { %17 = vsyncpa [#allocation4 + $0x1], 0  ;;  %s2379_s18 = smov 0   ;;  %s2381_s19 = smov 0  }
   0x6   :  { %s2383_s20 = smov 0   ;;  %s2385_s21 = smov 0  }
   0x7 LB: > { %s2328_s22 = smov [#allocation5]   ;;  %s2400_s24 = sadd.s32 4294967295, %s2290_s21   ;;  %s2290_s21 = sphi %s2385_s21, %s2961_s21   ;;  %s2286_s20 = sphi %s2383_s20, %s2960_s20   ;;  %s2282_s19 = sphi %s2381_s19, %s2959_s19   ;;  %s2278_s18 = sphi %s2379_s18, %s2958_s18  }
   0x8   : > { %s176_s23 = sshll.u32 %s2328_s22, 4  ;;  %p1711_p0 = scmp.ge.s32.totalorder %s2290_s21, 1  ;;  %s2405_s23 = int_to_ptr.vmem [resolvable:$true] %s176_s23 }
   0x9   : > { %p2934_p1 = scmp.eq.s32.totalorder %s2400_s24, 0  ;;  %p164_p2 = scmp.lt.s32.totalorder %s2290_s21, 3 }
   0xa   : > { %s2329_s26 = smov [#allocation8]   ;;  %s2330_s29 = smov [#allocation7]  }
   0xb   : > { %p2407_p3 = pnand %p1711_p0, %p164_p2  ;;  %s200_s27 = sshll.u32 %s2329_s26, 4  ;;  %s2420_s27 = int_to_ptr.vmem [resolvable:$true] %s200_s27 }
   0xc   : > { %s190_s30 = sshll.u32 %s2330_s29, 4  ;;  %s2038_s8 = scalar_lea.hbm %s2929_s1, 256  ;;  %s2422_s30 = int_to_ptr.vmem [resolvable:$true] %s190_s30 }
   0xd   : > { %s2937_s25 = scalar_select %p2407_p3, 1, 0 }
   0xe   : > { %p1864_p5 = pneg %p2407_p3  ;;  %p2039_p7 = scmp.ne.s32.totalorder %s2929_s1, %s2038_s8 }
   0xf   : > { %p2045_p11 = scmp.lt.u32.totalorder %s2038_s8, %s2929_s1 }
  0x10   : > { %p2416_p6 = pnand %p1864_p5, %p2934_p1 }
  0x12   : > { %p2432_p8 = pneg %p2416_p6 }
  0x14   : > { %p2041_p9 = pnand %p2432_p8, %p2039_p7 }
  0x16   : > { %p2042_p10 = pneg %p2041_p9 }
  0x18   : > { %p2047_p12 = pnand %p2045_p11, %p2042_p10 }
  0x1a   : > { %2050 = shalt.err (!%p2047_p12)
}
  0x1b   : > { %s2051_s14 = scalar_lea.vmem %s2405_s23, 256  ;;  %p2059_p5 = scmp.lt.s32.totalorder %s2405_s23, %s2405_s23 }
  0x1c   : > { %p2052_p13 = scmp.ne.s32.totalorder %s2405_s23, %s2051_s14  ;;  %p2060_p4 = scmp.lt.s32.totalorder %s2051_s14, %s2051_s14 }
  0x1e   : > { %p2054_p0 = pnand %p2052_p13, %p2432_p8  ;;  %p2061_p7 = por %p2060_p4, %p2059_p5 }
  0x20   : > { %p2055_p2 = pneg %p2054_p0 }
  0x22   : > { %p2062_p9 = pnand %p2061_p7, %p2055_p2 }
  0x24   : > { %2065 = shalt.err (!%p2062_p9)
}
  0x25   : > { %s2331_s15 = smov 64   ;;  %s2332_s16 = smov 4  }
  0x26   : > { %1867 = dma.hbm_to_vmem [thread:$0]  (!%p2416_p6), %s2929_s1, 256, %s2405_s23, [#allocation6], %s2331_s15, %s2331_s15, %s2332_s16  }
  0x27   : > { %s2066_s6 = scalar_lea.hbm %s2931_s3, 256 }
  0x28   : > { %p2067_p4 = scmp.ne.s32.totalorder %s2931_s3, %s2066_s6  ;;  %p2073_p12 = scmp.lt.u32.totalorder %s2066_s6, %s2931_s3 }
  0x2a   : > { %p2069_p10 = pnand %p2067_p4, %p2432_p8 }
  0x2c   : > { %p2070_p11 = pneg %p2069_p10 }
  0x2e   : > { %p2075_p13 = pnand %p2073_p12, %p2070_p11 }
  0x30   : > { %2078 = shalt.err (!%p2075_p13)
}
  0x31   : > { %s2079_s23 = scalar_lea.vmem %s2420_s27, 256  ;;  %p2087_p7 = scmp.lt.s32.totalorder %s2420_s27, %s2420_s27 }
  0x32   : > { %p2080_p0 = scmp.ne.s32.totalorder %s2420_s27, %s2079_s23  ;;  %p2088_p9 = scmp.lt.s32.totalorder %s2079_s23, %s2079_s23 }
  0x34   : > { %p2082_p2 = pnand %p2080_p0, %p2432_p8  ;;  %p2089_p4 = por %p2088_p9, %p2087_p7 }
  0x36   : > { %p2083_p5 = pneg %p2082_p2 }
  0x38   : > { %p2090_p10 = pnand %p2089_p4, %p2083_p5 }
  0x3a   : > { %2093 = shalt.err (!%p2090_p10)
}
  0x3b   : > { %1873 = dma.hbm_to_vmem [thread:$0]  (!%p2416_p6), %s2931_s3, 256, %s2420_s27, [#allocation9], %s2331_s15, %s2331_s15, %s2332_s16  }
  0x3c   : > { %s2094_s22 = scalar_lea.hbm %s2930_s2, 16 }
  0x3d   : > { %p2095_p11 = scmp.ne.s32.totalorder %s2930_s2, %s2094_s22  ;;  %p2101_p0 = scmp.lt.u32.totalorder %s2094_s22, %s2930_s2 }
  0x3f   : > { %p2097_p12 = pnand %p2095_p11, %p2432_p8 }
  0x41   : > { %p2098_p13 = pneg %p2097_p12 }
  0x43   : > { %p2103_p2 = pnand %p2101_p0, %p2098_p13 }
  0x45   : > { %2106 = shalt.err (!%p2103_p2)
}
  0x46   : > { %s2107_s27 = scalar_lea.vmem %s2422_s30, 16  ;;  %s2114_s15 = scalar_lea.vmem %s2422_s30, 32 }
  0x47   : > { %p2108_p5 = scmp.ne.s32.totalorder %s2422_s30, %s2107_s27  ;;  %p2115_p4 = scmp.lt.s32.totalorder %s2422_s30, %s2422_s30 }
  0x48   : > { %p2116_p10 = scmp.lt.s32.totalorder %s2114_s15, %s2107_s27 }
  0x49   : > { %p2110_p7 = pnand %p2108_p5, %p2432_p8 }
  0x4a   : > { %p2117_p11 = por %p2116_p10, %p2115_p4 }
  0x4b   : > { %p2111_p9 = pneg %p2110_p7 }
  0x4d   : > { %p2118_p12 = pnand %p2117_p11, %p2111_p9 }
  0x4f   : > { %2121 = shalt.err (!%p2118_p12)
}
  0x50   : > { %1870 = dma.hbm_to_vmem [thread:$0]  (!%p2416_p6), %s2930_s2, 16, %s2422_s30, [#allocation6]  }
  0x51   : > { %s2333_s9 = smov [#allocation10]   ;;  %s2122_s13 = scalar_lea.hbm %s2932_s4, 16 }
  0x52   : > { %s214_s10 = sshll.u32 %s2333_s9, 4  ;;  %p2123_p13 = scmp.ne.s32.totalorder %s2932_s4, %s2122_s13  ;;  %s215_s10 = int_to_ptr.vmem [resolvable:$true] %s214_s10 }
  0x53   : > { %p2129_p5 = scmp.lt.u32.totalorder %s2122_s13, %s2932_s4 }
  0x54   : > { %p2125_p0 = pnand %p2123_p13, %p2432_p8 }
  0x56   : > { %p2126_p2 = pneg %p2125_p0 }
  0x58   : > { %p2131_p7 = pnand %p2129_p5, %p2126_p2 }
  0x5a   : > { %2134 = shalt.err (!%p2131_p7)
}
  0x5b   : > { %s2135_s30 = scalar_lea.vmem %s215_s10, 16  ;;  %s2142_s29 = scalar_lea.vmem %s215_s10, 32 }
  0x5c   : > { %p2136_p9 = scmp.ne.s32.totalorder %s215_s10, %s2135_s30  ;;  %p2143_p11 = scmp.lt.s32.totalorder %s215_s10, %s215_s10 }
  0x5d   : > { %p2144_p12 = scmp.lt.s32.totalorder %s2142_s29, %s2135_s30 }
  0x5e   : > { %p2138_p4 = pnand %p2136_p9, %p2432_p8 }
  0x5f   : > { %p2145_p1 = por %p2144_p12, %p2143_p11 }
  0x60   : > { %p2139_p10 = pneg %p2138_p4 }
  0x62   : > { %p2146_p3 = pnand %p2145_p1, %p2139_p10 }
  0x64   : > { %2149 = shalt.err (!%p2146_p3)
}
  0x65   : > { %1876 = dma.hbm_to_vmem [thread:$0]  (!%p2416_p6), %s2932_s4, 16, %s215_s10, [#allocation9]  }
  0x66   : > { %s1710_s11 = sadd.s32 4294967294, %s2290_s21   ;;  %s2520_s28 = sadd.s32 1, %s2290_s21  }
  0x67   : > { %s27_s27 = ssub.s32 %s2290_s21, %s2520_s28  ;;  %s30_s15 = sadd.s32 1, %s2286_s20 }
  0x68   : > { %p28_p1 = scmp.eq.s32.totalorder %s27_s27, 0  ;;  %p37_p3 = scmp.ne.s32.totalorder %s2286_s20, %s2282_s19 }
  0x69   : > { %p38_p8 = scmp.eq.s32.totalorder %s2290_s21, 0  ;;  %p43_p13 = scmp.ne.s32.totalorder %s2282_s19, %s2278_s18 }
  0x6a   : > { %s2531_s16 = scalar_select %p28_p1, %s2286_s20, %s30_s15  }
  0x6b   : > { %p2533_p0 = por %p38_p8, %p37_p3  ;;  %p2941_p2 = scmp.eq.s32.totalorder %s2400_s24, 0 }
  0x6c   : > { %p151_p5 = scmp.eq.s32.totalorder %s2400_s24, 1  ;;  %p157_p7 = scmp.eq.s32.totalorder %s1710_s11, 1 }
  0x6d   : > { %p2539_p6 = por %p2941_p2, %p43_p13  ;;  %p1889_p9 = scmp.lt.s32.totalorder %s2290_s21, 2 }
  0x6e   : > { %s225_s10 = sand.u32 1, %s2286_s20   ;;  %p2546_p4 = por %p151_p5, %p37_p3 }
  0x6f   : > { %p2550_p10 = por %p157_p7, %p43_p13  ;;  %s1717_s13 = sshll.u32 %s225_s10, 3 }
  0x70   : > { %s2943_s23 = scalar_select %p2546_p4, 1, 0 }
  0x71   : > { %s2944_s12 = scalar_select %p2550_p10, 1, 0 }
  0x72   : > { %s1718_s14 = sshll.u32 %s2290_s21, 7  ;;  %s229_s30 = scalar_lea.vmem [#allocation2], %s1717_s13 }
  0x73   : > { %s2558_s26 = scalar_lea.hbm %s2928_s0, %s1718_s14  ;;  %s236_s29 = sshll.u32 %s229_s30, 4  ;;  %s2560_s29 = int_to_ptr.vmem [resolvable:$true] %s236_s29 }
  0x74   : > { %p2564_p11 = pnand %p1889_p9, %p2533_p0  ;;  %s226_s7 = scalar_lea.sflag [#allocation3], %s225_s10 }
  0x75   : > { %s2150_s11 = scalar_lea.hbm %s2558_s26, 128  ;;  %s2155_s13 = scalar_lea.hbm %s2928_s0, 256 }
  0x76   : > { %p2151_p12 = scmp.ne.s32.totalorder %s2558_s26, %s2150_s11  ;;  %p2152_p1 = pneg %p2564_p11 }
  0x77   : > { %p2156_p13 = scmp.lt.u32.totalorder %s2558_s26, %s2928_s0  ;;  %p2157_p0 = scmp.lt.u32.totalorder %s2155_s13, %s2150_s11 }
  0x78   : > { %p2153_p3 = pnand %p2152_p1, %p2151_p12  ;;  %p2159_p5 = scmp.lt.u32.totalorder %s2150_s11, %s2558_s26 }
  0x79   : > { %p2158_p2 = por %p2157_p0, %p2156_p13 }
  0x7a   : > { %p2154_p8 = pneg %p2153_p3 }
  0x7b   : > { %p2160_p7 = por %p2159_p5, %p2158_p2 }
  0x7d   : > { %p2161_p9 = pnand %p2160_p7, %p2154_p8 }
  0x7f   : > { %2164 = shalt.err (!%p2161_p9)
}
  0x80   : > { %s2165_s10 = scalar_lea.vmem %s2560_s29, 128  ;;  %s2334_s17 = smov [#allocation2]  }
  0x81   : > { %p2166_p12 = scmp.ne.s32.totalorder %s2560_s29, %s2165_s10  ;;  %s2170_s22 = sshll.u32 %s2334_s17, 4  ;;  %s2171_s22 = int_to_ptr.vmem [resolvable:$false] %s2170_s22 }
  0x82   : > { %s2172_s30 = scalar_lea.vmem %s2171_s22, 256  ;;  %p2173_p4 = scmp.lt.s32.totalorder %s2560_s29, %s2171_s22 }
  0x83   : > { %p2168_p3 = pnand %p2166_p12, %p2152_p1  ;;  %p2174_p13 = scmp.lt.s32.totalorder %s2172_s30, %s2165_s10 }
  0x85   : > { %p2169_p10 = pneg %p2168_p3  ;;  %p2175_p0 = por %p2174_p13, %p2173_p4 }
  0x87   : > { %p2176_p2 = pnand %p2175_p0, %p2169_p10 }
  0x89   : > { %2179 = shalt.err (!%p2176_p2)
}
  0x8a   : > { %1880 = dma.hbm_to_vmem [thread:$0]  (!%p2564_p11), %s2558_s26, 128, %s2560_s29, %s226_s7  }
  0x8b   : > { %p2946_p8 = scmp.ne.s32.totalorder %s2937_s25, 0 }
  0x8c   : > { %s2596_s11 = sand.u32 (!%p2946_p8), 1, %s2282_s19  }
  0x8d   : > { %245 = sbr.rel (%p2946_p8) target bundleno = 2078 (0x81e), region = 40  ;;  %s1720_s27 = sshll.u32 (!%p2946_p8), %s2596_s11, 3 }
  0x8e   : > { %s248_s15 = scalar_lea.sflag (!%p2946_p8), [#allocation3], %s2596_s11  ;;  %s251_s13 = scalar_lea.vmem (!%p2946_p8), [#allocation2], %s1720_s27 }
  0x94   : > { %2261 = dma.done.wait (%p2539_p6), %s248_s15, 128  }
  0x95   : > { %2263 = vsyncadd (%p2539_p6), %s248_s15, 4294967168  ;;  %p2947_p4 = scmp.eq.s32.totalorder %s2400_s24, 0 }
  0x97   : > { %2265 = dma.done.wait (%p2947_p4), [#allocation6], 272   ;;  %p2948_p10 = pmov %p2947_p4 }
  0x98   : > { %p2949_p11 = pmov %p2947_p4 }
  0x99   : > { %2267 = vsyncadd (%p2948_p10), [#allocation6], 4294967024 }
  0x9a   : > { %2269 = dma.done.wait (%p2949_p11), [#allocation9], 272   ;;  %p2950_p1 = pmov %p2947_p4 }
  0x9b   : > { %v2335_v0 = vmov 0.0   ;;  %vm2336_vm0 = vmmov 0   ;;  %v2018_v1 = vld [vmem:[#allocation5] sm:$0xff]   ;;  %v2019_v2 = vld [vmem:[#allocation5 + $0x8] sm:$0xff]   ;;  %v295_v3 = vld [vmem:[%s251_s13] sm:$0xff]  ;;  %vm320_vm1 = vcmask 261120   ;;  %v380_v17 = vlaneseq }
  0x9c   : > { %2271 = vsyncadd (%p2950_p1), [#allocation9], 4294967024  ;;  %1780 = vmatprep.subr.bf16.mxu0 %v2335_v0  ;;  %1784 = vmatprep.mubr.msk.bf16.mxu0 %vm2336_vm0, %v2335_v0  ;;  %v296_v4 = vpack.c.bf16 %v295_v3, %v295_v3  ;;  %v1726_v5 = vld [vmem:[#allocation7] ss:$0 sm:$0xff]  ;;  %s2337_s25 = smov 104   ;;  %s2338_s9 = smov 120  }
  0x9d   : > { %1788 = vmatprep.subr.bf16.mxu1 %v2335_v0  ;;  %1790 = vmatprep.mubr.msk.bf16.mxu1 %vm2336_vm0, %v2335_v0  ;;  %s2339_s26 = smov 96   ;;  %s2340_s29 = smov 112   ;;  %v2342_v15 = vmov 1983009808   ;;  %v2343_v18 = vmov 1934713408  }
  0x9e   : > { %1781 = vmatpush3.bf16.msra.mxu0 %v2018_v1  ;;  %s2341_s6 = smov 64   ;;  %v378_v16 = vunpack.c.l.s4 %v2342_v15  ;;  %v410_v19 = vunpack.c.l.s4 %v2343_v18  ;;  %v381_v21 = vshrl.u32 %v380_v17, 7  ;;  %vm826_vm2 = vcmask 64512   ;;  %s2749_s7 = scalar_lea.vmem [#allocation11], %s1720_s27 }
  0x9f   : > { %1782 = vmatprep.subr.bf16.mxu0 %v2335_v0  ;;  %s2767_s8 = smov 0  }
  0xa0   : > { %v379_v20 = vunpack.c.0.s8 %v378_v16  ;;  %v411_v24 = vunpack.c.0.s8 %v410_v19 }
  0xa2   : > { %1783 = vmatpush3.bf16.msra.mxu0 %v2019_v2  ;;  %v2625_v25 = vsub.s32 %v379_v20, %v381_v21  ;;  %v2627_v32 = vsub.s32 %v411_v24, %v381_v21 }
  0xa3   : > { %1794 = vmatprep.subr.bf16.mxu0 %v2335_v0 }
  0xa5   : > { %1785 = vmatmul.mubr.msk.bf16.vlgmr.msra.gmra.mrb[0].mxu0 %vm320_vm1, %v296_v4 }
  0xa6   : > { %1796 = vmatprep.mubr.msk.bf16.mxu0 %vm2336_vm0, %v2335_v0 }
 0x178   : > { %v358_v6 = vpop.f32.mrb[0].mxu0 }
 0x179   : > { %v359_v7 = vadd.f32 %v1726_v5, %v358_v6  ;;  %v1786_v8 = vpop.f32.mrb[1].mxu0 }
 0x17a   : > { %v361_v9 = vpop.f32.mrb[2].mxu0 }
 0x17b   : > { %520 = vrot.lane.b32.xlu1 %v359_v7, %s2337_s25  ;;  %516 = vrot.lane.b32.xlu0 %v359_v7, %s2338_s9  ;;  %v1787_v10 = vpop.f32.mrb[3].mxu0  ;;  %v364_v14 = vmul.f32 0.35355338, %v359_v7 }
 0x17f   : > { %522 = vrot.lane.b32.xlu1 %v359_v7, %s2339_s26  ;;  %518 = vrot.lane.b32.xlu0 %v359_v7, %s2340_s29 }
 0x1ed   : > { %v517_v11 = vpop.permute.xlu0 %516  ;;  %v521_v12 = vpop.permute.xlu1 %520 }
 0x1ee   : > { %524 = vrot.lane.b32.xlu0 %v517_v11, %s2339_s26 }
 0x1f1   : > { %v519_v13 = vpop.permute.xlu0 %518  ;;  %v523_v22 = vpop.permute.xlu1 %522 }
 0x1f2   : > { %528 = vrot.lane.b32.xlu0 %v521_v12, %s2339_s26  ;;  %526 = vrot.lane.b32.xlu1 %v519_v13, %s2339_s26 }
 0x1f6   : > { %369 = vrot.lane.b32.xlu0 %v364_v14, %s2340_s29  ;;  %366 = vrot.lane.b32.xlu1 %v364_v14, %s2338_s9 }
 0x1fa   : > { %674 = vrot.lane.b32.xlu0 %v359_v7, %s2341_s6  ;;  %372 = vrot.lane.b32.xlu1 %v364_v14, %s2337_s25 }
 0x1fe   : > { %678 = vrot.lane.b32.xlu0 %v519_v13, %s2341_s6  ;;  %676 = vrot.lane.b32.xlu1 %v517_v11, %s2341_s6 }
 0x202   : > { %680 = vrot.lane.b32.xlu1 %v521_v12, %s2341_s6 }
 0x260   : > { %v525_v23 = vpop.permute.xlu0 %524 }
 0x264   : > { %v527_v26 = vpop.permute.xlu1 %526  ;;  %v529_v27 = vpop.permute.xlu0 %528 }
 0x265   : > { %v534_v28 = vcombine.low %v523_v22, %v527_v26  ;;  %v535_v29 = vcombine.high %v523_v22, %v527_v26  ;;  %v550_v30 = vcombine.low %v525_v23, %v529_v27  ;;  %v551_v31 = vcombine.high %v525_v23, %v529_v27 }
 0x267   : > { %v542_v33 = vrot.slane %v534_v28, %v2625_v25  ;;  %v549_v34 = vrot.slane %v535_v29, %v2625_v25  ;;  %v558_v35 = vrot.slane %v550_v30, %v2625_v25  ;;  %v565_v36 = vrot.slane %v551_v31, %v2625_v25 }
 0x268   : > { %v370_v37 = vpop.permute.xlu0 %369  ;;  %v367_v38 = vpop.permute.xlu1 %366 }
 0x269   : > { %v566_v39 = vcombine.low %v542_v33, %v558_v35  ;;  %v567_v40 = vcombine.high %v542_v33, %v558_v35  ;;  %v582_v41 = vcombine.low %v549_v34, %v565_v36  ;;  %v583_v42 = vcombine.high %v549_v34, %v565_v36 }
 0x26a   : > { %v375_v47 = vcombine.low %v364_v14, %v370_v37  ;;  %v376_v48 = vcombine.high %v364_v14, %v370_v37 }
 0x26b   : > { %v574_v43 = vrot.slane %v566_v39, %v2627_v32  ;;  %v581_v44 = vrot.slane %v567_v40, %v2627_v32  ;;  %v590_v45 = vrot.slane %v582_v41, %v2627_v32  ;;  %v597_v46 = vrot.slane %v583_v42, %v2627_v32 }
 0x26c   : > { %v675_v49 = vpop.permute.xlu0 %674  ;;  %v373_v50 = vpop.permute.xlu1 %372  ;;  %v383_v61 = vrot.slane %v375_v47, %v2625_v25  ;;  %v390_v62 = vrot.slane %v376_v48, %v2625_v25 }
 0x26d   : > { %v602_v51 = vcombine.low %v574_v43, %v581_v44  ;;  %v1732_v52 = vcombine.high %v574_v43, %v581_v44  ;;  %v618_v53 = vcombine.low %v590_v45, %v597_v46  ;;  %v1733_v54 = vcombine.high %v590_v45, %v597_v46 }
 0x26e   : > { %v391_v55 = vcombine.low %v367_v38, %v373_v50  ;;  %v392_v56 = vcombine.high %v367_v38, %v373_v50 }
 0x26f   : > { %v2638_v57 = vrot.slane %v602_v51, %v2625_v25  ;;  %v2641_v58 = vrot.slane %v1732_v52, %v2625_v25  ;;  %v2644_v59 = vrot.slane %v618_v53, %v2625_v25  ;;  %v2647_v60 = vrot.slane %v1733_v54, %v2625_v25 }
 0x270   : > { %v399_v63 = vrot.slane %v391_v55, %v2625_v25  ;;  %v406_v1 = vrot.slane %v392_v56, %v2625_v25  ;;  %v679_v2 = vpop.permute.xlu0 %678  ;;  %v677_v3 = vpop.permute.xlu1 %676 }
 0x271   : > { %v686_v4 = vcombine.low %v675_v49, %v679_v2  ;;  %v687_v5 = vcombine.high %v675_v49, %v679_v2  ;;  %v634_v6 = vcombine.low %v2638_v57, %v2641_v58  ;;  %v650_v7 = vcombine.low %v2644_v59, %v2647_v60 }
 0x272   : > { %v407_v8 = vcombine.low %v383_v61, %v399_v63  ;;  %v408_v9 = vcombine.high %v383_v61, %v399_v63  ;;  %v423_v10 = vcombine.low %v390_v62, %v406_v1  ;;  %v424_v11 = vcombine.high %v390_v62, %v406_v1 }
 0x273   : > { %v694_v12 = vrot.slane %v686_v4, %v2625_v25  ;;  %v701_v13 = vrot.slane %v687_v5, %v2625_v25  ;;  %v642_v14 = vrot.slane %v634_v6, %v2627_v32  ;;  %v658_v15 = vrot.slane %v650_v7, %v2627_v32 }
 0x274   : > { %v415_v16 = vrot.slane %v407_v8, %v2627_v32  ;;  %v422_v17 = vrot.slane %v408_v9, %v2627_v32  ;;  %v431_v18 = vrot.slane %v423_v10, %v2627_v32  ;;  %v438_v19 = vrot.slane %v424_v11, %v2627_v32  ;;  %v681_v20 = vpop.permute.xlu1 %680 }
 0x275   : > { %v702_v21 = vcombine.low %v677_v3, %v681_v20  ;;  %v703_v22 = vcombine.high %v677_v3, %v681_v20  ;;  %v666_v23 = vcombine.low %v642_v14, %v658_v15  ;;  %v667_v24 = vcombine.high %v642_v14, %v658_v15 }
 0x276   : > { %v443_v26 = vcombine.low %v415_v16, %v422_v17  ;;  %v1730_v27 = vcombine.high %v415_v16, %v422_v17  ;;  %v459_v28 = vcombine.low %v431_v18, %v438_v19  ;;  %v1731_v29 = vcombine.high %v431_v18, %v438_v19 }
 0x277   : > { %v710_v30 = vrot.slane %v702_v21, %v2625_v25  ;;  %v717_v31 = vrot.slane %v703_v22, %v2625_v25  ;;  %v670_v33 = vpack.c.bf16 %v666_v23, %v666_v23  ;;  %v671_v34 = vpack.c.bf16 %v667_v24, %v667_v24 }
 0x278   : > { %v450_v35 = vrot.slane %v443_v26, %v2625_v25  ;;  %v458_v36 = vrot.slane %v1730_v27, %v2625_v25  ;;  %v466_v37 = vrot.slane %v459_v28, %v2625_v25  ;;  %v474_v38 = vrot.slane %v1731_v29, %v2625_v25 }
 0x279   : > { %v718_v39 = vcombine.low %v694_v12, %v710_v30  ;;  %v719_v40 = vcombine.high %v694_v12, %v710_v30  ;;  %v734_v41 = vcombine.low %v701_v13, %v717_v31  ;;  %v735_v42 = vcombine.high %v701_v13, %v717_v31 }
 0x27a   : > { %v476_v43 = vcombine.high %v450_v35, %v458_v36  ;;  %v492_v44 = vcombine.high %v466_v37, %v474_v38  ;;  %v831_v45 = vsel %vm826_vm2, %v670_v33, 0  ;;  %v877_v46 = vsel %vm826_vm2, %v671_v34, 0 }
 0x27b   : > { %v726_v47 = vrot.slane %v718_v39, %v2627_v32  ;;  %v733_v48 = vrot.slane %v719_v40, %v2627_v32  ;;  %v742_v49 = vrot.slane %v734_v41, %v2627_v32  ;;  %v749_v50 = vrot.slane %v735_v42, %v2627_v32  ;;  %1789 = vmatpush3.bf16.xpose.msra.mxu1 %v831_v45 }
 0x27c   : > { %1795 = vmatpush3.bf16.xpose.msra.mxu0 %v877_v46  ;;  %v475_v51 = vcombine.low %v450_v35, %v458_v36  ;;  %v491_v52 = vcombine.low %v466_v37, %v474_v38  ;;  %1800 = vmatprep.subr.bf16.mxu1 %v2335_v0  ;;  %v635_v53 = vcombine.high %v2638_v57, %v2641_v58 }
 0x27d   : > { %v754_v54 = vcombine.low %v726_v47, %v733_v48  ;;  %v1734_v55 = vcombine.high %v726_v47, %v733_v48  ;;  %v770_v56 = vcombine.low %v742_v49, %v749_v50  ;;  %v1735_v61 = vcombine.high %v742_v49, %v749_v50  ;;  %1806 = vmatprep.subr.bf16.mxu0 %v2335_v0 }
 0x27e   : > { %v483_v62 = vrot.slane %v475_v51, %v2627_v32  ;;  %v499_v63 = vrot.slane %v491_v52, %v2627_v32  ;;  %v649_v1 = vrot.slane %v635_v53, %v2627_v32  ;;  %v651_v2 = vcombine.high %v2644_v59, %v2647_v60 }
 0x27f   : > { %v761_v3 = vrot.slane %v754_v54, %v2625_v25  ;;  %v769_v4 = vrot.slane %v1734_v55, %v2625_v25  ;;  %v777_v57 = vrot.slane %v770_v56, %v2625_v25  ;;  %v785_v58 = vrot.slane %v1735_v61, %v2625_v25 }
 0x280   : > { %v507_v5 = vcombine.low %v483_v62, %v499_v63  ;;  %v508_v6 = vcombine.high %v483_v62, %v499_v63  ;;  %v665_v7 = vrot.slane %v651_v2, %v2627_v32  ;;  %v490_v8 = vrot.slane %v476_v43, %v2627_v32 }
 0x281   : > { %v786_v9 = vcombine.low %v761_v3, %v769_v4  ;;  %v787_v10 = vcombine.high %v761_v3, %v769_v4  ;;  %v802_v11 = vcombine.low %v777_v57, %v785_v58  ;;  %v803_v12 = vcombine.high %v777_v57, %v785_v58 }
 0x282   : > { %v511_v13 = vpack.c.bf16 %v507_v5, %v507_v5  ;;  %v512_v59 = vpack.c.bf16 %v508_v6, %v508_v6  ;;  %v668_v60 = vcombine.low %v649_v1, %v665_v7  ;;  %v669_v14 = vcombine.high %v649_v1, %v665_v7 }
 0x283   : > { %v794_v15 = vrot.slane %v786_v9, %v2627_v32  ;;  %v801_v16 = vrot.slane %v787_v10, %v2627_v32  ;;  %v810_v17 = vrot.slane %v802_v11, %v2627_v32  ;;  %v817_v18 = vrot.slane %v803_v12, %v2627_v32 }
 0x284   : > { %1791 = vmatmul.mubr.msk.bf16.vlgmr.msra.gmra.mrb[0].mxu1 %vm826_vm2, %v511_v13  ;;  %1797 = vmatmul.mubr.msk.bf16.vlgmr.msra.gmra.mrb[4].mxu0 %vm826_vm2, %v512_v59  ;;  %v672_v19 = vpack.c.bf16 %v668_v60, %v668_v60  ;;  %v673_v20 = vpack.c.bf16 %v669_v14, %v669_v14  ;;  %v506_v21 = vrot.slane %v492_v44, %v2627_v32 }
 0x285   : > { %v2699_v22 = vcombine.low %v794_v15, %v810_v17  ;;  %v2701_v23 = vcombine.high %v794_v15, %v810_v17  ;;  %v2703_v24 = vcombine.low %v801_v16, %v817_v18  ;;  %v2705_v26 = vcombine.high %v801_v16, %v817_v18  ;;  %1802 = vmatprep.mubr.msk.bf16.mxu1 %vm2336_vm0, %v2335_v0 }
 0x286   : > { %v923_v27 = vsel %vm826_vm2, %v672_v19, 0  ;;  %v969_v28 = vsel %vm826_vm2, %v673_v20, 0  ;;  %1808 = vmatprep.mubr.msk.bf16.mxu0 %vm2336_vm0, %v2335_v0  ;;  %v509_v34 = vcombine.low %v490_v8, %v506_v21  ;;  %v510_v35 = vcombine.high %v490_v8, %v506_v21 }
 0x287   : > { %v822_v29 = vpack.c.bf16 %v2699_v22, %v2699_v22  ;;  %v823_v30 = vpack.c.bf16 %v2701_v23, %v2701_v23  ;;  %v824_v31 = vpack.c.bf16 %v2703_v24, %v2703_v24  ;;  %v825_v33 = vpack.c.bf16 %v2705_v26, %v2705_v26  ;;  %1801 = vmatpush3.bf16.xpose.msra.mxu1 %v923_v27 }
 0x288   : > { %1807 = vmatpush3.bf16.xpose.msra.mxu0 %v969_v28  ;;  %v513_v36 = vpack.c.bf16 %v509_v34, %v509_v34  ;;  %v514_v37 = vpack.c.bf16 %v510_v35, %v510_v35 }
 0x28e   : > { %1803 = vmatmul.mubr.msk.bf16.vlgmr.msra.gmra.mrb[4].mxu1 %vm826_vm2, %v513_v36 }
 0x28f   : > { %1809 = vmatmul.mubr.msk.bf16.vlgmr.msra.gmra.mrb[8].mxu0 %vm826_vm2, %v514_v37 }
 0x357   : > { %v2723_v38 = vpop.f32.mrb[0].mxu1  ;;  %v2725_v39 = vpop.f32.mrb[4].mxu0 }
 0x358   : > { %v1792_v40 = vpop.f32.mrb[1].mxu1  ;;  %v1798_v41 = vpop.f32.mrb[5].mxu0  ;;  %v1023_v42 = vsel %vm826_vm2, %v2723_v38, -inf  ;;  %v1026_v43 = vsel %vm826_vm2, %v2725_v39, -inf  ;;  %v1011_v48 = vsel %vm826_vm2, %v2723_v38, inf  ;;  %v1014_v49 = vsel %vm826_vm2, %v2725_v39, inf }
 0x359   : > { %1024 = vmax.xlane.f32.xlu0 %v1023_v42  ;;  %v870_v44 = vpop.f32.mrb[2].mxu1  ;;  %1027 = vmax.xlane.f32.xlu1 %v1026_v43  ;;  %v916_v45 = vpop.f32.mrb[6].mxu0 }
 0x35a   : > { %v1793_v46 = vpop.f32.mrb[3].mxu1  ;;  %v1799_v47 = vpop.f32.mrb[7].mxu0 }
 0x35d   : > { %1012 = vmin.xlane.f32.xlu1 %v1011_v48  ;;  %1015 = vmin.xlane.f32.xlu0 %v1014_v49 }
 0x361   : > { %v2735_v50 = vpop.f32.mrb[4].mxu1 }
 0x362   : > { %v2737_v51 = vpop.f32.mrb[8].mxu0  ;;  %v1804_v52 = vpop.f32.mrb[5].mxu1  ;;  %v1017_v53 = vsel %vm826_vm2, %v2735_v50, inf  ;;  %v1029_v54 = vsel %vm826_vm2, %v2735_v50, -inf }
 0x363   : > { %v1810_v55 = vpop.f32.mrb[9].mxu0  ;;  %v962_v56 = vpop.f32.mrb[6].mxu1  ;;  %1018 = vmin.xlane.f32.xlu1 %v1017_v53  ;;  %1030 = vmax.xlane.f32.xlu0 %v1029_v54  ;;  %v1032_v1 = vsel %vm826_vm2, %v2737_v51, -inf  ;;  %v1020_v2 = vsel %vm826_vm2, %v2737_v51, inf }
 0x364   : > { %v1008_v61 = vpop.f32.mrb[10].mxu0  ;;  %v1805_v62 = vpop.f32.mrb[7].mxu1 }
 0x365   : > { %v1811_v63 = vpop.f32.mrb[11].mxu0 }
 0x367   : > { %1033 = vmax.xlane.f32.xlu0 %v1032_v1 }
 0x36b   : > { %1021 = vmin.xlane.f32.xlu0 %v1020_v2 }
 0x3e6   : > { %v1025_v3 = vpop.xlane.xlu0 %1024  ;;  %v1028_v4 = vpop.xlane.xlu1 %1027 }
 0x3e7   : > { %v1035_v57 = vadd.f32 1.0, %v1025_v3   ;;  %v1036_v58 = vadd.f32 1.0, %v1028_v4  }
 0x3ea   : > { %v1013_v5 = vpop.xlane.xlu1 %1012   ;;  %v1016_v6 = vpop.xlane.xlu0 %1015  }
 0x3f0   : > { %v1019_v7 = vpop.xlane.xlu1 %1018   ;;  %v1031_v8 = vpop.xlane.xlu0 %1030 }
 0x3f1   : > { %v1037_v9 = vadd.f32 1.0, %v1031_v8  }
 0x3f4   : > { %v1034_v10 = vpop.xlane.xlu0 %1033 }
 0x3f5   : > { %v1038_v11 = vadd.f32 1.0, %v1034_v10  }
 0x3f8   : > { %v1022_v12 = vpop.xlane.xlu0 %1021  }
 0x3f9 LB: >> { %v1053_v13 = vadd.f32 %v2306_v57, %v2322_v5  ;;  %v1055_v59 = vadd.f32 %v2298_v9, %v2314_v7  ;;  %v1054_v14 = vadd.f32 %v2302_v58, %v2318_v6  ;;  %v1056_v17 = vadd.f32 %v2294_v11, %v2310_v12  ;;  %s1044_s8 = sadd.s32 1, %s2326_s8   ;;  %s2326_s8 = sphi %s2767_s8, %s1044_s8   ;;  %v2322_v5 = vphi %v1013_v5, %v2954_v5   ;;  %v2318_v6 = vphi %v1016_v6, %v2953_v6   ;;  %v2314_v7 = vphi %v1019_v7, %v2952_v7   ;;  %v2310_v12 = vphi %v1022_v12, %v2951_v12   ;;  %v2306_v57 = vphi %v1035_v57, %v1093_v57   ;;  %v2302_v58 = vphi %v1036_v58, %v1094_v58   ;;  %v2298_v9 = vphi %v1037_v9, %v1095_v9   ;;  %v2294_v11 = vphi %v1038_v11, %v1096_v11  }
 0x3fa   : >> { %v2344_v18 = vmov 0.0   ;;  %p1041_p6 = scmp.ge.s32.totalorder %s1044_s8, 24  }
 0x3fb   : >> { %v1057_v60 = vmul.f32 0.5, %v1053_v13  ;;  %v1059_v15 = vmul.f32 0.5, %v1055_v59  ;;  %v1058_v16 = vmul.f32 0.5, %v1054_v14  ;;  %v1060_v27 = vmul.f32 0.5, %v1056_v17  ;;  %1812 = vmatprep.subr.bf16.mxu1 (%p1041_p6), %v2335_v0  ;;  %1814 = vmatprep.mubr.msk.bf16.mxu1 (%p1041_p6), %vm2336_vm0, %v2335_v0  ;;  %s2345_s14 = smov (%p1041_p6), 16   ;;  %s2346_s10 = smov (%p1041_p6), 8  }
 0x3fc   : > { %1818 = vmatprep.subr.bf16.mxu0 (%p1041_p6), %v2335_v0  ;;  %1820 = vmatprep.mubr.msk.bf16.mxu0 (%p1041_p6), %vm2336_vm0, %v2335_v0  ;;  %vm1156_vm15 = vcmask (%p1041_p6), 1043456   ;;  %s2347_s17 = smov (%p1041_p6), 24   ;;  %s1755_s22 = sshll.u32 (%p1041_p6), %s2400_s24, 7 }
 0x3fd   : >> { %vm1061_vm3 = vcmp.ge.f32.partialorder %v2723_v38, %v1057_v60  ;;  %vm1063_vm4 = vcmp.ge.f32.partialorder %v2735_v50, %v1059_v15  ;;  %vm1062_vm5 = vcmp.ge.f32.partialorder %v2725_v39, %v1058_v16  ;;  %vm1064_vm6 = vcmp.ge.f32.partialorder %v2737_v51, %v1060_v27  ;;  %s1573_s30 = sshll.u32 (%p1041_p6), %s2749_s7, 4  ;;  %s2882_s13 = scalar_lea.hbm (%p1041_p6), %s2933_s5, %s1755_s22  ;;  %s2884_s30 = int_to_ptr.vmem [resolvable:$true] %s1573_s30 }
 0x3fe   : >> { %v1740_v19 = vsel %vm1061_vm3, 1.0, %v2344_v18  ;;  %v1742_v21 = vsel %vm1063_vm4, 1.0, %v2344_v18  ;;  %v1741_v34 = vsel %vm1062_vm5, 1.0, %v2344_v18  ;;  %v1743_v36 = vsel %vm1064_vm6, 1.0, %v2344_v18  ;;  %s1560_s25 = scalar_lea.sflag (%p1041_p6), [#allocation4], %s2596_s11  ;;  %s2180_s24 = scalar_lea.vmem (%p1041_p6), %s2884_s30, 128 }
 0x3ff   : >> { %v1073_v20 = vsel %vm826_vm2, %v1740_v19, 0.0  ;;  %v1079_v28 = vsel %vm826_vm2, %v1742_v21, 0.0  ;;  %v1076_v35 = vsel %vm826_vm2, %v1741_v34, 0.0  ;;  %v1082_v37 = vsel %vm826_vm2, %v1743_v36, 0.0  ;;  %p2181_p5 = scmp.ne.s32.totalorder (%p1041_p6), %s2884_s30, %s2180_s24  ;;  %p2955_p7 = scmp.ne.s32.totalorder (%p1041_p6), %s2943_s23, 0 }
 0x400   : >> { %1074 = vadd.xlane.f32.xlu0 %v1073_v20  ;;  %1080 = vadd.xlane.f32.xlu1 %v1079_v28  ;;  %v1158_v13 = vsel (%p1041_p6), %vm1156_vm15, %v822_v29, 0  ;;  %v1204_v59 = vsel (%p1041_p6), %vm1156_vm15, %v823_v30, 0  ;;  %v1250_v23 = vsel (%p1041_p6), %vm1156_vm15, %v824_v31, 0  ;;  %v1296_v21 = vsel (%p1041_p6), %vm1156_vm15, %v825_v33, 0  ;;  %v2020_v33 = vld [vmem:[#allocation8] sm:$0xff] (%p1041_p6)   ;;  %s2348_s9 = smov (%p1041_p6), [#allocation11]  }
 0x401   : > { %1813 = vmatpush3.bf16.msra.mxu1 (%p1041_p6), %v1158_v13  ;;  %1819 = vmatpush3.bf16.msra.mxu0 (%p1041_p6), %v1204_v59  ;;  %vm1489_vm3 = vcmask (%p1041_p6), 195584   ;;  %p2182_p9 = pnand (%p1041_p6), %p2181_p5, %p2955_p7  ;;  %s2184_s26 = sshll.u32 (%p1041_p6), %s2348_s9, 4  ;;  %s2185_s26 = int_to_ptr.vmem [resolvable:$false] %s2184_s26 }
 0x402   : > { %1824 = vmatprep.subr.bf16.mxu1 (%p1041_p6), %v2335_v0  ;;  %1830 = vmatprep.subr.bf16.mxu0 (%p1041_p6), %v2335_v0  ;;  %s2186_s29 = scalar_lea.vmem (%p1041_p6), %s2185_s26, 256  ;;  %p2187_p3 = scmp.lt.s32.totalorder (%p1041_p6), %s2884_s30, %s2185_s26 }
 0x403   : > { %p2183_p12 = pneg (%p1041_p6), %p2182_p9  ;;  %p2188_p13 = scmp.lt.s32.totalorder (%p1041_p6), %s2186_s29, %s2180_s24 }
 0x404   : >> { %1077 = vadd.xlane.f32.xlu0 %v1076_v35  ;;  %1083 = vadd.xlane.f32.xlu1 %v1082_v37 }
 0x405   : > { %p2189_p0 = por (%p1041_p6), %p2188_p13, %p2187_p3 }
 0x407   : > { %p2190_p2 = pnand (%p1041_p6), %p2189_p0, %p2183_p12 }
 0x48d   : >> { %v1075_v40 = vpop.xlane.xlu0 %1074  ;;  %v1081_v41 = vpop.xlane.xlu1 %1080 }
 0x48e   : >> { %vm1085_vm7 = vcmp.ge.f32.partialorder %v1075_v40, 4.0  ;;  %vm1087_vm8 = vcmp.ge.f32.partialorder %v1081_v41, 4.0  ;;  %1043 = sbr.rel (!%p1041_p6) target bundleno = 1017 (0x3f9), region = 108 }
 0x48f   : >> { %v1089_v42 = vsel %vm1085_vm7, %v1057_v60, %v2322_v5   ;;  %v1093_v57 = vsel %vm1085_vm7, %v2306_v57, %v1057_v60   ;;  %v1091_v43 = vsel %vm1087_vm8, %v1059_v15, %v2314_v7   ;;  %v1095_v9 = vsel %vm1087_vm8, %v2298_v9, %v1059_v15  }
 0x490   : >> { %v2952_v7 = vmov %v1091_v43  ;;  %v2954_v5 = vmov %v1089_v42  ;;  %vm1097_vm11 = vcmp.ge.f32.partialorder (%p1041_p6), %v2723_v38, %v1089_v42  ;;  %vm1099_vm12 = vcmp.ge.f32.partialorder (%p1041_p6), %v2735_v50, %v1091_v43 }
 0x491   : >> { %v1078_v44 = vpop.xlane.xlu0 %1077  ;;  %v1084_v45 = vpop.xlane.xlu1 %1083  ;;  %v1101_v48 = vsel (%p1041_p6), %vm1097_vm11, %v2723_v38, -inf  ;;  %v1103_v49 = vsel (%p1041_p6), %vm1099_vm12, %v2735_v50, -inf }
 0x492   : >> { %vm1086_vm9 = vcmp.ge.f32.partialorder %v1078_v44, 4.0  ;;  %vm1088_vm10 = vcmp.ge.f32.partialorder %v1084_v45, 4.0  ;;  %v1105_v54 = vsel (%p1041_p6), %vm826_vm2, %v1101_v48, -inf  ;;  %v1111_v55 = vsel (%p1041_p6), %vm826_vm2, %v1103_v49, -inf }
 0x493   : >> { %v1090_v46 = vsel %vm1086_vm9, %v1058_v16, %v2318_v6   ;;  %v1094_v58 = vsel %vm1086_vm9, %v2302_v58, %v1058_v16   ;;  %v1092_v47 = vsel %vm1088_vm10, %v1060_v27, %v2310_v12   ;;  %v1096_v11 = vsel %vm1088_vm10, %v2294_v11, %v1060_v27   ;;  %1106 = vmax.xlane.f32.xlu0 (%p1041_p6), %v1105_v54 }
 0x494   : >> { %v2951_v12 = vmov %v1092_v47  ;;  %v2953_v6 = vmov %v1090_v46  ;;  %vm1098_vm13 = vcmp.ge.f32.partialorder (%p1041_p6), %v2725_v39, %v1090_v46  ;;  %vm1100_vm14 = vcmp.ge.f32.partialorder (%p1041_p6), %v2737_v51, %v1092_v47  ;;  %1112 = vmax.xlane.f32.xlu1 (%p1041_p6), %v1111_v55 }
 0x495   : > { %v1102_v52 = vsel %vm1098_vm13, %v2725_v39, -inf  ;;  %v1104_v53 = vsel %vm1100_vm14, %v2737_v51, -inf }
 0x496   : > { %v1108_v38 = vsel %vm826_vm2, %v1102_v52, -inf  ;;  %v1114_v39 = vsel %vm826_vm2, %v1104_v53, -inf }
 0x497   : > { %1109 = vmax.xlane.f32.xlu0 %v1108_v38 }
 0x498   : > { %1115 = vmax.xlane.f32.xlu1 %v1114_v39 }
 0x520   : > { %v1107_v50 = vpop.xlane.xlu0 %1106 }
 0x521   : > { %v1113_v51 = vpop.xlane.xlu1 %1112  ;;  %v1117_v56 = vsub.f32 %v1101_v48, %v1107_v50 }
 0x522   : > { %v1119_v61 = vsub.f32 %v1103_v49, %v1113_v51 }
 0x523   : > { %v1121_v62 = vmul.f32 1.442695, %v1117_v56 }
 0x524   : > { %v1125_v63 = vmul.f32 1.442695, %v1119_v61  ;;  %v1110_v1 = vpop.xlane.xlu0 %1109 }
 0x525   : > { %v1116_v2 = vpop.xlane.xlu1 %1115  ;;  %2022 = vpow2.f32 %v1121_v62  ;;  %v1118_v3 = vsub.f32 %v1102_v52, %v1110_v1 }
 0x526   : > { %v1120_v4 = vsub.f32 %v1104_v53, %v1116_v2  ;;  %2024 = vpow2.f32 %v1125_v63 }
 0x527   : > { %v1123_v57 = vmul.f32 1.442695, %v1118_v3 }
 0x528   : > { %v1127_v58 = vmul.f32 1.442695, %v1120_v4 }
 0x529   : > { %2026 = vpow2.f32 %v1123_v57 }
 0x52a   : > { %2028 = vpow2.f32 %v1127_v58  ;;  %v2021_v58 = vld [vmem:[#allocation8 + $0x8] sm:$0xff]  }
 0x52f   : > { %v2023_v5 = vpop.eup %2022 }
 0x530   : > { %v2025_v6 = vpop.eup %2024  ;;  %v1129_v7 = vsel %vm826_vm2, %v2023_v5, 0.0 }
 0x531   : > { %1130 = vadd.xlane.f32.xlu0 %v1129_v7  ;;  %v1135_v8 = vsel %vm826_vm2, %v2025_v6, 0.0 }
 0x533   : > { %v2027_v9 = vpop.eup %2026 }
 0x534   : > { %v2029_v10 = vpop.eup %2028  ;;  %v1132_v11 = vsel %vm826_vm2, %v2027_v9, 0.0 }
 0x535   : > { %1136 = vadd.xlane.f32.xlu0 %v1135_v8  ;;  %1133 = vadd.xlane.f32.xlu1 %v1132_v11  ;;  %v1138_v12 = vsel %vm826_vm2, %v2029_v10, 0.0 }
 0x539   : > { %1139 = vadd.xlane.f32.xlu1 %v1138_v12 }
 0x5be   : > { %v1131_v60 = vpop.xlane.xlu0 %1130 }
 0x5bf   : > { %2030 = vrcp.f32 %v1131_v60 }
 0x5c2   : > { %v1134_v14 = vpop.xlane.xlu1 %1133  ;;  %v1137_v15 = vpop.xlane.xlu0 %1136 }
 0x5c3   : > { %2032 = vrcp.f32 %v1134_v14 }
 0x5c4   : > { %2034 = vrcp.f32 %v1137_v15 }
 0x5c6   : > { %v1140_v22 = vpop.xlane.xlu1 %1139 }
 0x5c7   : > { %2036 = vrcp.f32 %v1140_v22 }
 0x5c9   : > { %v2031_v29 = vpop.eup %2030 }
 0x5ca   : > { %v1145_v16 = vmul.f32 %v2031_v29, %v2023_v5 }
 0x5cc   : > { %v1149_v17 = vpack.c.bf16 %v1145_v16, %v1145_v16 }
 0x5cd   : > { %v2033_v30 = vpop.eup %2032 }
 0x5ce   : > { %v2035_v18 = vpop.eup %2034  ;;  %1815 = vmatmul.mubr.msk.bf16.vlgmr.msra.gmra.mrb[8].mxu1 %vm826_vm2, %v1149_v17  ;;  %v1146_v19 = vmul.f32 %v2033_v30, %v2027_v9 }
 0x5cf   : > { %1825 = vmatpush3.bf16.msra.mxu1 %v1250_v23  ;;  %1826 = vmatprep.mubr.msk.bf16.mxu1 %vm2336_vm0, %v2335_v0  ;;  %v1147_v27 = vmul.f32 %v2035_v18, %v2025_v6 }
 0x5d0   : > { %v1150_v20 = vpack.c.bf16 %v1146_v19, %v1146_v19  ;;  %1836 = vmatprep.subr.bf16.mxu1 %v2335_v0 }
 0x5d1   : > { %v2037_v24 = vpop.eup %2036  ;;  %v1151_v31 = vpack.c.bf16 %v1147_v27, %v1147_v27 }
 0x5d2   : > { %1821 = vmatmul.mubr.msk.bf16.vlgmr.msra.gmra.mrb[12].mxu0 %vm826_vm2, %v1150_v20  ;;  %v1148_v28 = vmul.f32 %v2037_v24, %v2029_v10 }
 0x5d3   : > { %1831 = vmatpush3.bf16.msra.mxu0 %v1296_v21  ;;  %1832 = vmatprep.mubr.msk.bf16.mxu0 %vm2336_vm0, %v2335_v0 }
 0x5d4   : > { %v1152_v26 = vpack.c.bf16 %v1148_v28, %v1148_v28 }
 0x5d6   : > { %1827 = vmatmul.mubr.msk.bf16.vlgmr.msra.gmra.mrb[12].mxu1 %vm826_vm2, %v1151_v31  ;;  %v1750_v31 = vld [vmem:[#allocation10] ss:$0 sm:$0xff] }
 0x5d7   : > { %1840 = vmatprep.mubr.msk.bf16.mxu1 %vm2336_vm0, %v2335_v0  ;;  %1837 = vmatpush3.bf16.msra.mxu1 %v2020_v33  ;;  %vm1487_vm0 = vcmask 130048  }
 0x5d8   : > { %1838 = vmatprep.subr.bf16.mxu1 %v2335_v0 }
 0x5da   : > { %1833 = vmatmul.mubr.msk.bf16.vlgmr.msra.gmra.mrb[16].mxu0 %vm826_vm2, %v1152_v26 }
 0x5db   : > { %1839 = vmatpush3.bf16.msra.mxu1 %v2021_v58 }
 0x6a1   : > { %v1194_v34 = vpop.f32.mrb[8].mxu1 }
 0x6a2   : > { %v1816_v35 = vpop.f32.mrb[9].mxu1 }
 0x6a3   : > { %v1197_v36 = vpop.f32.mrb[10].mxu1 }
 0x6a4   : > { %v1817_v37 = vpop.f32.mrb[11].mxu1 }
 0x6a5   : > { %v1240_v40 = vpop.f32.mrb[12].mxu0 }
 0x6a6   : > { %v1822_v41 = vpop.f32.mrb[13].mxu0 }
 0x6a7   : > { %v1243_v42 = vpop.f32.mrb[14].mxu0 }
 0x6a8   : > { %v1823_v43 = vpop.f32.mrb[15].mxu0 }
 0x6a9   : > { %v1286_v44 = vpop.f32.mrb[12].mxu1 }
 0x6aa   : > { %v1338_v45 = vcombine.low %v1194_v34, %v1286_v44  ;;  %v1339_v46 = vcombine.high %v1194_v34, %v1286_v44  ;;  %v1828_v47 = vpop.f32.mrb[13].mxu1 }
 0x6ab   : > { %v1289_v48 = vpop.f32.mrb[14].mxu1 }
 0x6ac   : > { %v1829_v49 = vpop.f32.mrb[15].mxu1  ;;  %v1346_v0 = vrot.slane %v1338_v45, %v2625_v25  ;;  %v1353_v39 = vrot.slane %v1339_v46, %v2625_v25 }
 0x6ad   : > { %v1332_v52 = vpop.f32.mrb[16].mxu0 }
 0x6ae   : > { %v1354_v53 = vcombine.low %v1240_v40, %v1332_v52  ;;  %v1355_v54 = vcombine.high %v1240_v40, %v1332_v52  ;;  %v1834_v55 = vpop.f32.mrb[17].mxu0 }
 0x6af   : > { %v1335_v38 = vpop.f32.mrb[18].mxu0 }
 0x6b0   : > { %v1362_v50 = vrot.slane %v1354_v53, %v2625_v25  ;;  %v1369_v51 = vrot.slane %v1355_v54, %v2625_v25  ;;  %v1835_v56 = vpop.f32.mrb[19].mxu0 }
 0x6b2   : > { %v1370_v61 = vcombine.low %v1346_v0, %v1362_v50  ;;  %v1371_v62 = vcombine.high %v1346_v0, %v1362_v50  ;;  %v1386_v63 = vcombine.low %v1353_v39, %v1369_v51  ;;  %v1387_v1 = vcombine.high %v1353_v39, %v1369_v51 }
 0x6b4   : > { %v1378_v2 = vrot.slane %v1370_v61, %v2627_v32  ;;  %v1385_v3 = vrot.slane %v1371_v62, %v2627_v32  ;;  %v1394_v4 = vrot.slane %v1386_v63, %v2627_v32  ;;  %v1401_v57 = vrot.slane %v1387_v1, %v2627_v32 }
 0x6b6   : > { %v1406_v5 = vcombine.low %v1378_v2, %v1385_v3  ;;  %v1748_v6 = vcombine.high %v1378_v2, %v1385_v3  ;;  %v1422_v7 = vcombine.low %v1394_v4, %v1401_v57  ;;  %v1749_v8 = vcombine.high %v1394_v4, %v1401_v57 }
 0x6b8   : > { %v1413_v9 = vrot.slane %v1406_v5, %v2625_v25  ;;  %v1421_v10 = vrot.slane %v1748_v6, %v2625_v25  ;;  %v1429_v11 = vrot.slane %v1422_v7, %v2625_v25  ;;  %v1437_v12 = vrot.slane %v1749_v8, %v2625_v25 }
 0x6ba   : > { %v1439_v13 = vcombine.high %v1413_v9, %v1421_v10  ;;  %v1455_v59 = vcombine.high %v1429_v11, %v1437_v12  ;;  %v1438_v60 = vcombine.low %v1413_v9, %v1421_v10  ;;  %v1454_v14 = vcombine.low %v1429_v11, %v1437_v12 }
 0x6bc   : > { %v1453_v15 = vrot.slane %v1439_v13, %v2627_v32  ;;  %v1469_v22 = vrot.slane %v1455_v59, %v2627_v32  ;;  %v1446_v29 = vrot.slane %v1438_v60, %v2627_v32  ;;  %v1462_v16 = vrot.slane %v1454_v14, %v2627_v32 }
 0x6be   : > { %v1472_v17 = vcombine.low %v1453_v15, %v1469_v22  ;;  %v1471_v23 = vcombine.high %v1446_v29, %v1462_v16  ;;  %v1473_v30 = vcombine.high %v1453_v15, %v1469_v22  ;;  %v1470_v18 = vcombine.low %v1446_v29, %v1462_v16 }
 0x6c0   : > { %1479 = vrot.lane.b32.xlu1 %v1472_v17, %s2345_s14  ;;  %1475 = vrot.lane.b32.xlu0 %v1471_v23, %s2346_s10 }
 0x6c4   : > { %1483 = vrot.lane.b32.xlu1 %v1473_v30, %s2347_s17 }
 0x732   : > { %v1480_v25 = vpop.permute.xlu1 %1479  ;;  %v1476_v19 = vpop.permute.xlu0 %1475 }
 0x733   : > { %v1486_v20 = vsel %vm826_vm2, %v1470_v18, %v1476_v19 }
 0x734   : > { %v1488_v32 = vsel %vm1487_vm0, %v1486_v20, %v1480_v25 }
 0x736   : > { %v1484_v21 = vpop.permute.xlu1 %1483 }
 0x737   : > { %v1490_v27 = vsel %vm1489_vm3, %v1488_v32, %v1484_v21 }
 0x738   : > { %v1491_v24 = vpack.c.bf16 %v1490_v27, %v1490_v27 }
 0x73a   : > { %1841 = vmatmul.mubr.msk.bf16.vlgmr.msra.gmra.mrb[16].mxu1 %vm320_vm1, %v1491_v24 }
 0x80d   : > { %v1552_v28 = vpop.f32.mrb[16].mxu1 }
 0x80e   : > { %v1553_v26 = vadd.f32 %v1750_v31, %v1552_v28  ;;  %v1842_v33 = vpop.f32.mrb[17].mxu1 }
 0x80f   : > { %v1555_v34 = vpop.f32.mrb[18].mxu1 }
 0x810   : > { %1558 = vst.msk [vmem:[%s2749_s7] sm:$0xff] %vm320_vm1, %v1553_v26  ;;  %v1843_v35 = vpop.f32.mrb[19].mxu1 }
 0x811   : > { %2193 = shalt.err (!%p2190_p2)
}
 0x812   : > { %s2194_s11 = scalar_lea.hbm %s2882_s13, 128  ;;  %s2198_s8 = scalar_lea.hbm %s2933_s5, 256 }
 0x813   : > { %p2195_p8 = scmp.ne.s32.totalorder %s2882_s13, %s2194_s11  ;;  %p2199_p11 = scmp.lt.u32.totalorder %s2882_s13, %s2933_s5 }
 0x814   : > { %p2200_p1 = scmp.lt.u32.totalorder %s2198_s8, %s2194_s11  ;;  %p2202_p5 = scmp.lt.u32.totalorder %s2194_s11, %s2882_s13 }
 0x815   : > { %p2196_p4 = pnand %p2195_p8, %p2955_p7 }
 0x816   : > { %p2201_p6 = por %p2200_p1, %p2199_p11 }
 0x817   : > { %p2197_p10 = pneg %p2196_p4 }
 0x818   : > { %p2203_p9 = por %p2202_p5, %p2201_p6 }
 0x81a   : > { %p2204_p12 = pnand %p2203_p9, %p2197_p10 }
 0x81c   : > { %2207 = shalt.err (!%p2204_p12)
}
 0x81d   : > { %1862 = dma.vmem_to_hbm [thread:$0]  (%p2955_p7), %s2884_s30, 128, %s2882_s13, %s1560_s25  }
 0x81e PF: > { %s1585_s17 = sand.u32 1, %s2278_s18   ;;  %p2956_p3 = scmp.ne.s32.totalorder %s2944_s12, 0 }
 0x81f   : > { %p2957_p13 = scmp.ge.s32.totalorder %s2290_s21, 2  ;;  %s1586_s22 = scalar_lea.sflag [#allocation4], %s1585_s17 }
 0x821   : > { %p1882_p0 = pnand %p2957_p13, %p2956_p3 }
 0x823   : > { %2273 = dma.done.wait (!%p1882_p0), %s1586_s22, 128  }
 0x824   : > { %2275 = vsyncadd (!%p1882_p0), %s1586_s22, 4294967168  ;;  %p20_p2 = scmp.ge.s32.totalorder %s2520_s28, 4   ;;  %s2958_s18 = smov %s2282_s19 }
 0x825   : > { %s2959_s19 = smov %s2286_s20  ;;  %s2960_s20 = smov %s2531_s16 }
 0x826   : > { %s2961_s21 = smov %s2520_s28  ;;  %22 = sbr.rel (!%p20_p2) target bundleno = 7 (0x7), region = 119 }
 0x82d   :  { %1591 = vsyncpa [#allocation3], 1 }
 0x82e   :  { %1593 = vsyncpa [#allocation3 + $0x1], 1 }
 0x82f   :  { %1594 = vsyncpa [#allocation6], 1 }
 0x830   :  { %1595 = vsyncpa [#allocation9], 1 }
 0x831   :  { %1596 = vsyncpa [#allocation4], 1 }
 0x832   :  { %1598 = vsyncpa [#allocation4 + $0x1], 1 }

// kernel: model_forward.15
= control target key start
LH: loop header
LB: loop body
LE: loop exit
PB: predicated region body
PF: predicated region fallthrough
CT: control target
= control target key end

     0   :  { %12 = vsyncpa [#allocation3], 0  ;;  %s2831_s0 = inlined_call_operand.hbm [shape: f32[2,8,32], index: 0, kind: input, shape index: {}]   ;;  %s2832_s1 = inlined_call_operand.hbm [shape: bf16[32,96], index: 1, kind: input, shape index: {}]   ;;  %s2833_s2 = inlined_call_operand.hbm [shape: f32[1,96], index: 2, kind: input, shape index: {}]   ;;  %s2834_s3 = inlined_call_operand.hbm [shape: bf16[32,32], index: 3, kind: input, shape index: {}]   ;;  %s2835_s4 = inlined_call_operand.hbm [shape: f32[1,32], index: 4, kind: input, shape index: {}]   ;;  %s2836_s5 = inlined_call_operand.hbm [shape: f32[1,32], index: 5, kind: input, shape index: {}]   ;;  %s2837_s6 = inlined_call_operand.hbm [shape: f32[1,32], index: 6, kind: input, shape index: {}]   ;;  %s2838_s7 = inlined_call_operand.hbm [shape: f32[2,8,32], index: 7, kind: output, shape index: {}]  }
   0x1   :  { %14 = vsyncpa [#allocation3 + $0x1], 0 }
   0x2   :  { %15 = vsyncpa [#allocation6], 0 }
   0x3   :  { %16 = vsyncpa [#allocation9], 0 }
   0x4   :  { %17 = vsyncpa [#allocation12], 0 }
   0x5   :  { %18 = vsyncpa [#allocation4], 0 }
   0x6   :  { %20 = vsyncpa [#allocation4 + $0x1], 0  ;;  %s2335_s24 = smov 0   ;;  %s2337_s25 = smov 0  }
   0x7   :  { %s2339_s26 = smov 0   ;;  %s2341_s27 = smov 0  }
   0x8 LB: > { %s2273_s28 = smov [#allocation5]   ;;  %s2356_s30 = sadd.s32 4294967295, %s2271_s27   ;;  %s2271_s27 = sphi %s2341_s27, %s2864_s27   ;;  %s2267_s26 = sphi %s2339_s26, %s2863_s26   ;;  %s2263_s25 = sphi %s2337_s25, %s2862_s25   ;;  %s2259_s24 = sphi %s2335_s24, %s2861_s24  }
   0x9   : > { %s221_s29 = sshll.u32 %s2273_s28, 4  ;;  %p1717_p0 = scmp.ge.s32.totalorder %s2271_s27, 1  ;;  %s2361_s29 = int_to_ptr.vmem [resolvable:$true] %s221_s29 }
   0xa   : > { %p2839_p1 = scmp.eq.s32.totalorder %s2356_s30, 0  ;;  %p209_p2 = scmp.lt.s32.totalorder %s2271_s27, 3 }
   0xb   : > { %s2274_s9 = smov [#allocation8]   ;;  %s2275_s12 = smov [#allocation11]  }
   0xc   : > { %p2363_p3 = pnand %p1717_p0, %p209_p2  ;;  %s245_s10 = sshll.u32 %s2274_s9, 4  ;;  %s2376_s10 = int_to_ptr.vmem [resolvable:$true] %s245_s10 }
   0xd   : > { %s270_s13 = sshll.u32 %s2275_s12, 4  ;;  %s1995_s16 = scalar_lea.hbm %s2832_s1, 256  ;;  %s2378_s13 = int_to_ptr.vmem [resolvable:$true] %s270_s13 }
   0xe   : > { %s2842_s8 = scalar_select %p2363_p3, 1, 0 }
   0xf   : > { %p1880_p5 = pneg %p2363_p3  ;;  %p1996_p7 = scmp.ne.s32.totalorder %s2832_s1, %s1995_s16 }
  0x10   : > { %p2002_p11 = scmp.lt.u32.totalorder %s1995_s16, %s2832_s1 }
  0x11   : > { %p2372_p6 = pnand %p1880_p5, %p2839_p1 }
  0x13   : > { %p2388_p8 = pneg %p2372_p6 }
  0x15   : > { %p1998_p9 = pnand %p2388_p8, %p1996_p7 }
  0x17   : > { %p1999_p10 = pneg %p1998_p9 }
  0x19   : > { %p2004_p12 = pnand %p2002_p11, %p1999_p10 }
  0x1b   : > { %2007 = shalt.err (!%p2004_p12)
}
  0x1c   : > { %s2008_s22 = scalar_lea.vmem %s2361_s29, 256  ;;  %p2016_p5 = scmp.lt.s32.totalorder %s2361_s29, %s2361_s29 }
  0x1d   : > { %p2009_p13 = scmp.ne.s32.totalorder %s2361_s29, %s2008_s22  ;;  %p2017_p4 = scmp.lt.s32.totalorder %s2008_s22, %s2008_s22 }
  0x1f   : > { %p2011_p0 = pnand %p2009_p13, %p2388_p8  ;;  %p2018_p7 = por %p2017_p4, %p2016_p5 }
  0x21   : > { %p2012_p2 = pneg %p2011_p0 }
  0x23   : > { %p2019_p9 = pnand %p2018_p7, %p2012_p2 }
  0x25   : > { %2022 = shalt.err (!%p2019_p9)
}
  0x26   : > { %s2276_s23 = smov 64   ;;  %s2277_s28 = smov 4  }
  0x27   : > { %1883 = dma.hbm_to_vmem [thread:$0]  (!%p2372_p6), %s2832_s1, 256, %s2361_s29, [#allocation6], %s2276_s23, %s2276_s23, %s2277_s28  }
  0x28   : > { %s2023_s16 = scalar_lea.hbm %s2834_s3, 256 }
  0x29   : > { %p2024_p4 = scmp.ne.s32.totalorder %s2834_s3, %s2023_s16  ;;  %p2030_p12 = scmp.lt.u32.totalorder %s2023_s16, %s2834_s3 }
  0x2b   : > { %p2026_p10 = pnand %p2024_p4, %p2388_p8 }
  0x2d   : > { %p2027_p11 = pneg %p2026_p10 }
  0x2f   : > { %p2032_p13 = pnand %p2030_p12, %p2027_p11 }
  0x31   : > { %2035 = shalt.err (!%p2032_p13)
}
  0x32   : > { %s2036_s29 = scalar_lea.vmem %s2376_s10, 256  ;;  %p2044_p7 = scmp.lt.s32.totalorder %s2376_s10, %s2376_s10 }
  0x33   : > { %p2037_p0 = scmp.ne.s32.totalorder %s2376_s10, %s2036_s29  ;;  %p2045_p9 = scmp.lt.s32.totalorder %s2036_s29, %s2036_s29 }
  0x35   : > { %p2039_p2 = pnand %p2037_p0, %p2388_p8  ;;  %p2046_p4 = por %p2045_p9, %p2044_p7 }
  0x37   : > { %p2040_p5 = pneg %p2039_p2 }
  0x39   : > { %p2047_p10 = pnand %p2046_p4, %p2040_p5 }
  0x3b   : > { %2050 = shalt.err (!%p2047_p10)
}
  0x3c   : > { %1889 = dma.hbm_to_vmem [thread:$0]  (!%p2372_p6), %s2834_s3, 256, %s2376_s10, [#allocation9], %s2276_s23, %s2276_s23, %s2277_s28  }
  0x3d   : > { %s2051_s15 = scalar_lea.hbm %s2836_s5, 16 }
  0x3e   : > { %p2052_p11 = scmp.ne.s32.totalorder %s2836_s5, %s2051_s15  ;;  %p2058_p0 = scmp.lt.u32.totalorder %s2051_s15, %s2836_s5 }
  0x40   : > { %p2054_p12 = pnand %p2052_p11, %p2388_p8 }
  0x42   : > { %p2055_p13 = pneg %p2054_p12 }
  0x44   : > { %p2060_p2 = pnand %p2058_p0, %p2055_p13 }
  0x46   : > { %2063 = shalt.err (!%p2060_p2)
}
  0x47   : > { %s2064_s10 = scalar_lea.vmem %s2378_s13, 16  ;;  %s2071_s23 = scalar_lea.vmem %s2378_s13, 32 }
  0x48   : > { %p2065_p5 = scmp.ne.s32.totalorder %s2378_s13, %s2064_s10  ;;  %p2072_p4 = scmp.lt.s32.totalorder %s2378_s13, %s2378_s13 }
  0x49   : > { %p2073_p10 = scmp.lt.s32.totalorder %s2071_s23, %s2064_s10 }
  0x4a   : > { %p2067_p7 = pnand %p2065_p5, %p2388_p8 }
  0x4b   : > { %p2074_p11 = por %p2073_p10, %p2072_p4 }
  0x4c   : > { %p2068_p9 = pneg %p2067_p7 }
  0x4e   : > { %p2075_p12 = pnand %p2074_p11, %p2068_p9 }
  0x50   : > { %2078 = shalt.err (!%p2075_p12)
}
  0x51   : > { %1895 = dma.hbm_to_vmem [thread:$0]  (!%p2372_p6), %s2836_s5, 16, %s2378_s13, [#allocation12]  }
  0x52   : > { %s2278_s29 = smov [#allocation7]   ;;  %s2279_s9 = smov [#allocation10]  }
  0x53   : > { %s235_s22 = sshll.u32 %s2278_s29, 4  ;;  %s259_s12 = sshll.u32 %s2279_s9, 4  ;;  %s236_s22 = int_to_ptr.vmem [resolvable:$true] %s235_s22  ;;  %s260_s12 = int_to_ptr.vmem [resolvable:$true] %s259_s12 }
  0x54   : > { %s2079_s16 = scalar_lea.hbm %s2833_s2, 16 }
  0x55   : > { %p2080_p13 = scmp.ne.s32.totalorder %s2833_s2, %s2079_s16  ;;  %p2086_p5 = scmp.lt.u32.totalorder %s2079_s16, %s2833_s2 }
  0x57   : > { %p2082_p0 = pnand %p2080_p13, %p2388_p8 }
  0x59   : > { %p2083_p2 = pneg %p2082_p0 }
  0x5b   : > { %p2088_p7 = pnand %p2086_p5, %p2083_p2 }
  0x5d   : > { %2091 = shalt.err (!%p2088_p7)
}
  0x5e   : > { %s2092_s13 = scalar_lea.vmem %s236_s22, 16  ;;  %s2099_s23 = scalar_lea.vmem %s236_s22, 32 }
  0x5f   : > { %p2093_p9 = scmp.ne.s32.totalorder %s236_s22, %s2092_s13  ;;  %p2100_p11 = scmp.lt.s32.totalorder %s236_s22, %s236_s22 }
  0x60   : > { %p2101_p12 = scmp.lt.s32.totalorder %s2099_s23, %s2092_s13 }
  0x61   : > { %p2095_p4 = pnand %p2093_p9, %p2388_p8 }
  0x62   : > { %p2102_p1 = por %p2101_p12, %p2100_p11 }
  0x63   : > { %p2096_p10 = pneg %p2095_p4 }
  0x65   : > { %p2103_p3 = pnand %p2102_p1, %p2096_p10 }
  0x67   : > { %2106 = shalt.err (!%p2103_p3)
}
  0x68   : > { %1886 = dma.hbm_to_vmem [thread:$0]  (!%p2372_p6), %s2833_s2, 16, %s236_s22, [#allocation6]  }
  0x69   : > { %s2107_s14 = scalar_lea.hbm %s2835_s4, 16 }
  0x6a   : > { %p2108_p13 = scmp.ne.s32.totalorder %s2835_s4, %s2107_s14  ;;  %p2114_p3 = scmp.lt.u32.totalorder %s2107_s14, %s2835_s4 }
  0x6c   : > { %p2110_p0 = pnand %p2108_p13, %p2388_p8 }
  0x6e   : > { %p2111_p1 = pneg %p2110_p0 }
  0x70   : > { %p2116_p2 = pnand %p2114_p3, %p2111_p1 }
  0x72   : > { %2119 = shalt.err (!%p2116_p2)
}
  0x73   : > { %s2120_s20 = scalar_lea.vmem %s260_s12, 16  ;;  %s2127_s22 = scalar_lea.vmem %s260_s12, 32 }
  0x74   : > { %p2121_p5 = scmp.ne.s32.totalorder %s260_s12, %s2120_s20  ;;  %p2128_p4 = scmp.lt.s32.totalorder %s260_s12, %s260_s12 }
  0x75   : > { %p2129_p10 = scmp.lt.s32.totalorder %s2127_s22, %s2120_s20 }
  0x76   : > { %p2123_p7 = pnand %p2121_p5, %p2388_p8 }
  0x77   : > { %p2130_p11 = por %p2129_p10, %p2128_p4 }
  0x78   : > { %p2124_p9 = pneg %p2123_p7 }
  0x7a   : > { %p2131_p12 = pnand %p2130_p11, %p2124_p9 }
  0x7c   : > { %2134 = shalt.err (!%p2131_p12)
}
  0x7d   : > { %1892 = dma.hbm_to_vmem [thread:$0]  (!%p2372_p6), %s2835_s4, 16, %s260_s12, [#allocation9]  }
  0x7e   : > { %s2280_s23 = smov [#allocation13]   ;;  %s2135_s9 = scalar_lea.hbm %s2837_s6, 16 }
  0x7f   : > { %s281_s28 = sshll.u32 %s2280_s23, 4  ;;  %p2136_p13 = scmp.ne.s32.totalorder %s2837_s6, %s2135_s9  ;;  %s282_s28 = int_to_ptr.vmem [resolvable:$true] %s281_s28 }
  0x80   : > { %p2142_p3 = scmp.lt.u32.totalorder %s2135_s9, %s2837_s6 }
  0x81   : > { %p2138_p0 = pnand %p2136_p13, %p2388_p8 }
  0x83   : > { %p2139_p1 = pneg %p2138_p0 }
  0x85   : > { %p2144_p2 = pnand %p2142_p3, %p2139_p1 }
  0x87   : > { %2147 = shalt.err (!%p2144_p2)
}
  0x88   : > { %s2148_s12 = scalar_lea.vmem %s282_s28, 16  ;;  %s2155_s18 = scalar_lea.vmem %s282_s28, 32 }
  0x89   : > { %p2149_p5 = scmp.ne.s32.totalorder %s282_s28, %s2148_s12  ;;  %p2156_p4 = scmp.lt.s32.totalorder %s282_s28, %s282_s28 }
  0x8a   : > { %p2157_p10 = scmp.lt.s32.totalorder %s2155_s18, %s2148_s12 }
  0x8b   : > { %p2151_p7 = pnand %p2149_p5, %p2388_p8 }
  0x8c   : > { %p2158_p11 = por %p2157_p10, %p2156_p4 }
  0x8d   : > { %p2152_p9 = pneg %p2151_p7 }
  0x8f   : > { %p2159_p12 = pnand %p2158_p11, %p2152_p9 }
  0x91   : > { %2162 = shalt.err (!%p2159_p12)
}
  0x92   : > { %1898 = dma.hbm_to_vmem [thread:$0]  (!%p2372_p6), %s2837_s6, 16, %s282_s28, [#allocation12]  }
  0x93   : > { %s1716_s19 = sadd.s32 4294967294, %s2271_s27   ;;  %s2512_s11 = sadd.s32 1, %s2271_s27  }
  0x94   : > { %s30_s10 = ssub.s32 %s2271_s27, %s2512_s11  ;;  %s33_s13 = sadd.s32 1, %s2267_s26 }
  0x95   : > { %p31_p8 = scmp.eq.s32.totalorder %s30_s10, 0  ;;  %p40_p13 = scmp.ne.s32.totalorder %s2267_s26, %s2263_s25 }
  0x96   : > { %p41_p0 = scmp.eq.s32.totalorder %s2271_s27, 0  ;;  %p46_p1 = scmp.ne.s32.totalorder %s2263_s25, %s2259_s24 }
  0x97   : > { %s2523_s23 = scalar_select %p31_p8, %s2267_s26, %s33_s13  }
  0x98   : > { %p2525_p3 = por %p41_p0, %p40_p13  ;;  %p2846_p2 = scmp.eq.s32.totalorder %s2356_s30, 0 }
  0x99   : > { %p196_p5 = scmp.eq.s32.totalorder %s2356_s30, 1  ;;  %p202_p7 = scmp.eq.s32.totalorder %s1716_s19, 1 }
  0x9a   : > { %p2531_p6 = por %p2846_p2, %p46_p1  ;;  %p1913_p9 = scmp.lt.s32.totalorder %s2271_s27, 2 }
  0x9b   : > { %s292_s29 = sand.u32 1, %s2267_s26   ;;  %p2538_p4 = por %p196_p5, %p40_p13 }
  0x9c   : > { %p2542_p10 = por %p202_p7, %p46_p1  ;;  %s1725_s15 = sshll.u32 %s292_s29, 3 }
  0x9d   : > { %s2848_s9 = scalar_select %p2538_p4, 1, 0 }
  0x9e   : > { %s2849_s14 = scalar_select %p2542_p10, 1, 0 }
  0x9f   : > { %s1726_s16 = sshll.u32 %s2271_s27, 7  ;;  %s296_s20 = scalar_lea.vmem [#allocation2], %s1725_s15 }
  0xa0   : > { %s2550_s18 = scalar_lea.hbm %s2831_s0, %s1726_s16  ;;  %s303_s22 = sshll.u32 %s296_s20, 4  ;;  %s2552_s22 = int_to_ptr.vmem [resolvable:$true] %s303_s22 }
  0xa1   : > { %p2556_p11 = pnand %p1913_p9, %p2525_p3  ;;  %s293_s10 = scalar_lea.sflag [#allocation3], %s292_s29 }
  0xa2   : > { %s2163_s13 = scalar_lea.hbm %s2550_s18, 128  ;;  %s2168_s17 = scalar_lea.hbm %s2831_s0, 256 }
  0xa3   : > { %p2164_p12 = scmp.ne.s32.totalorder %s2550_s18, %s2163_s13  ;;  %p2165_p8 = pneg %p2556_p11 }
  0xa4   : > { %p2169_p1 = scmp.lt.u32.totalorder %s2550_s18, %s2831_s0  ;;  %p2170_p3 = scmp.lt.u32.totalorder %s2168_s17, %s2163_s13 }
  0xa5   : > { %p2166_p13 = pnand %p2165_p8, %p2164_p12  ;;  %p2172_p5 = scmp.lt.u32.totalorder %s2163_s13, %s2550_s18 }
  0xa6   : > { %p2171_p2 = por %p2170_p3, %p2169_p1 }
  0xa7   : > { %p2167_p0 = pneg %p2166_p13 }
  0xa8   : > { %p2173_p7 = por %p2172_p5, %p2171_p2 }
  0xaa   : > { %p2174_p9 = pnand %p2173_p7, %p2167_p0 }
  0xac   : > { %2177 = shalt.err (!%p2174_p9)
}
  0xad   : > { %s2178_s29 = scalar_lea.vmem %s2552_s22, 128  ;;  %s2281_s20 = smov [#allocation2]  }
  0xae   : > { %p2179_p12 = scmp.ne.s32.totalorder %s2552_s22, %s2178_s29  ;;  %s2183_s15 = sshll.u32 %s2281_s20, 4  ;;  %s2184_s15 = int_to_ptr.vmem [resolvable:$false] %s2183_s15 }
  0xaf   : > { %s2185_s16 = scalar_lea.vmem %s2184_s15, 256  ;;  %p2186_p4 = scmp.lt.s32.totalorder %s2552_s22, %s2184_s15 }
  0xb0   : > { %p2181_p13 = pnand %p2179_p12, %p2165_p8  ;;  %p2187_p1 = scmp.lt.s32.totalorder %s2185_s16, %s2178_s29 }
  0xb2   : > { %p2182_p10 = pneg %p2181_p13  ;;  %p2188_p3 = por %p2187_p1, %p2186_p4 }
  0xb4   : > { %p2189_p2 = pnand %p2188_p3, %p2182_p10 }
  0xb6   : > { %2192 = shalt.err (!%p2189_p2)
}
  0xb7   : > { %1902 = dma.hbm_to_vmem [thread:$0]  (!%p2556_p11), %s2550_s18, 128, %s2552_s22, %s293_s10  }
  0xb8   : > { %p2851_p0 = scmp.ne.s32.totalorder %s2842_s8, 0 }
  0xb9   : > { %s2588_s13 = sand.u32 (!%p2851_p0), 1, %s2263_s25  }
  0xba   : > { %312 = sbr.rel (%p2851_p0) target bundleno = 2170 (0x87a), region = 48  ;;  %s1728_s17 = sshll.u32 (!%p2851_p0), %s2588_s13, 3 }
  0xbb   : > { %s315_s21 = scalar_lea.sflag (!%p2851_p0), [#allocation3], %s2588_s13  ;;  %s318_s12 = scalar_lea.vmem (!%p2851_p0), [#allocation2], %s1728_s17 }
  0xc1   : > { %2238 = dma.done.wait (%p2531_p6), %s315_s21, 128  }
  0xc2   : > { %2240 = vsyncadd (%p2531_p6), %s315_s21, 4294967168  ;;  %p2852_p4 = scmp.eq.s32.totalorder %s2356_s30, 0 }
  0xc4   : > { %2242 = dma.done.wait (%p2852_p4), [#allocation6], 272   ;;  %p2853_p10 = pmov %p2852_p4 }
  0xc5   : > { %p2854_p11 = pmov %p2852_p4 }
  0xc6   : > { %2244 = vsyncadd (%p2853_p10), [#allocation6], 4294967024 }
  0xc7   : > { %2246 = dma.done.wait (%p2854_p11), [#allocation9], 272   ;;  %p2855_p8 = pmov %p2852_p4 }
  0xc8   : > { %p2856_p5 = pmov %p2852_p4 }
  0xc9   : > { %2248 = vsyncadd (%p2855_p8), [#allocation9], 4294967024 }
  0xca   : > { %2250 = dma.done.wait (%p2856_p5), [#allocation12], 32   ;;  %p2857_p7 = pmov %p2852_p4 }
  0xcb   : > { %v2282_v0 = vmov 0.0   ;;  %vm2283_vm0 = vmmov 0   ;;  %v1973_v1 = vld [vmem:[#allocation5] sm:$0xff]   ;;  %v1974_v2 = vld [vmem:[#allocation5 + $0x8] sm:$0xff]   ;;  %v2616_v3 = vld [vmem:[%s318_s12] sm:$0xff]  ;;  %vm399_vm1 = vcmask 261120   ;;  %v459_v17 = vlaneseq }
  0xcc   : > { %2252 = vsyncadd (%p2857_p7), [#allocation12], 4294967264  ;;  %1788 = vmatprep.subr.bf16.mxu0 %v2282_v0  ;;  %1792 = vmatprep.mubr.msk.bf16.mxu0 %vm2283_vm0, %v2282_v0  ;;  %v375_v4 = vpack.c.bf16 %v2616_v3, %v2616_v3  ;;  %v1736_v5 = vld [vmem:[#allocation7] ss:$0 sm:$0xff]  ;;  %s2284_s8 = smov 104   ;;  %s2285_s28 = smov 120  }
  0xcd   : > { %1796 = vmatprep.subr.bf16.mxu1 %v2282_v0  ;;  %1798 = vmatprep.mubr.msk.bf16.mxu1 %vm2283_vm0, %v2282_v0  ;;  %s2286_s18 = smov 96   ;;  %s2287_s22 = smov 112   ;;  %v2288_v15 = vmov 1983009808   ;;  %v2289_v18 = vmov 1934713408  }
  0xce   : > { %1789 = vmatpush3.bf16.msra.mxu0 %v1973_v1  ;;  %v457_v16 = vunpack.c.l.s4 %v2288_v15  ;;  %v489_v19 = vunpack.c.l.s4 %v2289_v18  ;;  %v460_v21 = vshrl.u32 %v459_v17, 7  ;;  %vm905_vm2 = vcmask 64512   ;;  %s2290_s19 = smov 64   ;;  %s2291_s10 = smov 16  }
  0xcf   : > { %1790 = vmatprep.subr.bf16.mxu0 %v2282_v0  ;;  %vm1141_vm3 = vcmask 1043456   ;;  %s2292_s29 = smov 8   ;;  %s2293_s20 = smov 24   ;;  %vm1472_vm4 = vcmask 130048   ;;  %vm1474_vm5 = vcmask 195584  }
  0xd0   : > { %v458_v20 = vunpack.c.0.s8 %v457_v16  ;;  %v490_v24 = vunpack.c.0.s8 %v489_v19  ;;  %s1763_s15 = sshll.u32 %s2356_s30, 7  ;;  %s372_s16 = scalar_lea.vmem [#allocation14], %s1728_s17 }
  0xd1   : > { %s1589_s21 = sshll.u32 %s372_s16, 4  ;;  %p2858_p9 = scmp.ne.s32.totalorder %s2848_s9, 0  ;;  %s2788_s21 = int_to_ptr.vmem [resolvable:$true] %s1589_s21 }
  0xd2   : > { %1791 = vmatpush3.bf16.msra.mxu0 %v1974_v2  ;;  %v2641_v25 = vsub.s32 %v458_v20, %v460_v21  ;;  %v2643_v32 = vsub.s32 %v490_v24, %v460_v21  ;;  %s2294_s30 = smov [#allocation14]  }
  0xd3   : > { %1802 = vmatprep.subr.bf16.mxu0 %v2282_v0  ;;  %s2197_s17 = sshll.u32 %s2294_s30, 4  ;;  %s2198_s17 = int_to_ptr.vmem [resolvable:$false] %s2197_s17 }
  0xd4   : > { %p2200_p1 = scmp.lt.s32.totalorder %s2788_s21, %s2198_s17 }
  0xd5   : > { %1793 = vmatmul.mubr.msk.bf16.vlgmr.msra.gmra.mrb[0].mxu0 %vm399_vm1, %v375_v4 }
  0xd6   : > { %1804 = vmatprep.mubr.msk.bf16.mxu0 %vm2283_vm0, %v2282_v0 }
 0x1a8   : > { %v437_v6 = vpop.f32.mrb[0].mxu0 }
 0x1a9   : > { %v2625_v7 = vadd.f32 %v1736_v5, %v437_v6  ;;  %v1794_v8 = vpop.f32.mrb[1].mxu0 }
 0x1aa   : > { %v440_v9 = vpop.f32.mrb[2].mxu0 }
 0x1ab   : > { %599 = vrot.lane.b32.xlu1 %v2625_v7, %s2284_s8  ;;  %595 = vrot.lane.b32.xlu0 %v2625_v7, %s2285_s28  ;;  %v1795_v10 = vpop.f32.mrb[3].mxu0  ;;  %v443_v14 = vmul.f32 0.35355338, %v2625_v7 }
 0x1af   : > { %601 = vrot.lane.b32.xlu1 %v2625_v7, %s2286_s18  ;;  %597 = vrot.lane.b32.xlu0 %v2625_v7, %s2287_s22 }
 0x21d   : > { %v2631_v11 = vpop.permute.xlu0 %595  ;;  %v2634_v12 = vpop.permute.xlu1 %599 }
 0x21e   : > { %603 = vrot.lane.b32.xlu0 %v2631_v11, %s2286_s18 }
 0x221   : > { %v2636_v13 = vpop.permute.xlu0 %597  ;;  %v602_v22 = vpop.permute.xlu1 %601 }
 0x222   : > { %607 = vrot.lane.b32.xlu0 %v2634_v12, %s2286_s18  ;;  %605 = vrot.lane.b32.xlu1 %v2636_v13, %s2286_s18  ;;  %s1576_s18 = scalar_lea.sflag [#allocation4], %s2588_s13 }
 0x226   : > { %448 = vrot.lane.b32.xlu0 %v443_v14, %s2287_s22  ;;  %445 = vrot.lane.b32.xlu1 %v443_v14, %s2285_s28  ;;  %s2786_s28 = scalar_lea.hbm %s2838_s7, %s1763_s15  ;;  %s2193_s22 = scalar_lea.vmem %s2788_s21, 128 }
 0x227   : > { %p2194_p6 = scmp.ne.s32.totalorder %s2788_s21, %s2193_s22 }
 0x229   : > { %p2195_p12 = pnand %p2194_p6, %p2858_p9 }
 0x22a   : > { %451 = vrot.lane.b32.xlu1 %v443_v14, %s2284_s8 }
 0x22b   : > { %p2196_p13 = pneg %p2195_p12 }
 0x290   : > { %v604_v23 = vpop.permute.xlu0 %603 }
 0x294   : > { %v606_v26 = vpop.permute.xlu1 %605  ;;  %v608_v27 = vpop.permute.xlu0 %607 }
 0x295   : > { %v613_v28 = vcombine.low %v602_v22, %v606_v26  ;;  %v614_v29 = vcombine.high %v602_v22, %v606_v26  ;;  %v629_v30 = vcombine.low %v604_v23, %v608_v27  ;;  %v630_v31 = vcombine.high %v604_v23, %v608_v27 }
 0x297   : > { %v621_v33 = vrot.slane %v613_v28, %v2641_v25  ;;  %v628_v34 = vrot.slane %v614_v29, %v2641_v25  ;;  %v637_v35 = vrot.slane %v629_v30, %v2641_v25  ;;  %v644_v36 = vrot.slane %v630_v31, %v2641_v25 }
 0x298   : > { %v446_v37 = vpop.permute.xlu1 %445  ;;  %v449_v42 = vpop.permute.xlu0 %448 }
 0x299   : > { %v645_v38 = vcombine.low %v621_v33, %v637_v35  ;;  %v646_v39 = vcombine.high %v621_v33, %v637_v35  ;;  %v661_v40 = vcombine.low %v628_v34, %v644_v36  ;;  %v662_v41 = vcombine.high %v628_v34, %v644_v36 }
 0x29a   : > { %v454_v47 = vcombine.low %v443_v14, %v449_v42  ;;  %v455_v48 = vcombine.high %v443_v14, %v449_v42 }
 0x29b   : > { %v653_v43 = vrot.slane %v645_v38, %v2643_v32  ;;  %v660_v44 = vrot.slane %v646_v39, %v2643_v32  ;;  %v669_v45 = vrot.slane %v661_v40, %v2643_v32  ;;  %v676_v46 = vrot.slane %v662_v41, %v2643_v32 }
 0x29c   : > { %v452_v49 = vpop.permute.xlu1 %451  ;;  %v462_v60 = vrot.slane %v454_v47, %v2641_v25  ;;  %v469_v61 = vrot.slane %v455_v48, %v2641_v25 }
 0x29d   : > { %v681_v50 = vcombine.low %v653_v43, %v660_v44  ;;  %v1742_v51 = vcombine.high %v653_v43, %v660_v44  ;;  %v697_v52 = vcombine.low %v669_v45, %v676_v46  ;;  %v1743_v53 = vcombine.high %v669_v45, %v676_v46 }
 0x29e   : > { %v470_v54 = vcombine.low %v446_v37, %v452_v49  ;;  %v471_v55 = vcombine.high %v446_v37, %v452_v49 }
 0x29f   : > { %v688_v56 = vrot.slane %v681_v50, %v2641_v25  ;;  %v696_v57 = vrot.slane %v1742_v51, %v2641_v25  ;;  %v704_v58 = vrot.slane %v697_v52, %v2641_v25  ;;  %v712_v59 = vrot.slane %v1743_v53, %v2641_v25 }
 0x2a0   : > { %v478_v62 = vrot.slane %v470_v54, %v2641_v25  ;;  %v485_v63 = vrot.slane %v471_v55, %v2641_v25 }
 0x2a1   : > { %v713_v1 = vcombine.low %v688_v56, %v696_v57  ;;  %v729_v2 = vcombine.low %v704_v58, %v712_v59  ;;  %v714_v14 = vcombine.high %v688_v56, %v696_v57  ;;  %v730_v15 = vcombine.high %v704_v58, %v712_v59 }
 0x2a2   : > { %v486_v4 = vcombine.low %v462_v60, %v478_v62  ;;  %v487_v5 = vcombine.high %v462_v60, %v478_v62  ;;  %v502_v6 = vcombine.low %v469_v61, %v485_v63  ;;  %v503_v8 = vcombine.high %v469_v61, %v485_v63 }
 0x2a3   : > { %v721_v9 = vrot.slane %v713_v1, %v2643_v32  ;;  %v737_v10 = vrot.slane %v729_v2, %v2643_v32  ;;  %v728_v29 = vrot.slane %v714_v14, %v2643_v32  ;;  %v744_v30 = vrot.slane %v730_v15, %v2643_v32 }
 0x2a4   : > { %v494_v16 = vrot.slane %v486_v4, %v2643_v32  ;;  %v501_v17 = vrot.slane %v487_v5, %v2643_v32  ;;  %v510_v18 = vrot.slane %v502_v6, %v2643_v32  ;;  %v517_v19 = vrot.slane %v503_v8, %v2643_v32 }
 0x2a5   : > { %v745_v20 = vcombine.low %v721_v9, %v737_v10  ;;  %v746_v21 = vcombine.high %v721_v9, %v737_v10  ;;  %v747_v40 = vcombine.low %v728_v29, %v744_v30  ;;  %v748_v41 = vcombine.high %v728_v29, %v744_v30 }
 0x2a6   : > { %v522_v22 = vcombine.low %v494_v16, %v501_v17  ;;  %v1740_v23 = vcombine.high %v494_v16, %v501_v17  ;;  %v538_v24 = vcombine.low %v510_v18, %v517_v19  ;;  %v1741_v26 = vcombine.high %v510_v18, %v517_v19 }
 0x2a7   : > { %v749_v27 = vpack.c.bf16 %v745_v20, %v745_v20  ;;  %v750_v28 = vpack.c.bf16 %v746_v21, %v746_v21  ;;  %v751_v48 = vpack.c.bf16 %v747_v40, %v747_v40  ;;  %v752_v49 = vpack.c.bf16 %v748_v41, %v748_v41 }
 0x2a8   : > { %v529_v31 = vrot.slane %v522_v22, %v2641_v25  ;;  %v537_v33 = vrot.slane %v1740_v23, %v2641_v25  ;;  %v545_v34 = vrot.slane %v538_v24, %v2641_v25  ;;  %v553_v35 = vrot.slane %v1741_v26, %v2641_v25 }
 0x2a9   : > { %v910_v36 = vsel %vm905_vm2, %v749_v27, 0  ;;  %v956_v37 = vsel %vm905_vm2, %v750_v28, 0  ;;  %v1002_v54 = vsel %vm905_vm2, %v751_v48, 0  ;;  %v1048_v55 = vsel %vm905_vm2, %v752_v49, 0 }
 0x2aa   : > { %1797 = vmatpush3.bf16.xpose.msra.mxu1 %v910_v36  ;;  %1803 = vmatpush3.bf16.xpose.msra.mxu0 %v956_v37  ;;  %v554_v38 = vcombine.low %v529_v31, %v537_v33  ;;  %v570_v39 = vcombine.low %v545_v34, %v553_v35  ;;  %v555_v43 = vcombine.high %v529_v31, %v537_v33 }
 0x2ab   : > { %1808 = vmatprep.subr.bf16.mxu1 %v2282_v0  ;;  %1814 = vmatprep.subr.bf16.mxu0 %v2282_v0  ;;  %v571_v44 = vcombine.high %v545_v34, %v553_v35 }
 0x2ac   : > { %v562_v42 = vrot.slane %v554_v38, %v2643_v32  ;;  %v578_v45 = vrot.slane %v570_v39, %v2643_v32  ;;  %v569_v52 = vrot.slane %v555_v43, %v2643_v32 }
 0x2ad   : > { %v585_v53 = vrot.slane %v571_v44, %v2643_v32 }
 0x2ae   : > { %v586_v46 = vcombine.low %v562_v42, %v578_v45  ;;  %v587_v47 = vcombine.high %v562_v42, %v578_v45 }
 0x2af   : > { %v588_v56 = vcombine.low %v569_v52, %v585_v53  ;;  %v589_v57 = vcombine.high %v569_v52, %v585_v53 }
 0x2b0   : > { %v590_v50 = vpack.c.bf16 %v586_v46, %v586_v46  ;;  %v591_v51 = vpack.c.bf16 %v587_v47, %v587_v47 }
 0x2b1   : > { %v592_v58 = vpack.c.bf16 %v588_v56, %v588_v56  ;;  %v593_v59 = vpack.c.bf16 %v589_v57, %v589_v57 }
 0x2b2   : > { %1799 = vmatmul.mubr.msk.bf16.vlgmr.msra.gmra.mrb[0].mxu1 %vm905_vm2, %v590_v50  ;;  %1805 = vmatmul.mubr.msk.bf16.vlgmr.msra.gmra.mrb[4].mxu0 %vm905_vm2, %v591_v51 }
 0x2b3   : > { %1809 = vmatpush3.bf16.xpose.msra.mxu1 %v1002_v54  ;;  %1815 = vmatpush3.bf16.xpose.msra.mxu0 %v1048_v55 }
 0x2b4   : > { %1810 = vmatprep.mubr.msk.bf16.mxu1 %vm2283_vm0, %v2282_v0  ;;  %1816 = vmatprep.mubr.msk.bf16.mxu0 %vm2283_vm0, %v2282_v0 }
 0x2b5   : > { %1820 = vmatprep.subr.bf16.mxu1 %v2282_v0  ;;  %1826 = vmatprep.subr.bf16.mxu0 %v2282_v0 }
 0x2ba   : > { %1811 = vmatmul.mubr.msk.bf16.vlgmr.msra.gmra.mrb[4].mxu1 %vm905_vm2, %v592_v58  ;;  %1817 = vmatmul.mubr.msk.bf16.vlgmr.msra.gmra.mrb[8].mxu0 %vm905_vm2, %v593_v59 }
 0x2bb   : > { %1822 = vmatprep.mubr.msk.bf16.mxu1 %vm2283_vm0, %v2282_v0  ;;  %1828 = vmatprep.mubr.msk.bf16.mxu0 %vm2283_vm0, %v2282_v0 }
 0x385   : > { %v946_v60 = vpop.f32.mrb[0].mxu1  ;;  %v992_v61 = vpop.f32.mrb[4].mxu0 }
 0x386   : > { %v1800_v62 = vpop.f32.mrb[1].mxu1  ;;  %v1806_v63 = vpop.f32.mrb[5].mxu0  ;;  %v1090_v1 = vsel %vm905_vm2, %v946_v60, -inf  ;;  %v1093_v2 = vsel %vm905_vm2, %v992_v61, -inf }
 0x387   : > { %1091 = vmax.xlane.f32.xlu0 %v1090_v1  ;;  %v949_v4 = vpop.f32.mrb[2].mxu1  ;;  %1094 = vmax.xlane.f32.xlu1 %v1093_v2  ;;  %v995_v5 = vpop.f32.mrb[6].mxu0 }
 0x388   : > { %v1801_v6 = vpop.f32.mrb[3].mxu1  ;;  %v1807_v8 = vpop.f32.mrb[7].mxu0 }
 0x38d   : > { %v1038_v9 = vpop.f32.mrb[4].mxu1  ;;  %v1084_v10 = vpop.f32.mrb[8].mxu0 }
 0x38e   : > { %v1812_v14 = vpop.f32.mrb[5].mxu1  ;;  %v1818_v15 = vpop.f32.mrb[9].mxu0  ;;  %v1096_v16 = vsel %vm905_vm2, %v1038_v9, -inf  ;;  %v1099_v21 = vsel %vm905_vm2, %v1084_v10, -inf }
 0x38f   : > { %1097 = vmax.xlane.f32.xlu0 %v1096_v16  ;;  %v1041_v17 = vpop.f32.mrb[6].mxu1  ;;  %v1087_v18 = vpop.f32.mrb[10].mxu0 }
 0x390   : > { %v1813_v19 = vpop.f32.mrb[7].mxu1  ;;  %v1819_v20 = vpop.f32.mrb[11].mxu0 }
 0x393   : > { %1100 = vmax.xlane.f32.xlu0 %v1099_v21 }
 0x398   : > { %753 = vrot.lane.b32.xlu1 %v2625_v7, %s2290_s19 }
 0x414   : > { %v1092_v22 = vpop.xlane.xlu0 %1091  ;;  %v1095_v23 = vpop.xlane.xlu1 %1094 }
 0x415   : > { %v1102_v24 = vsub.f32 %v946_v60, %v1092_v22  ;;  %v1103_v26 = vsub.f32 %v992_v61, %v1095_v23 }
 0x417   : > { %v1106_v27 = vmul.f32 1.442695, %v1102_v24  ;;  %v1108_v28 = vmul.f32 1.442695, %v1103_v26 }
 0x419   : > { %1977 = vpow2.f32 %v1106_v27 }
 0x41a   : > { %1979 = vpow2.f32 %v1108_v28 }
 0x41c   : > { %v1098_v7 = vpop.xlane.xlu0 %1097 }
 0x41d   : > { %v1104_v34 = vsub.f32 %v1038_v9, %v1098_v7 }
 0x41f   : > { %v1110_v37 = vmul.f32 1.442695, %v1104_v34 }
 0x420   : > { %v1101_v35 = vpop.xlane.xlu0 %1100 }
 0x421   : > { %v1105_v36 = vsub.f32 %v1084_v10, %v1101_v35  ;;  %1981 = vpow2.f32 %v1110_v37 }
 0x423   : > { %v2702_v29 = vpop.eup %1977  ;;  %v1112_v38 = vmul.f32 1.442695, %v1105_v36 }
 0x424   : > { %v2704_v30 = vpop.eup %1979  ;;  %v1114_v31 = vsel %vm905_vm2, %v2702_v29, 0.0 }
 0x425   : > { %1115 = vadd.xlane.f32.xlu1 %v1114_v31  ;;  %v1117_v33 = vsel %vm905_vm2, %v2704_v30, 0.0  ;;  %1983 = vpow2.f32 %v1112_v38 }
 0x426   : > { %1118 = vadd.xlane.f32.xlu0 %v1117_v33 }
 0x42b   : > { %v2713_v39 = vpop.eup %1981 }
 0x42c   : > { %v1120_v41 = vsel %vm905_vm2, %v2713_v39, 0.0 }
 0x42f   : > { %v2715_v40 = vpop.eup %1983 }
 0x436   : > { %757 = vrot.lane.b32.xlu1 %v2636_v13, %s2290_s19 }
 0x43a   : > { %759 = vrot.lane.b32.xlu1 %v2634_v12, %s2290_s19  ;;  %v1123_v12 = vsel %vm905_vm2, %v2715_v40, 0.0 }
 0x43c   : > { %755 = vrot.lane.b32.xlu0 %v2631_v11, %s2290_s19  ;;  %v754_v11 = vpop.permute.xlu1 %753  ;;  %s2199_s19 = scalar_lea.vmem %s2198_s17, 256 }
 0x43d   : > { %p2201_p3 = scmp.lt.s32.totalorder %s2199_s19, %s2193_s22 }
 0x43f   : > { %p2202_p2 = por %p2201_p3, %p2200_p1 }
 0x441   : > { %p2203_p0 = pnand %p2202_p2, %p2196_p13 }
 0x45b   : > { %1121 = vadd.xlane.f32.xlu0 %v1120_v41 }
 0x45e   : > { %1124 = vadd.xlane.f32.xlu1 %v1123_v12 }
 0x4b2   : > { %v1116_v13 = vpop.xlane.xlu1 %1115 }
 0x4b3   : > { %v1119_v42 = vpop.xlane.xlu0 %1118  ;;  %1985 = vrcp.f32 %v1116_v13 }
 0x4b4   : > { %1987 = vrcp.f32 %v1119_v42 }
 0x4b6   : > { %v758_v43 = vpop.permute.xlu1 %757 }
 0x4b7   : > { %v765_v44 = vcombine.low %v754_v11, %v758_v43  ;;  %v766_v45 = vcombine.high %v754_v11, %v758_v43  ;;  %v756_v46 = vpop.permute.xlu0 %755 }
 0x4b9   : > { %v773_v50 = vrot.slane %v765_v44, %v2641_v25  ;;  %v780_v51 = vrot.slane %v766_v45, %v2641_v25 }
 0x4ba   : > { %v760_v47 = vpop.permute.xlu1 %759 }
 0x4bb   : > { %v781_v48 = vcombine.low %v756_v46, %v760_v47  ;;  %v782_v49 = vcombine.high %v756_v46, %v760_v47  ;;  %v1975_v46 = vld [vmem:[#allocation8] sm:$0xff]  }
 0x4bd   : > { %v789_v52 = vrot.slane %v781_v48, %v2641_v25  ;;  %v796_v53 = vrot.slane %v782_v49, %v2641_v25  ;;  %v1986_v18 = vpop.eup %1985 }
 0x4be   : > { %v1988_v21 = vpop.eup %1987  ;;  %v1130_v27 = vmul.f32 %v1986_v18, %v2702_v29 }
 0x4bf   : > { %v797_v54 = vcombine.low %v773_v50, %v789_v52  ;;  %v798_v55 = vcombine.high %v773_v50, %v789_v52  ;;  %v813_v56 = vcombine.low %v780_v51, %v796_v53  ;;  %v814_v57 = vcombine.high %v780_v51, %v796_v53 }
 0x4c0   : > { %v1131_v28 = vmul.f32 %v1988_v21, %v2704_v30  ;;  %v1134_v37 = vpack.c.bf16 %v1130_v27, %v1130_v27 }
 0x4c1   : > { %v805_v58 = vrot.slane %v797_v54, %v2643_v32  ;;  %v812_v59 = vrot.slane %v798_v55, %v2643_v32  ;;  %v821_v60 = vrot.slane %v813_v56, %v2643_v32  ;;  %v828_v61 = vrot.slane %v814_v57, %v2643_v32 }
 0x4c2   : > { %v1135_v38 = vpack.c.bf16 %v1131_v28, %v1131_v28 }
 0x4c3   : > { %v833_v62 = vcombine.low %v805_v58, %v812_v59  ;;  %v1744_v63 = vcombine.high %v805_v58, %v812_v59  ;;  %v849_v1 = vcombine.low %v821_v60, %v828_v61  ;;  %v1745_v2 = vcombine.high %v821_v60, %v828_v61 }
 0x4c5   : > { %v840_v4 = vrot.slane %v833_v62, %v2641_v25  ;;  %v848_v5 = vrot.slane %v1744_v63, %v2641_v25  ;;  %v856_v6 = vrot.slane %v849_v1, %v2641_v25  ;;  %v864_v8 = vrot.slane %v1745_v2, %v2641_v25 }
 0x4c7   : > { %v865_v9 = vcombine.low %v840_v4, %v848_v5  ;;  %v866_v10 = vcombine.high %v840_v4, %v848_v5  ;;  %v881_v14 = vcombine.low %v856_v6, %v864_v8  ;;  %v882_v15 = vcombine.high %v856_v6, %v864_v8 }
 0x4c9   : > { %v873_v16 = vrot.slane %v865_v9, %v2643_v32  ;;  %v880_v17 = vrot.slane %v866_v10, %v2643_v32  ;;  %v889_v19 = vrot.slane %v881_v14, %v2643_v32  ;;  %v896_v20 = vrot.slane %v882_v15, %v2643_v32  ;;  %v1976_v14 = vld [vmem:[#allocation8 + $0x8] sm:$0xff]  }
 0x4cb   : > { %v897_v22 = vcombine.low %v873_v16, %v889_v19  ;;  %v898_v23 = vcombine.high %v873_v16, %v889_v19  ;;  %v899_v24 = vcombine.low %v880_v17, %v896_v20  ;;  %v900_v26 = vcombine.high %v880_v17, %v896_v20 }
 0x4cd   : > { %v901_v31 = vpack.c.bf16 %v897_v22, %v897_v22  ;;  %v902_v33 = vpack.c.bf16 %v898_v23, %v898_v23  ;;  %v903_v35 = vpack.c.bf16 %v899_v24, %v899_v24  ;;  %v904_v36 = vpack.c.bf16 %v900_v26, %v900_v26 }
 0x4cf   : > { %v1143_v7 = vsel %vm1141_vm3, %v901_v31, 0  ;;  %v1189_v34 = vsel %vm1141_vm3, %v902_v33, 0  ;;  %v1235_v29 = vsel %vm1141_vm3, %v903_v35, 0  ;;  %v1281_v30 = vsel %vm1141_vm3, %v904_v36, 0 }
 0x4d0   : > { %1821 = vmatpush3.bf16.msra.mxu1 %v1143_v7  ;;  %1827 = vmatpush3.bf16.msra.mxu0 %v1189_v34 }
 0x4d1   : > { %1832 = vmatprep.subr.bf16.mxu1 %v2282_v0  ;;  %1838 = vmatprep.subr.bf16.mxu0 %v2282_v0 }
 0x4d3   : > { %1823 = vmatmul.mubr.msk.bf16.vlgmr.msra.gmra.mrb[8].mxu1 %vm905_vm2, %v1134_v37  ;;  %1829 = vmatmul.mubr.msk.bf16.vlgmr.msra.gmra.mrb[12].mxu0 %vm905_vm2, %v1135_v38 }
 0x4d4   : > { %1833 = vmatpush3.bf16.msra.mxu1 %v1235_v29  ;;  %1839 = vmatpush3.bf16.msra.mxu0 %v1281_v30 }
 0x4d5   : > { %1834 = vmatprep.mubr.msk.bf16.mxu1 %vm2283_vm0, %v2282_v0  ;;  %1840 = vmatprep.mubr.msk.bf16.mxu0 %vm2283_vm0, %v2282_v0 }
 0x4d6   : > { %1844 = vmatprep.subr.bf16.mxu1 %v2282_v0 }
 0x4e8   : > { %v1122_v41 = vpop.xlane.xlu0 %1121 }
 0x4e9   : > { %1989 = vrcp.f32 %v1122_v41 }
 0x4eb   : > { %v1125_v12 = vpop.xlane.xlu1 %1124 }
 0x4ec   : > { %1991 = vrcp.f32 %v1125_v12 }
 0x4f3   : > { %v1990_v11 = vpop.eup %1989 }
 0x4f4   : > { %v1132_v13 = vmul.f32 %v1990_v11, %v2713_v39 }
 0x4f6   : > { %v1992_v42 = vpop.eup %1991  ;;  %v1136_v43 = vpack.c.bf16 %v1132_v13, %v1132_v13 }
 0x4f7   : > { %v1133_v44 = vmul.f32 %v1992_v42, %v2715_v40 }
 0x4f8   : > { %1835 = vmatmul.mubr.msk.bf16.vlgmr.msra.gmra.mrb[12].mxu1 %vm905_vm2, %v1136_v43 }
 0x4f9   : > { %v1137_v45 = vpack.c.bf16 %v1133_v44, %v1133_v44  ;;  %1848 = vmatprep.mubr.msk.bf16.mxu1 %vm2283_vm0, %v2282_v0  ;;  %1845 = vmatpush3.bf16.msra.mxu1 %v1975_v46  ;;  %v1756_v44 = vld [vmem:[#allocation10] ss:$0 sm:$0xff] }
 0x4fa   : > { %1846 = vmatprep.subr.bf16.mxu1 %v2282_v0 }
 0x4fb   : > { %1841 = vmatmul.mubr.msk.bf16.vlgmr.msra.gmra.mrb[16].mxu0 %vm905_vm2, %v1137_v45 }
 0x4fd   : > { %1847 = vmatpush3.bf16.msra.mxu1 %v1976_v14 }
 0x5a6   : > { %v1179_v47 = vpop.f32.mrb[8].mxu1  ;;  %v1225_v48 = vpop.f32.mrb[12].mxu0 }
 0x5a7   : > { %v1824_v49 = vpop.f32.mrb[9].mxu1  ;;  %v1830_v39 = vpop.f32.mrb[13].mxu0 }
 0x5a8   : > { %v1182_v50 = vpop.f32.mrb[10].mxu1  ;;  %v1228_v51 = vpop.f32.mrb[14].mxu0 }
 0x5a9   : > { %v1825_v52 = vpop.f32.mrb[11].mxu1  ;;  %v1831_v40 = vpop.f32.mrb[15].mxu0 }
 0x5cb   : > { %v1271_v53 = vpop.f32.mrb[12].mxu1 }
 0x5cc   : > { %v1323_v54 = vcombine.low %v1179_v47, %v1271_v53  ;;  %v1324_v55 = vcombine.high %v1179_v47, %v1271_v53  ;;  %v1836_v56 = vpop.f32.mrb[13].mxu1 }
 0x5cd   : > { %v1274_v57 = vpop.f32.mrb[14].mxu1 }
 0x5ce   : > { %v1837_v58 = vpop.f32.mrb[15].mxu1  ;;  %v1317_v59 = vpop.f32.mrb[16].mxu0  ;;  %v1331_v0 = vrot.slane %v1323_v54, %v2641_v25  ;;  %v1338_v1 = vrot.slane %v1324_v55, %v2641_v25 }
 0x5cf   : > { %v1339_v60 = vcombine.low %v1225_v48, %v1317_v59  ;;  %v1340_v61 = vcombine.high %v1225_v48, %v1317_v59  ;;  %v1842_v62 = vpop.f32.mrb[17].mxu0 }
 0x5d0   : > { %v1320_v63 = vpop.f32.mrb[18].mxu0 }
 0x5d1   : > { %v1347_v2 = vrot.slane %v1339_v60, %v2641_v25  ;;  %v1354_v4 = vrot.slane %v1340_v61, %v2641_v25  ;;  %v1843_v5 = vpop.f32.mrb[19].mxu0  ;;  %v1761_v60 = vld [vmem:[#allocation13] ss:$0 sm:$0xff] }
 0x5d3   : > { %v1355_v6 = vcombine.low %v1331_v0, %v1347_v2  ;;  %v1356_v8 = vcombine.high %v1331_v0, %v1347_v2  ;;  %v1371_v9 = vcombine.low %v1338_v1, %v1354_v4  ;;  %v1372_v10 = vcombine.high %v1338_v1, %v1354_v4 }
 0x5d5   : > { %v1363_v15 = vrot.slane %v1355_v6, %v2643_v32  ;;  %v1370_v16 = vrot.slane %v1356_v8, %v2643_v32  ;;  %v1379_v17 = vrot.slane %v1371_v9, %v2643_v32  ;;  %v1386_v18 = vrot.slane %v1372_v10, %v2643_v32 }
 0x5d7   : > { %v1391_v19 = vcombine.low %v1363_v15, %v1370_v16  ;;  %v1754_v20 = vcombine.high %v1363_v15, %v1370_v16  ;;  %v1407_v21 = vcombine.low %v1379_v17, %v1386_v18  ;;  %v1755_v22 = vcombine.high %v1379_v17, %v1386_v18 }
 0x5d9   : > { %v1398_v23 = vrot.slane %v1391_v19, %v2641_v25  ;;  %v1406_v24 = vrot.slane %v1754_v20, %v2641_v25  ;;  %v1414_v26 = vrot.slane %v1407_v21, %v2641_v25  ;;  %v1422_v27 = vrot.slane %v1755_v22, %v2641_v25 }
 0x5db   : > { %v1424_v28 = vcombine.high %v1398_v23, %v1406_v24  ;;  %v1440_v31 = vcombine.high %v1414_v26, %v1422_v27  ;;  %v1423_v33 = vcombine.low %v1398_v23, %v1406_v24  ;;  %v1439_v7 = vcombine.low %v1414_v26, %v1422_v27 }
 0x5dd   : > { %v1438_v34 = vrot.slane %v1424_v28, %v2643_v32  ;;  %v1454_v35 = vrot.slane %v1440_v31, %v2643_v32  ;;  %v1431_v36 = vrot.slane %v1423_v33, %v2643_v32  ;;  %v1447_v37 = vrot.slane %v1439_v7, %v2643_v32 }
 0x5df   : > { %v1457_v38 = vcombine.low %v1438_v34, %v1454_v35  ;;  %v1456_v29 = vcombine.high %v1431_v36, %v1447_v37  ;;  %v1458_v30 = vcombine.high %v1438_v34, %v1454_v35  ;;  %v1455_v41 = vcombine.low %v1431_v36, %v1447_v37 }
 0x5e1   : > { %1464 = vrot.lane.b32.xlu1 %v1457_v38, %s2291_s10  ;;  %1460 = vrot.lane.b32.xlu0 %v1456_v29, %s2292_s29 }
 0x5e5   : > { %1468 = vrot.lane.b32.xlu0 %v1458_v30, %s2293_s20 }
 0x653   : > { %v1461_v25 = vpop.permute.xlu0 %1460  ;;  %v1465_v12 = vpop.permute.xlu1 %1464 }
 0x654   : > { %v1471_v11 = vsel %vm905_vm2, %v1455_v41, %v1461_v25 }
 0x655   : > { %v1473_v42 = vsel %vm1472_vm4, %v1471_v11, %v1465_v12 }
 0x657   : > { %v1469_v13 = vpop.permute.xlu0 %1468 }
 0x658   : > { %v1475_v43 = vsel %vm1474_vm5, %v1473_v42, %v1469_v13 }
 0x659   : > { %v1476_v32 = vpack.c.bf16 %v1475_v43, %v1475_v43 }
 0x65b   : > { %1849 = vmatmul.mubr.msk.bf16.vlgmr.msra.gmra.mrb[16].mxu1 %vm399_vm1, %v1476_v32 }
 0x72e   : > { %v1537_v45 = vpop.f32.mrb[16].mxu1 }
 0x72f   : > { %v1538_v46 = vadd.f32 %v1756_v44, %v1537_v45  ;;  %v1850_v47 = vpop.f32.mrb[17].mxu1 }
 0x730   : > { %v1540_v48 = vpop.f32.mrb[18].mxu1 }
 0x731   : > { %v1851_v49 = vpop.f32.mrb[19].mxu1  ;;  %v1543_v39 = vadd.f32 %v1538_v46, %v2616_v3  ;;  %v1760_v3 = vld [vmem:[#allocation11] ss:$0 sm:$0xff] }
 0x733   : > { %v1544_v50 = vsel %vm399_vm1, %v1543_v39, 0.0 }
 0x734   : > { %1545 = vadd.xlane.f32.xlu1 %v1544_v50 }
 0x7c1   : > { %v1546_v51 = vpop.xlane.xlu1 %1545 }
 0x7c2   : > { %v1548_v52 = vmul.f32 0.03125, %v1546_v51 }
 0x7c4   : > { %v1549_v40 = vsub.f32 %v1543_v39, %v1548_v52 }
 0x7c6   : > { %v1550_v53 = vmul.f32 %v1549_v40, %v1549_v40 }
 0x7c8   : > { %v1551_v54 = vsel %vm399_vm1, %v1550_v53, 0.0 }
 0x7c9   : > { %1552 = vadd.xlane.f32.xlu0 %v1551_v54 }
 0x856   : > { %v1553_v55 = vpop.xlane.xlu0 %1552 }
 0x857   : > { %v1554_v56 = vmul.f32 0.03125, %v1553_v55 }
 0x859   : > { %v1555_v57 = vadd.f32 1e-05, %v1554_v56 }
 0x85b   : > { %1993 = vrsqrt.f32 %v1555_v57 }
 0x865   : > { %v1994_v58 = vpop.eup %1993 }
 0x866   : > { %v1557_v59 = vmul.f32 %v1994_v58, %v1549_v40 }
 0x868   : > { %v1565_v61 = vmul.f32 %v1760_v3, %v1557_v59 }
 0x86a   : > { %v1573_v62 = vadd.f32 %v1761_v60, %v1565_v61 }
 0x86c   : > { %1574 = vst.msk [vmem:[%s372_s16] sm:$0xff] %vm399_vm1, %v1573_v62 }
 0x86d   : > { %2206 = shalt.err (!%p2203_p0)
}
 0x86e   : > { %s2207_s13 = scalar_lea.hbm %s2786_s28, 128  ;;  %s2211_s20 = scalar_lea.hbm %s2838_s7, 256 }
 0x86f   : > { %p2208_p4 = scmp.ne.s32.totalorder %s2786_s28, %s2207_s13  ;;  %p2212_p8 = scmp.lt.u32.totalorder %s2786_s28, %s2838_s7 }
 0x870   : > { %p2213_p5 = scmp.lt.u32.totalorder %s2211_s20, %s2207_s13  ;;  %p2215_p6 = scmp.lt.u32.totalorder %s2207_s13, %s2786_s28 }
 0x871   : > { %p2209_p10 = pnand %p2208_p4, %p2858_p9 }
 0x872   : > { %p2214_p7 = por %p2213_p5, %p2212_p8 }
 0x873   : > { %p2210_p11 = pneg %p2209_p10 }
 0x874   : > { %p2216_p12 = por %p2215_p6, %p2214_p7 }
 0x876   : > { %p2217_p13 = pnand %p2216_p12, %p2210_p11 }
 0x878   : > { %2220 = shalt.err (!%p2217_p13)
}
 0x879   : > { %1878 = dma.vmem_to_hbm [thread:$0]  (%p2858_p9), %s2788_s21, 128, %s2786_s28, %s1576_s18  }
 0x87a PF: > { %s1601_s12 = sand.u32 1, %s2259_s24   ;;  %p2859_p1 = scmp.ne.s32.totalorder %s2849_s14, 0 }
 0x87b   : > { %p2860_p3 = scmp.ge.s32.totalorder %s2271_s27, 2  ;;  %s1602_s8 = scalar_lea.sflag [#allocation4], %s1601_s12 }
 0x87d   : > { %p1904_p2 = pnand %p2860_p3, %p2859_p1 }
 0x87f   : > { %2254 = dma.done.wait (!%p1904_p2), %s1602_s8, 128  }
 0x880   : > { %2256 = vsyncadd (!%p1904_p2), %s1602_s8, 4294967168  ;;  %p23_p0 = scmp.ge.s32.totalorder %s2512_s11, 4   ;;  %s2861_s24 = smov %s2263_s25 }
 0x881   : > { %s2862_s25 = smov %s2267_s26  ;;  %s2863_s26 = smov %s2523_s23 }
 0x882   : > { %s2864_s27 = smov %s2512_s11  ;;  %25 = sbr.rel (!%p23_p0) target bundleno = 8 (0x8), region = 117 }
 0x889   :  { %1607 = vsyncpa [#allocation3], 1 }
 0x88a   :  { %1609 = vsyncpa [#allocation3 + $0x1], 1 }
 0x88b   :  { %1610 = vsyncpa [#allocation6], 1 }
 0x88c   :  { %1611 = vsyncpa [#allocation9], 1 }
 0x88d   :  { %1612 = vsyncpa [#allocation12], 1 }
 0x88e   :  { %1613 = vsyncpa [#allocation4], 1 }
 0x88f   :  { %1615 = vsyncpa [#allocation4 + $0x1], 1 }

// kernel: model_forward.16
= control target key start
LH: loop header
LB: loop body
LE: loop exit
PB: predicated region body
PF: predicated region fallthrough
CT: control target
= control target key end

     0   :  { %v330_v1 = vmov 0.0   ;;  %vm331_vm0 = vmmov 0   ;;  %vm54_vm1 = vcmask 261120   ;;  %s430_s0 = inlined_call_operand.vmem [shape: f32[16,32], index: 0, kind: input, shape index: {}]   ;;  %s431_s1 = inlined_call_operand.vmem [shape: bf16[32,64], index: 1, kind: input, shape index: {}]   ;;  %s432_s2 = inlined_call_operand.vmem [shape: f32[1,64], index: 2, kind: input, shape index: {}]   ;;  %s433_s3 = inlined_call_operand.vmem [shape: bf16[64,32], index: 3, kind: input, shape index: {}]   ;;  %s434_s4 = inlined_call_operand.vmem [shape: f32[1,32], index: 4, kind: input, shape index: {}]   ;;  %s435_s5 = inlined_call_operand.vmem [shape: f32[1,32], index: 5, kind: input, shape index: {}]   ;;  %s436_s6 = inlined_call_operand.vmem [shape: f32[1,32], index: 6, kind: input, shape index: {}]   ;;  %s437_s7 = inlined_call_operand.hbm [shape: f32[16,32], index: 7, kind: output, shape index: {}]  }
   0x1   :  { %v296_v0 = vld [vmem:[%s431_s1] sm:$0xff]   ;;  %271 = vmatprep.subr.bf16.mxu0 %v330_v1  ;;  %v297_v2 = vld [vmem:[%s431_s1 + $0x8] sm:$0xff]   ;;  %279 = vmatprep.subr.bf16.mxu1 %v330_v1 }
   0x2   :  { %272 = vmatpush3.bf16.msra.mxu0 %v296_v0  ;;  %275 = vmatprep.mubr.msk.bf16.mxu0 %vm331_vm0, %v330_v1  ;;  %v28_v3 = vld [vmem:[%s430_s0] sm:$0xff]  ;;  %v29_v4 = vld [vmem:[%s430_s0 + $0x8] sm:$0xff] }
   0x3   :  { %273 = vmatprep.subr.bf16.mxu0 %v330_v1  ;;  %v298_v5 = vld [vmem:[%s433_s3] sm:$0xff]   ;;  %287 = vmatprep.mubr.msk.bf16.mxu1 %vm331_vm0, %v330_v1  ;;  %v299_v6 = vld [vmem:[%s433_s3 + $0x8] sm:$0xff]   ;;  %v30_v7 = vpack.c.bf16 %v29_v4, %v28_v3 }
   0x4   :  { %280 = vmatpush3.bf16.msra.mxu1 %v298_v5 }
   0x5   :  { %281 = vmatprep.subr.bf16.mxu1 %v330_v1 }
   0x6   :  { %274 = vmatpush3.bf16.msra.mxu0 %v297_v2 }
   0x7   :  { %12 = vsyncpa [#allocation3], 0  ;;  %v300_v8 = vld [vmem:[%s433_s3 + $0x10] sm:$0xff]   ;;  %v301_v9 = vld [vmem:[%s433_s3 + $0x18] sm:$0xff]   ;;  %vm141_vm2 = vcmask 523264   ;;  %s332_s20 = smov [#allocation2]  }
   0x8   :  { %282 = vmatpush3.bf16.msra.mxu1 %v299_v6  ;;  %v251_v10 = vld [vmem:[%s432_s2] ss:$0 sm:$0xff]  ;;  %s240_s21 = sshll.u32 %s332_s20, 4  ;;  %s241_s21 = int_to_ptr.vmem [resolvable:$true] %s240_s21 }
   0x9   :  { %276 = vmatmul.mubr.msk.bf16.vlgmr.msra.gmra.mrb[0].mxu0 %vm54_vm1, %v30_v7  ;;  %283 = vmatprep.subr.bf16.mxu1 %v330_v1  ;;  %v255_v20 = vld [vmem:[%s434_s4] ss:$0 sm:$0xff]  ;;  %s306_s22 = scalar_lea.vmem %s241_s21, 256  ;;  %p311_p1 = scmp.lt.s32.totalorder %s241_s21, %s241_s21 }
   0xa   :  { %v261_v48 = vld [vmem:[%s435_s5] ss:$0 sm:$0xff]  ;;  %p307_p0 = scmp.ne.s32.totalorder %s241_s21, %s306_s22  ;;  %p312_p2 = scmp.lt.s32.totalorder %s306_s22, %s306_s22 }
   0xb   :  { %v262_v50 = vld [vmem:[%s436_s6] ss:$0 sm:$0xff] }
   0xc   :  { %284 = vmatpush3.bf16.msra.mxu1 %v300_v8  ;;  %p313_p3 = por %p312_p2, %p311_p1 }
   0xd   :  { %285 = vmatprep.subr.bf16.mxu1 %v330_v1 }
   0xe   :  { %p314_p4 = pnand %p313_p3, %p307_p0 }
  0x10   :  { %286 = vmatpush3.bf16.msra.mxu1 %v301_v9 }
  0xdc   :  { %v92_v11 = vpop.f32.mrb[0].mxu0 }
  0xdd   :  { %v93_v12 = vadd.f32 %v251_v10, %v92_v11  ;;  %v277_v13 = vpop.f32.mrb[1].mxu0 }
  0xde   :  { %v95_v14 = vpop.f32.mrb[2].mxu0 }
  0xdf   :  { %v96_v15 = vadd.f32 %v251_v10, %v95_v14  ;;  %v278_v16 = vpop.f32.mrb[3].mxu0  ;;  %v99_v17 = vmax.f32 %v93_v12, 0.0 }
  0xe1   :  { %v100_v18 = vmax.f32 %v96_v15, 0.0 }
  0xe3   :  { %v101_v19 = vpack.c.bf16 %v100_v18, %v99_v17 }
  0xe5   :  { %288 = vmatmul.mubr.msk.bf16.vlgmr.msra.gmra.mrb[0].mxu1 %vm141_vm2, %v101_v19 }
 0x1b8   :  { %v179_v21 = vpop.f32.mrb[0].mxu1 }
 0x1b9   :  { %v180_v22 = vadd.f32 %v255_v20, %v179_v21  ;;  %v289_v23 = vpop.f32.mrb[1].mxu1 }
 0x1ba   :  { %v182_v24 = vpop.f32.mrb[2].mxu1 }
 0x1bb   :  { %v183_v25 = vadd.f32 %v255_v20, %v182_v24  ;;  %v290_v26 = vpop.f32.mrb[3].mxu1  ;;  %v186_v27 = vadd.f32 %v180_v22, %v28_v3 }
 0x1bd   :  { %v188_v28 = vsel %vm54_vm1, %v186_v27, 0.0  ;;  %v187_v29 = vadd.f32 %v183_v25, %v29_v4 }
 0x1be   :  { %189 = vadd.xlane.f32.xlu0 %v188_v28 }
 0x1bf   :  { %v191_v30 = vsel %vm54_vm1, %v187_v29, 0.0 }
 0x1c2   :  { %192 = vadd.xlane.f32.xlu0 %v191_v30 }
 0x24b   :  { %v190_v31 = vpop.xlane.xlu0 %189 }
 0x24c   :  { %v195_v32 = vmul.f32 0.03125, %v190_v31 }
 0x24e   :  { %v197_v33 = vsub.f32 %v186_v27, %v195_v32 }
 0x24f   :  { %v193_v34 = vpop.xlane.xlu0 %192 }
 0x250   :  { %v196_v35 = vmul.f32 0.03125, %v193_v34  ;;  %v199_v36 = vmul.f32 %v197_v33, %v197_v33 }
 0x252   :  { %v198_v37 = vsub.f32 %v187_v29, %v196_v35  ;;  %v201_v38 = vsel %vm54_vm1, %v199_v36, 0.0 }
 0x253   :  { %202 = vadd.xlane.f32.xlu1 %v201_v38 }
 0x254   :  { %v200_v39 = vmul.f32 %v198_v37, %v198_v37 }
 0x256   :  { %v204_v40 = vsel %vm54_vm1, %v200_v39, 0.0 }
 0x257   :  { %205 = vadd.xlane.f32.xlu1 %v204_v40 }
 0x2e0   :  { %v203_v41 = vpop.xlane.xlu1 %202 }
 0x2e1   :  { %v207_v42 = vmul.f32 0.03125, %v203_v41 }
 0x2e3   :  { %v209_v43 = vadd.f32 1e-05, %v207_v42 }
 0x2e4   :  { %v206_v44 = vpop.xlane.xlu1 %205 }
 0x2e5   :  { %302 = vrsqrt.f32 %v209_v43  ;;  %v208_v45 = vmul.f32 0.03125, %v206_v44 }
 0x2e7   :  { %v210_v46 = vadd.f32 1e-05, %v208_v45 }
 0x2e9   :  { %304 = vrsqrt.f32 %v210_v46 }
 0x2ef   :  { %v303_v47 = vpop.eup %302 }
 0x2f0   :  { %v213_v49 = vmul.f32 %v303_v47, %v197_v33 }
 0x2f2   :  { %v222_v51 = vmul.f32 %v261_v48, %v213_v49 }
 0x2f3   :  { %v305_v52 = vpop.eup %304 }
 0x2f4   :  { %v214_v53 = vmul.f32 %v305_v52, %v198_v37  ;;  %v231_v54 = vadd.f32 %v262_v50, %v222_v51 }
 0x2f6   :  { %v223_v55 = vmul.f32 %v261_v48, %v214_v53  ;;  %233 = vst.msk [vmem:[#allocation2] sm:$0xff] %vm54_vm1, %v231_v54 }
 0x2f8   :  { %v232_v56 = vadd.f32 %v262_v50, %v223_v55 }
 0x2fa   :  { %234 = vst.msk [vmem:[#allocation2 + $0x8] sm:$0xff] %vm54_vm1, %v232_v56 }
 0x2fb   :  { %317 = shalt.err (!%p314_p4)
}
 0x2fc   :  { %s318_s23 = scalar_lea.hbm %s437_s7, 256 }
 0x2fd   :  { %p319_p5 = scmp.ne.s32.totalorder %s437_s7, %s318_s23  ;;  %p322_p6 = scmp.lt.u32.totalorder %s318_s23, %s437_s7 }
 0x2ff   :  { %p324_p7 = pnand %p322_p6, %p319_p5 }
 0x301   :  { %327 = shalt.err (!%p324_p7)
}
 0x302   :  { %s333_s28 = smov 128   ;;  %s334_s29 = smov 8  }
 0x303   :  { %246 = dma.vmem_to_hbm [thread:$0]  %s241_s21, 256, %s437_s7, [#allocation3], %s333_s28, %s333_s28, %s334_s29  }
 0x304   :  { %328 = dma.done.wait [#allocation3], 256  }
 0x305   :  { %329 = vsyncadd [#allocation3], 4294967040 }
 0x306   :  { %250 = vsyncpa [#allocation3], 1 }

// kernel: model_forward.18
= control target key start
LH: loop header
LB: loop body
LE: loop exit
PB: predicated region body
PF: predicated region fallthrough
CT: control target
= control target key end

     0   :  { %v290_v0 = vmov 0.0   ;;  %vm291_vm0 = vmmov 0   ;;  %vm53_vm1 = vcmask 261120   ;;  %vm140_vm2 = vcmask 523264   ;;  %s381_s1 = inlined_call_operand.vmem [shape: bf16[32,64], index: 1, kind: input, shape index: {}]   ;;  %s382_s0 = inlined_call_operand.vmem [shape: f32[16,32], index: 0, kind: input, shape index: {}]   ;;  %s383_s3 = inlined_call_operand.vmem [shape: bf16[64,32], index: 3, kind: input, shape index: {}]   ;;  %s384_s2 = inlined_call_operand.vmem [shape: f32[1,64], index: 2, kind: input, shape index: {}]   ;;  %s385_s4 = inlined_call_operand.vmem [shape: f32[1,32], index: 4, kind: input, shape index: {}]   ;;  %s386_s5 = inlined_call_operand.vmem [shape: f32[1,32], index: 5, kind: input, shape index: {}]   ;;  %s387_s6 = inlined_call_operand.vmem [shape: f32[1,32], index: 6, kind: input, shape index: {}]   ;;  %s388_s7 = inlined_call_operand.vmem [shape: f32[16,32], index: 7, kind: output, shape index: {}]  }
   0x1   :  { %258 = vmatprep.subr.bf16.mxu0 %v290_v0  ;;  %v280_v1 = vld [vmem:[%s381_s1] sm:$0xff]   ;;  %262 = vmatprep.mubr.msk.bf16.mxu0 %vm291_vm0, %v290_v0  ;;  %v281_v2 = vld [vmem:[%s381_s1 + $0x8] sm:$0xff]   ;;  %v284_v8 = vld [vmem:[%s383_s3 + $0x10] sm:$0xff]  }
   0x2   :  { %266 = vmatprep.subr.bf16.mxu1 %v290_v0  ;;  %274 = vmatprep.mubr.msk.bf16.mxu1 %vm291_vm0, %v290_v0  ;;  %v27_v3 = vld [vmem:[%s382_s0] sm:$0xff]  ;;  %v28_v4 = vld [vmem:[%s382_s0 + $0x8] sm:$0xff]  ;;  %v285_v9 = vld [vmem:[%s383_s3 + $0x18] sm:$0xff]  }
   0x3   :  { %259 = vmatpush3.bf16.msra.mxu0 %v280_v1  ;;  %v282_v5 = vld [vmem:[%s383_s3] sm:$0xff]   ;;  %v283_v6 = vld [vmem:[%s383_s3 + $0x8] sm:$0xff]   ;;  %v29_v7 = vpack.c.bf16 %v28_v4, %v27_v3 }
   0x4   :  { %260 = vmatprep.subr.bf16.mxu0 %v290_v0  ;;  %267 = vmatpush3.bf16.msra.mxu1 %v282_v5  ;;  %v238_v10 = vld [vmem:[%s384_s2] ss:$0 sm:$0xff] }
   0x5   :  { %268 = vmatprep.subr.bf16.mxu1 %v290_v0  ;;  %v242_v20 = vld [vmem:[%s385_s4] ss:$0 sm:$0xff] }
   0x6   :  { %v248_v48 = vld [vmem:[%s386_s5] ss:$0 sm:$0xff] }
   0x7   :  { %261 = vmatpush3.bf16.msra.mxu0 %v281_v2  ;;  %v249_v50 = vld [vmem:[%s387_s6] ss:$0 sm:$0xff] }
   0x8   :  { %269 = vmatpush3.bf16.msra.mxu1 %v283_v6 }
   0x9   :  { %270 = vmatprep.subr.bf16.mxu1 %v290_v0 }
   0xa   :  { %263 = vmatmul.mubr.msk.bf16.vlgmr.msra.gmra.mrb[0].mxu0 %vm53_vm1, %v29_v7 }
   0xc   :  { %271 = vmatpush3.bf16.msra.mxu1 %v284_v8 }
   0xd   :  { %272 = vmatprep.subr.bf16.mxu1 %v290_v0 }
  0x10   :  { %273 = vmatpush3.bf16.msra.mxu1 %v285_v9 }
  0xdd   :  { %v91_v11 = vpop.f32.mrb[0].mxu0 }
  0xde   :  { %v92_v12 = vadd.f32 %v238_v10, %v91_v11  ;;  %v264_v13 = vpop.f32.mrb[1].mxu0 }
  0xdf   :  { %v94_v14 = vpop.f32.mrb[2].mxu0 }
  0xe0   :  { %v95_v15 = vadd.f32 %v238_v10, %v94_v14  ;;  %v265_v16 = vpop.f32.mrb[3].mxu0  ;;  %v98_v17 = vmax.f32 %v92_v12, 0.0 }
  0xe2   :  { %v99_v18 = vmax.f32 %v95_v15, 0.0 }
  0xe4   :  { %v100_v19 = vpack.c.bf16 %v99_v18, %v98_v17 }
  0xe6   :  { %275 = vmatmul.mubr.msk.bf16.vlgmr.msra.gmra.mrb[0].mxu1 %vm140_vm2, %v100_v19 }
 0x1b9   :  { %v178_v21 = vpop.f32.mrb[0].mxu1 }
 0x1ba   :  { %v179_v22 = vadd.f32 %v242_v20, %v178_v21  ;;  %v276_v23 = vpop.f32.mrb[1].mxu1 }
 0x1bb   :  { %v181_v24 = vpop.f32.mrb[2].mxu1 }
 0x1bc   :  { %v182_v25 = vadd.f32 %v242_v20, %v181_v24  ;;  %v277_v26 = vpop.f32.mrb[3].mxu1  ;;  %v185_v27 = vadd.f32 %v179_v22, %v27_v3 }
 0x1be   :  { %v187_v28 = vsel %vm53_vm1, %v185_v27, 0.0  ;;  %v186_v29 = vadd.f32 %v182_v25, %v28_v4 }
 0x1bf   :  { %188 = vadd.xlane.f32.xlu0 %v187_v28 }
 0x1c0   :  { %v190_v30 = vsel %vm53_vm1, %v186_v29, 0.0 }
 0x1c3   :  { %191 = vadd.xlane.f32.xlu0 %v190_v30 }
 0x24c   :  { %v189_v31 = vpop.xlane.xlu0 %188 }
 0x24d   :  { %v194_v32 = vmul.f32 0.03125, %v189_v31 }
 0x24f   :  { %v196_v33 = vsub.f32 %v185_v27, %v194_v32 }
 0x250   :  { %v192_v34 = vpop.xlane.xlu0 %191 }
 0x251   :  { %v195_v35 = vmul.f32 0.03125, %v192_v34  ;;  %v198_v36 = vmul.f32 %v196_v33, %v196_v33 }
 0x253   :  { %v197_v37 = vsub.f32 %v186_v29, %v195_v35  ;;  %v200_v38 = vsel %vm53_vm1, %v198_v36, 0.0 }
 0x254   :  { %201 = vadd.xlane.f32.xlu1 %v200_v38 }
 0x255   :  { %v199_v39 = vmul.f32 %v197_v37, %v197_v37 }
 0x257   :  { %v203_v40 = vsel %vm53_vm1, %v199_v39, 0.0 }
 0x258   :  { %204 = vadd.xlane.f32.xlu1 %v203_v40 }
 0x2e1   :  { %v202_v41 = vpop.xlane.xlu1 %201 }
 0x2e2   :  { %v206_v42 = vmul.f32 0.03125, %v202_v41 }
 0x2e4   :  { %v208_v43 = vadd.f32 1e-05, %v206_v42 }
 0x2e5   :  { %v205_v44 = vpop.xlane.xlu1 %204 }
 0x2e6   :  { %286 = vrsqrt.f32 %v208_v43  ;;  %v207_v45 = vmul.f32 0.03125, %v205_v44 }
 0x2e8   :  { %v209_v46 = vadd.f32 1e-05, %v207_v45 }
 0x2ea   :  { %288 = vrsqrt.f32 %v209_v46 }
 0x2f0   :  { %v287_v47 = vpop.eup %286 }
 0x2f1   :  { %v212_v49 = vmul.f32 %v287_v47, %v196_v33 }
 0x2f3   :  { %v221_v51 = vmul.f32 %v248_v48, %v212_v49 }
 0x2f4   :  { %v289_v52 = vpop.eup %288 }
 0x2f5   :  { %v230_v53 = vadd.f32 %v249_v50, %v221_v51  ;;  %v213_v54 = vmul.f32 %v289_v52, %v197_v37 }
 0x2f7   :  { %232 = vst.msk [vmem:[%s388_s7] sm:$0xff] %vm53_vm1, %v230_v53  ;;  %v222_v55 = vmul.f32 %v248_v48, %v213_v54 }
 0x2f9   :  { %v231_v56 = vadd.f32 %v249_v50, %v222_v55 }
 0x2fb   :  { %233 = vst.msk [vmem:[%s388_s7 + $0x8] sm:$0xff] %vm53_vm1, %v231_v56 }

// kernel: model_forward.19
= control target key start
LH: loop header
LB: loop body
LE: loop exit
PB: predicated region body
PF: predicated region fallthrough
CT: control target
= control target key end

     0   :  { %v111_v0 = vmov 0.0   ;;  %vm112_vm0 = vmmov 0   ;;  %vm42_vm1 = vcmask 261120   ;;  %vm86_vm2 = vcmask 1024   ;;  %s148_s1 = inlined_call_operand.vmem [shape: bf16[32,1], index: 1, kind: input, shape index: {}]   ;;  %s149_s0 = inlined_call_operand.vmem [shape: f32[2,32], index: 0, kind: input, shape index: {}]   ;;  %s150_s2 = inlined_call_operand.<no memory space> [shape: f32[1,1], index: 2, kind: input, shape index: {}]   ;;  %s151_s3 = inlined_call_operand.vmem [shape: f32[2,1], index: 3, kind: output, shape index: {}]  }
   0x1   :  { %99 = vmatprep.subr.bf16.mxu0 %v111_v0  ;;  %v109_v1 = vld [vmem:[%s148_s1] sm:$0xff]   ;;  %103 = vmatprep.mubr.msk.bf16.mxu0 %vm112_vm0, %v111_v0  ;;  %v8_v2 = vstv %s150_s2  ;;  %v110_v3 = vld [vmem:[%s148_s1 + $0x8] sm:$0xff]  }
   0x2   :  { %9 = vst [vmem:[#allocation2] sm:$0x1] %v8_v2  ;;  %100 = vmatpush3.bf16.msra.mxu0 %v109_v1  ;;  %v17_v4 = vld [vmem:[%s149_s0] sm:$0x3] }
   0x3   :  { %101 = vmatprep.subr.bf16.mxu0 %v111_v0  ;;  %v18_v5 = vpack.c.bf16 %v17_v4, %v17_v4 }
   0x6   :  { %102 = vmatpush3.bf16.msra.mxu0 %v110_v3 }
   0x9   :  { %104 = vmatmul.mubr.msk.bf16.vlgmr.msra.gmra.mrb[0].mxu0 %vm42_vm1, %v18_v5  ;;  %v92_v6 = vld [vmem:[#allocation2] ss:$0 sm:$0xff] }
  0xdc   :  { %v80_v7 = vpop.f32.mrb[0].mxu0 }
  0xdd   :  { %v81_v8 = vadd.f32 %v92_v6, %v80_v7  ;;  %v105_v9 = vpop.f32.mrb[1].mxu0 }
  0xde   :  { %v83_v10 = vpop.f32.mrb[2].mxu0 }
  0xdf   :  { %87 = vst.msk [vmem:[%s151_s3] sm:$0x3] %vm86_vm2, %v81_v8  ;;  %v106_v11 = vpop.f32.mrb[3].mxu0 }

</bundles_post_ra>
